<compile_context>
chip_gen: v7x
topology: tpu7x:2x2x1
jax: 0.10.0
libtpu: 0.0.40
codegen_flags: <defaults>
</compile_context>

<pallas_src>
import functools

import jax
import jax.numpy as jnp
from jax.experimental import pallas as pl
from jax.experimental.pallas import tpu as pltpu


def _round_up(x, m):
    return (x + m - 1) // m * m


# ------------------------------- kernel --------------------------------------

def _inverted_block_kernel(*refs, has_expand, use_skip, stride, W, W2p, Wo_p,
                           row_tile, n_in, zero_last_row):
    refs = list(refs)
    x_ref = refs.pop(0)                        # (H+2, W2p, Cin[_p]) padded input
    if has_expand:
        w_exp_ref = refs.pop(0)                # (Cin, Cexp_p)   bf16, BN folded
        b_exp_ref = refs.pop(0)                # (1, Cexp_p)     f32
    w_dw_ref = refs.pop(0)                     # (3, 3, Cexp_p)  f32, BN folded
    b_dw_ref = refs.pop(0)                     # (1, 1, Cexp_p)  f32
    w_pw_ref = refs.pop(0)                     # (Cexp_p, Cout_p) bf16, BN folded
    b_pw_ref = refs.pop(0)                     # (1, Cout_p)     f32
    xres_ref = refs.pop(0) if (use_skip and has_expand) else None
    o_ref = refs.pop(0)                        # (row_tile, Wo_p, Cout_p)
    h_ref = refs.pop(0) if has_expand else None  # (n_in, W2p, Cexp_p) f32 scratch

    r = pl.program_id(1)
    row0 = pl.multiple_of(r * (row_tile * stride), row_tile * stride)
    cexp_p = w_pw_ref.shape[0]
    cout_p = w_pw_ref.shape[1]

    # ---- 1) expand 1x1 conv (bf16 MXU, f32 acc) + bias + ReLU6, staged in VMEM
    if has_expand:
        cin = x_ref.shape[-1]
        xin = x_ref[pl.ds(row0, n_in), :, :]                        # bf16
        h = jnp.dot(xin.reshape(n_in * W2p, cin), w_exp_ref[...],
                    preferred_element_type=jnp.float32)
        h = jnp.clip(h + b_exp_ref[...], 0.0, 6.0)
        h_ref[...] = h.reshape(n_in, W2p, cexp_p)                   # aligned slab

        # The depthwise padding ring must be zero *after* the expansion
        # (expand(0) + bias != 0).  Zero only the ring with narrow stores
        # instead of a full-slab iota/where mask.
        zero_col = jnp.zeros((n_in, 1, cexp_p), jnp.float32)
        h_ref[:, 0:1, :] = zero_col
        h_ref[:, W + 1:W + 2, :] = zero_col
        zero_row = jnp.zeros((1, W2p, cexp_p), jnp.float32)

        @pl.when(r == 0)
        def _():
            h_ref[0:1, :, :] = zero_row

        if zero_last_row:
            @pl.when(r == pl.num_programs(1) - 1)
            def _():
                h_ref[n_in - 1:n_in, :, :] = zero_row

    # ---- 2) depthwise 3x3 conv (pad=1, stride) + bias + ReLU6 (f32 VPU) ----
    # Taps are offset ref loads (vld slot has slack), not slices of a big SSA
    # value, so nothing spills and there are no sublane-shift relayouts.
    w_all = w_dw_ref[...]                                           # hoisted load

    def tap(dy, dx):
        if has_expand:
            if stride == 1:
                t = h_ref[dy:dy + row_tile, dx:dx + Wo_p, :]
            else:
                # TODO(synk): stride>1 strided ref reads are not exercised by
                # __main__; validate on hardware before relying on them.
                t = h_ref[pl.ds(dy, row_tile, stride),
                          pl.ds(dx, Wo_p, stride), :]
        else:
            if stride == 1:
                t = x_ref[pl.ds(row0 + dy, row_tile), dx:dx + Wo_p, :]
            else:
                t = x_ref[pl.ds(row0 + dy, row_tile, stride),
                          pl.ds(dx, Wo_p, stride), :]
        return t * w_all[dy, dx]

    order = [(dy, dx) for dy in range(3) for dx in range(3)]
    acc0 = tap(*order[0])            # init from taps: no zero-init slabs
    acc1 = tap(*order[1])            # two accumulators -> VALU ILP
    for i in range(2, 9):
        if i % 2 == 0:
            acc0 = acc0 + tap(*order[i])
        else:
            acc1 = acc1 + tap(*order[i])
    dw = jnp.clip(acc0 + acc1 + b_dw_ref[...], 0.0, 6.0)

    # ---- 3) pointwise 1x1 conv (bf16 MXU, f32 acc) + bias ----
    y = jnp.dot(dw.reshape(row_tile * Wo_p, cexp_p).astype(jnp.bfloat16),
                w_pw_ref[...], preferred_element_type=jnp.float32)
    y = (y + b_pw_ref[...]).reshape(row_tile, Wo_p, cout_p)

    # ---- 4) residual ----
    if use_skip:
        if has_expand:
            y = y + xres_ref[...]                      # aligned f32 tile
        else:
            y = y + x_ref[pl.ds(row0 + 1, row_tile), 1:1 + Wo_p, :]

    o_ref[...] = y.astype(o_ref.dtype)


# ------------------------------- wrapper --------------------------------------

def _pick_row_tile(Ho, Wo_p, W2p, cexp_p, stride, target_m=256,
                   scratch_budget=8 << 20):
    """Smallest divisor of Ho whose matmul M (= row_tile*Wo_p) reaches
    `target_m` while the depthwise staging scratch stays under budget; when no
    divisor reaches target_m (small maps) take the largest fitting one."""
    divisors = [d for d in range(1, Ho + 1) if Ho % d == 0]

    def scratch_bytes(d):
        return ((d - 1) * stride + 3) * W2p * cexp_p * 4

    fitting = [d for d in divisors if scratch_bytes(d) <= scratch_budget] or [1]
    meeting = [d for d in fitting if d * Wo_p >= target_m]
    return min(meeting) if meeting else max(fitting)


def _vmem_limit_bytes():
    # Lift the default scoped-VMEM cap (128 MiB physical on v5e/v6e, 64 MiB on
    # v7x).  The per-step working set here is far below either.
    try:
        cap = int(pltpu.get_tpu_info().vmem_capacity_bytes)
        return int(min(max(cap - (16 << 20), 32 << 20), 100 << 20))
    except Exception:
        return 64 << 20


def inverted_block(x_nchw, folded, *, in_channels, exp_channels, out_channels,
                   stride, row_tile=None):
    """InvertedBlock forward.  x_nchw: (N, Cin, H, W) f32 -> (N, Cout, Ho, Wo)."""
    has_expand = in_channels != exp_channels
    use_skip = (stride == 1) and (in_channels == out_channels)

    N, _, H, W = x_nchw.shape
    Ho = (H - 1) // stride + 1
    Wo = (W - 1) // stride + 1

    # Lane-dense channel padding (channels live on the 128-wide lane axis).
    cin_p = in_channels if has_expand else _round_up(in_channels, 128)
    cexp_p = _round_up(exp_channels, 128)
    cout_p = _round_up(out_channels, 128)
    # Sublane-friendly spatial padding (layout-free reshapes) + enough right
    # columns for the widest depthwise tap of the padded output width.
    Wo_p = _round_up(Wo, 8)
    W2p = _round_up(max(W + 2, 3 + (Wo_p - 1) * stride), 8)

    x = jnp.transpose(x_nchw, (0, 2, 3, 1)).astype(jnp.float32)       # NHWC

    # Spatial zero padding done once wrapper-side (aligned; no in-kernel masks).
    xp = jnp.pad(x, ((0, 0), (1, 1), (1, W2p - W - 1), (0, cin_p - in_channels)))
    if has_expand:
        # Input only feeds the bf16 expand matmul -> pre-cast (halves HBM/VMEM).
        xp = xp.astype(jnp.bfloat16)

    if row_tile is None:
        row_tile = _pick_row_tile(Ho, Wo_p, W2p, cexp_p, stride)
    assert Ho % row_tile == 0, (Ho, row_tile)
    n_tiles = Ho // row_tile
    n_in = (row_tile - 1) * stride + 3
    zero_last_row = (Ho - 1) * stride + 2 == H + 1

    # Zero-pad the folded parameters to the lane-dense shapes (exact).
    f = folded
    dcexp = cexp_p - exp_channels
    dcout = cout_p - out_channels
    w_dw = jnp.pad(f["w_dw"].reshape(3, 3, -1).astype(jnp.float32),
                   ((0, 0), (0, 0), (0, dcexp)))
    b_dw = jnp.pad(f["b_dw"].reshape(1, 1, -1).astype(jnp.float32),
                   ((0, 0), (0, 0), (0, dcexp)))
    w_pw = jnp.pad(f["w_pw"].astype(jnp.bfloat16), ((0, dcexp), (0, dcout)))
    b_pw = jnp.pad(f["b_pw"].reshape(1, -1).astype(jnp.float32),
                   ((0, 0), (0, dcout)))

    def const_spec(arr):
        nd = arr.ndim
        return pl.BlockSpec(arr.shape, lambda n, r, _nd=nd: (0,) * _nd)

    operands = [xp]
    in_specs = [pl.BlockSpec((pl.Squeezed(), H + 2, W2p, cin_p),
                             lambda n, r: (n, 0, 0, 0))]
    if has_expand:
        w_exp = jnp.pad(f["w_exp"].astype(jnp.bfloat16), ((0, 0), (0, dcexp)))
        b_exp = jnp.pad(f["b_exp"].reshape(1, -1).astype(jnp.float32),
                        ((0, 0), (0, dcexp)))
        operands += [w_exp, b_exp]
        in_specs += [const_spec(w_exp), const_spec(b_exp)]
    operands += [w_dw, b_dw, w_pw, b_pw]
    in_specs += [const_spec(w_dw), const_spec(b_dw),
                 const_spec(w_pw), const_spec(b_pw)]

    if use_skip and has_expand:
        # Separate aligned f32 residual tile (the main input block is bf16).
        xres = jnp.pad(x, ((0, 0), (0, 0), (0, Wo_p - W),
                           (0, cout_p - out_channels)))
        operands.append(xres)
        in_specs.append(pl.BlockSpec((pl.Squeezed(), row_tile, Wo_p, cout_p),
                                     lambda n, r: (n, r, 0, 0)))

    scratch_shapes = []
    if has_expand:
        scratch_shapes.append(pltpu.VMEM((n_in, W2p, cexp_p), jnp.float32))

    kernel = functools.partial(
        _inverted_block_kernel,
        has_expand=has_expand, use_skip=use_skip, stride=stride,
        W=W, W2p=W2p, Wo_p=Wo_p, row_tile=row_tile, n_in=n_in,
        zero_last_row=zero_last_row)

    out_nhwc = pl.pallas_call(
        kernel,
        out_shape=jax.ShapeDtypeStruct((N, Ho, Wo_p, cout_p), jnp.float32),
        grid_spec=pltpu.PrefetchScalarGridSpec(
            num_scalar_prefetch=0,
            grid=(N, n_tiles),
            in_specs=in_specs,
            out_specs=pl.BlockSpec((pl.Squeezed(), row_tile, Wo_p, cout_p),
                                   lambda n, r: (n, r, 0, 0)),
            scratch_shapes=scratch_shapes,
        ),
        compiler_params=pltpu.CompilerParams(
            # Batch elements and output row tiles are disjoint, the revisited
            # input block is read-only -> both axes can be sharded across TCs
            # (matters for batch-1 inference on v7x's 2 TensorCores).
            dimension_semantics=("parallel", "parallel"),
            vmem_limit_bytes=_vmem_limit_bytes(),
        ),
    )(*operands)

    out = out_nhwc[:, :, :Wo, :out_channels]
    return jnp.transpose(out, (0, 3, 1, 2))                           # NCHW


# --------------------------- parameter setup ----------------------------------

def make_raw_params(key, cin, cexp, cout):
    """Random conv weights + BatchNorm (eval-mode) statistics."""
    ks = iter(jax.random.split(key, 20))

    def bn(c):
        return dict(
            gamma=1.0 + 0.1 * jax.random.normal(next(ks), (c,), jnp.float32),
            beta=0.1 * jax.random.normal(next(ks), (c,), jnp.float32),
            mean=0.05 * jax.random.normal(next(ks), (c,), jnp.float32),
            var=jax.random.uniform(next(ks), (c,), jnp.float32, 0.5, 1.5))

    p = {}
    if cin != cexp:
        p["w_exp"] = 0.2 * jax.random.normal(next(ks), (cin, cexp), jnp.float32)
        p["bn_exp"] = bn(cexp)
    p["w_dw"] = 0.2 * jax.random.normal(next(ks), (3, 3, cexp), jnp.float32)
    p["bn_dw"] = bn(cexp)
    p["w_pw"] = 0.2 * jax.random.normal(next(ks), (cexp, cout), jnp.float32)
    p["bn_pw"] = bn(cout)
    return p


def fold_params(raw, *, has_expand, eps=1e-5):
    """Fold BN scale into conv weights; keep only the per-channel bias."""
    def fold(bn):
        s = bn["gamma"] / jnp.sqrt(bn["var"] + eps)
        return s, bn["beta"] - bn["mean"] * s

    f = {}
    if has_expand:
        s, b = fold(raw["bn_exp"])
        f["w_exp"] = (raw["w_exp"] * s[None, :]).astype(jnp.bfloat16)
        f["b_exp"] = b[None, :].astype(jnp.float32)
    s, b = fold(raw["bn_dw"])
    f["w_dw"] = (raw["w_dw"] * s[None, None, :]).astype(jnp.float32)
    f["b_dw"] = b[None, None, :].astype(jnp.float32)
    s, b = fold(raw["bn_pw"])
    f["w_pw"] = (raw["w_pw"] * s[None, :]).astype(jnp.bfloat16)
    f["b_pw"] = b[None, :].astype(jnp.float32)
    return f


# --------------------------- pure-JAX references -------------------------------

def reference_folded(x_nchw, folded, *, in_channels, exp_channels, out_channels,
                     stride):
    """Same folded/bf16 math as the kernel (strict numerical check)."""
    has_expand = in_channels != exp_channels
    use_skip = stride == 1 and in_channels == out_channels
    x = jnp.transpose(x_nchw, (0, 2, 3, 1)).astype(jnp.float32)
    h = x
    if has_expand:
        h = jnp.einsum("nhwc,cd->nhwd", h.astype(jnp.bfloat16), folded["w_exp"],
                       preferred_element_type=jnp.float32)
        h = jnp.clip(h + folded["b_exp"], 0.0, 6.0)
    N, H, W, C = h.shape
    Ho = (H - 1) // stride + 1
    Wo = (W - 1) // stride + 1
    hp = jnp.pad(h, ((0, 0), (1, 1), (1, 1), (0, 0)))
    acc = jnp.zeros((N, Ho, Wo, C), jnp.float32)
    for dy in range(3):
        for dx in range(3):
            he = dy + stride * (Ho - 1) + 1
            we = dx + stride * (Wo - 1) + 1
            acc = acc + hp[:, dy:he:stride, dx:we:stride, :] * folded["w_dw"][dy, dx]
    acc = jnp.clip(acc + folded["b_dw"], 0.0, 6.0)
    y = jnp.einsum("nhwc,cd->nhwd", acc.astype(jnp.bfloat16), folded["w_pw"],
                   preferred_element_type=jnp.float32)
    y = y + folded["b_pw"]
    if use_skip:
        y = y + x
    return jnp.transpose(y, (0, 3, 1, 2))


def reference_raw(x_nchw, raw, *, in_channels, exp_channels, out_channels,
                  stride, eps=1e-5):
    """Faithful f32 conv -> BN(eval) -> ReLU6 module semantics (loose check)."""
    has_expand = in_channels != exp_channels
    use_skip = stride == 1 and in_channels == out_channels

    def bn_apply(h, bn):
        s = bn["gamma"] / jnp.sqrt(bn["var"] + eps)
        return (h - bn["mean"]) * s + bn["beta"]

    x = jnp.transpose(x_nchw, (0, 2, 3, 1)).astype(jnp.float32)
    h = x
    if has_expand:
        h = jnp.einsum("nhwc,cd->nhwd", h, raw["w_exp"])
        h = jnp.clip(bn_apply(h, raw["bn_exp"]), 0.0, 6.0)
    N, H, W, C = h.shape
    Ho = (H - 1) // stride + 1
    Wo = (W - 1) // stride + 1
    hp = jnp.pad(h, ((0, 0), (1, 1), (1, 1), (0, 0)))
    acc = jnp.zeros((N, Ho, Wo, C), jnp.float32)
    for dy in range(3):
        for dx in range(3):
            he = dy + stride * (Ho - 1) + 1
            we = dx + stride * (Wo - 1) + 1
            acc = acc + hp[:, dy:he:stride, dx:we:stride, :] * raw["w_dw"][dy, dx]
    acc = jnp.clip(bn_apply(acc, raw["bn_dw"]), 0.0, 6.0)
    y = jnp.einsum("nhwc,cd->nhwd", acc, raw["w_pw"])
    y = bn_apply(y, raw["bn_pw"])
    if use_skip:
        y = y + x
    return jnp.transpose(y, (0, 3, 1, 2))


# ----------------------------------- main --------------------------------------

if __name__ == "__main__":
    N, H, W = 2, 16, 16
    configs = [
        # (in_channels, exp_channels, out_channels, stride)
        (4, 8, 4, 1),   # expansion layer present + skip connection (canonical)
        (8, 8, 8, 1),   # no expansion (DepSepConv path) + skip connection
        (4, 8, 8, 1),   # expansion present, no skip (Cin != Cout)
    ]

    key = jax.random.PRNGKey(0)
    for (cin, cexp, cout, stride) in configs:
        key, kx, kp = jax.random.split(key, 3)
        x = jax.random.normal(kx, (N, cin, H, W), jnp.float32)
        raw = make_raw_params(kp, cin, cexp, cout)
        folded = fold_params(raw, has_expand=(cin != cexp))

        fwd = jax.jit(functools.partial(
            inverted_block, in_channels=cin, exp_channels=cexp,
            out_channels=cout, stride=stride))
        out = jax.block_until_ready(fwd(x, folded))

        Ho = (H - 1) // stride + 1
        Wo = (W - 1) // stride + 1
        assert out.shape == (N, cout, Ho, Wo), out.shape

        ref_f = reference_folded(x, folded, in_channels=cin, exp_channels=cexp,
                                 out_channels=cout, stride=stride)
        ref_r = reference_raw(x, raw, in_channels=cin, exp_channels=cexp,
                              out_channels=cout, stride=stride)
        err_f = float(jnp.max(jnp.abs(out - ref_f)))
        err_r = float(jnp.max(jnp.abs(out - ref_r)))
        assert jnp.allclose(out, ref_f, atol=2e-2, rtol=2e-2), (cin, cexp, cout, err_f)
        assert jnp.allclose(out, ref_r, atol=6e-2, rtol=6e-2), (cin, cexp, cout, err_r)

    print("KERNEL_OK")
</pallas_src>

<mosaic_0001>
module attributes {stable_mosaic.version = 11 : i64} {
  func.func @_inverted_block_kernel(%arg0: i32, %arg1: i32, %arg2: memref<1x18x24x4xbf16, #tpu.memory_space<vmem>>, %arg3: memref<4x128xbf16, #tpu.memory_space<vmem>>, %arg4: memref<1x128xf32, #tpu.memory_space<vmem>>, %arg5: memref<3x3x128xf32, #tpu.memory_space<vmem>>, %arg6: memref<1x1x128xf32, #tpu.memory_space<vmem>>, %arg7: memref<128x128xbf16, #tpu.memory_space<vmem>>, %arg8: memref<1x128xf32, #tpu.memory_space<vmem>>, %arg9: memref<1x16x16x128xf32, #tpu.memory_space<vmem>>, %arg10: memref<1x16x16x128xf32, #tpu.memory_space<vmem>>, %arg11: memref<18x24x128xf32, #tpu.memory_space<vmem>>) attributes {dimension_semantics = [#tpu.dimension_semantics<parallel>, #tpu.dimension_semantics<parallel>], iteration_bounds = array<i64: 2, 1>, scalar_prefetch = 0 : i64, scratch_operands = 1 : i64, tpu.core_type = #tpu.core_type<tc>, window_params = [{transform_indices = @transform_0, window_bounds = array<i64: 1, 18, 24, 4>}, {pipeline_mode = #tpu.pipeline_mode<synchronous>, transform_indices = @transform_1, window_bounds = array<i64: 4, 128>}, {pipeline_mode = #tpu.pipeline_mode<synchronous>, transform_indices = @transform_2, window_bounds = array<i64: 1, 128>}, {pipeline_mode = #tpu.pipeline_mode<synchronous>, transform_indices = @transform_3, window_bounds = array<i64: 3, 3, 128>}, {pipeline_mode = #tpu.pipeline_mode<synchronous>, transform_indices = @transform_4, window_bounds = array<i64: 1, 1, 128>}, {pipeline_mode = #tpu.pipeline_mode<synchronous>, transform_indices = @transform_5, window_bounds = array<i64: 128, 128>}, {pipeline_mode = #tpu.pipeline_mode<synchronous>, transform_indices = @transform_6, window_bounds = array<i64: 1, 128>}, {transform_indices = @transform_7, window_bounds = array<i64: 1, 16, 16, 128>}, {transform_indices = @transform_8, window_bounds = array<i64: 1, 16, 16, 128>}]} {
    %c16_i32 = arith.constant 16 : i32
    %0 = arith.muli %arg1, %c16_i32 : i32
    %1 = tpu.assume_multiple %0, 16 : i32
    %c0 = arith.constant 0 : index
    %2 = arith.index_cast %1 : i32 to index
    %c0_0 = arith.constant 0 : index
    %c0_1 = arith.constant 0 : index
    %3 = vector.load %arg2[%c0, %2, %c0_0, %c0_1] : memref<1x18x24x4xbf16, #tpu.memory_space<vmem>>, vector<1x18x24x4xbf16>
    %4 = vector.shape_cast %3 : vector<1x18x24x4xbf16> to vector<18x24x4xbf16>
    %5 = vector.shape_cast %4 : vector<18x24x4xbf16> to vector<432x4xbf16>
    %c0_2 = arith.constant 0 : index
    %c0_3 = arith.constant 0 : index
    %6 = vector.load %arg3[%c0_2, %c0_3] : memref<4x128xbf16, #tpu.memory_space<vmem>>, vector<4x128xbf16>
    %cst = arith.constant dense<0.000000e+00> : vector<432x128xf32>
    %7 = tpu.matmul %5, %6, %cst {dimension_numbers = #tpu.dot_dimension_numbers<[1], [0], [0], [1], [0, 0, 1, 1], [], []>} : vector<432x4xbf16>, vector<4x128xbf16>, vector<432x128xf32> -> vector<432x128xf32>
    %c0_4 = arith.constant 0 : index
    %c0_5 = arith.constant 0 : index
    %8 = vector.load %arg4[%c0_4, %c0_5] : memref<1x128xf32, #tpu.memory_space<vmem>>, vector<1x128xf32>
    %9 = vector.broadcast %8 : vector<1x128xf32> to vector<432x128xf32>
    %10 = arith.addf %7, %9 : vector<432x128xf32>
    %cst_6 = arith.constant 0.000000e+00 : f32
    %cst_7 = arith.constant 6.000000e+00 : f32
    %11 = vector.broadcast %cst_6 : f32 to vector<432x128xf32>
    %12 = arith.maximumf %11, %10 : vector<432x128xf32>
    %13 = vector.broadcast %cst_7 : f32 to vector<432x128xf32>
    %14 = arith.minimumf %13, %12 : vector<432x128xf32>
    %15 = vector.shape_cast %14 : vector<432x128xf32> to vector<18x24x128xf32>
    %c0_8 = arith.constant 0 : index
    %c0_9 = arith.constant 0 : index
    %c0_10 = arith.constant 0 : index
    %16 = vector.load %arg11[%c0_8, %c0_9, %c0_10] : memref<18x24x128xf32, #tpu.memory_space<vmem>>, vector<18x24x128xf32>
    tpu.vector_store %arg11[%c0_8, %c0_9, %c0_10], %15 {strides = array<i32>} : memref<18x24x128xf32, #tpu.memory_space<vmem>>, vector<18x24x128xf32>,
    %cst_11 = arith.constant 0.000000e+00 : f32
    %17 = vector.broadcast %cst_11 : f32 to vector<18x1x128xf32>
    %c0_12 = arith.constant 0 : index
    %c0_13 = arith.constant 0 : index
    %c0_14 = arith.constant 0 : index
    %18 = vector.load %arg11[%c0_12, %c0_13, %c0_14] : memref<18x24x128xf32, #tpu.memory_space<vmem>>, vector<18x1x128xf32>
    tpu.vector_store %arg11[%c0_12, %c0_13, %c0_14], %17 {strides = array<i32>} : memref<18x24x128xf32, #tpu.memory_space<vmem>>, vector<18x1x128xf32>,
    %c0_15 = arith.constant 0 : index
    %c17 = arith.constant 17 : index
    %c0_16 = arith.constant 0 : index
    %19 = vector.load %arg11[%c0_15, %c17, %c0_16] : memref<18x24x128xf32, #tpu.memory_space<vmem>>, vector<18x1x128xf32>
    tpu.vector_store %arg11[%c0_15, %c17, %c0_16], %17 {strides = array<i32>} : memref<18x24x128xf32, #tpu.memory_space<vmem>>, vector<18x1x128xf32>,
    %cst_17 = arith.constant 0.000000e+00 : f32
    %20 = vector.broadcast %cst_17 : f32 to vector<1x24x128xf32>
    %c0_i32 = arith.constant 0 : i32
    %21 = arith.cmpi eq, %arg1, %c0_i32 : i32
    %22 = arith.extui %21 : i1 to i32
    %c0_i32_18 = arith.constant 0 : i32
    %23 = arith.cmpi ne, %22, %c0_i32_18 : i32
    scf.if %23 {
      %c0_67 = arith.constant 0 : index
      %c0_68 = arith.constant 0 : index
      %c0_69 = arith.constant 0 : index
      %111 = vector.load %arg11[%c0_67, %c0_68, %c0_69] : memref<18x24x128xf32, #tpu.memory_space<vmem>>, vector<1x24x128xf32>
      tpu.vector_store %arg11[%c0_67, %c0_68, %c0_69], %20 {strides = array<i32>} : memref<18x24x128xf32, #tpu.memory_space<vmem>>, vector<1x24x128xf32>,
    } else {
    }
    %c0_i32_19 = arith.constant 0 : i32
    %24 = arith.cmpi eq, %arg1, %c0_i32_19 : i32
    %25 = arith.extui %24 : i1 to i32
    %c0_i32_20 = arith.constant 0 : i32
    %26 = arith.cmpi ne, %25, %c0_i32_20 : i32
    scf.if %26 {
      %c17_67 = arith.constant 17 : index
      %c0_68 = arith.constant 0 : index
      %c0_69 = arith.constant 0 : index
      %111 = vector.load %arg11[%c17_67, %c0_68, %c0_69] : memref<18x24x128xf32, #tpu.memory_space<vmem>>, vector<1x24x128xf32>
      tpu.vector_store %arg11[%c17_67, %c0_68, %c0_69], %20 {strides = array<i32>} : memref<18x24x128xf32, #tpu.memory_space<vmem>>, vector<1x24x128xf32>,
    } else {
    }
    %c0_21 = arith.constant 0 : index
    %c0_22 = arith.constant 0 : index
    %c0_23 = arith.constant 0 : index
    %27 = vector.load %arg5[%c0_21, %c0_22, %c0_23] : memref<3x3x128xf32, #tpu.memory_space<vmem>>, vector<3x3x128xf32>
    %c0_24 = arith.constant 0 : index
    %c0_25 = arith.constant 0 : index
    %c0_26 = arith.constant 0 : index
    %28 = vector.load %arg11[%c0_24, %c0_25, %c0_26] : memref<18x24x128xf32, #tpu.memory_space<vmem>>, vector<16x16x128xf32>
    %29 = vector.extract_strided_slice %27 {offsets = [0, 0, 0], sizes = [1, 1, 128], strides = [1, 1, 1]} : vector<3x3x128xf32> to vector<1x1x128xf32>
    %30 = vector.shape_cast %29 : vector<1x1x128xf32> to vector<128xf32>
    %31 = vector.shape_cast %30 : vector<128xf32> to vector<1x1x128xf32>
    %32 = vector.broadcast %31 : vector<1x1x128xf32> to vector<16x16x128xf32>
    %33 = arith.mulf %28, %32 : vector<16x16x128xf32>
    %c0_27 = arith.constant 0 : index
    %c1 = arith.constant 1 : index
    %c0_28 = arith.constant 0 : index
    %34 = vector.load %arg11[%c0_27, %c1, %c0_28] : memref<18x24x128xf32, #tpu.memory_space<vmem>>, vector<16x16x128xf32>
    %35 = vector.extract_strided_slice %27 {offsets = [0, 1, 0], sizes = [1, 1, 128], strides = [1, 1, 1]} : vector<3x3x128xf32> to vector<1x1x128xf32>
    %36 = vector.shape_cast %35 : vector<1x1x128xf32> to vector<128xf32>
    %37 = vector.shape_cast %36 : vector<128xf32> to vector<1x1x128xf32>
    %38 = vector.broadcast %37 : vector<1x1x128xf32> to vector<16x16x128xf32>
    %39 = arith.mulf %34, %38 : vector<16x16x128xf32>
    %c0_29 = arith.constant 0 : index
    %c2 = arith.constant 2 : index
    %c0_30 = arith.constant 0 : index
    %40 = vector.load %arg11[%c0_29, %c2, %c0_30] : memref<18x24x128xf32, #tpu.memory_space<vmem>>, vector<16x16x128xf32>
    %41 = vector.extract_strided_slice %27 {offsets = [0, 2, 0], sizes = [1, 1, 128], strides = [1, 1, 1]} : vector<3x3x128xf32> to vector<1x1x128xf32>
    %42 = vector.shape_cast %41 : vector<1x1x128xf32> to vector<128xf32>
    %43 = vector.shape_cast %42 : vector<128xf32> to vector<1x1x128xf32>
    %44 = vector.broadcast %43 : vector<1x1x128xf32> to vector<16x16x128xf32>
    %45 = arith.mulf %40, %44 : vector<16x16x128xf32>
    %46 = arith.addf %33, %45 : vector<16x16x128xf32>
    %c1_31 = arith.constant 1 : index
    %c0_32 = arith.constant 0 : index
    %c0_33 = arith.constant 0 : index
    %47 = vector.load %arg11[%c1_31, %c0_32, %c0_33] : memref<18x24x128xf32, #tpu.memory_space<vmem>>, vector<16x16x128xf32>
    %48 = vector.extract_strided_slice %27 {offsets = [1, 0, 0], sizes = [1, 1, 128], strides = [1, 1, 1]} : vector<3x3x128xf32> to vector<1x1x128xf32>
    %49 = vector.shape_cast %48 : vector<1x1x128xf32> to vector<128xf32>
    %50 = vector.shape_cast %49 : vector<128xf32> to vector<1x1x128xf32>
    %51 = vector.broadcast %50 : vector<1x1x128xf32> to vector<16x16x128xf32>
    %52 = arith.mulf %47, %51 : vector<16x16x128xf32>
    %53 = arith.addf %39, %52 : vector<16x16x128xf32>
    %c1_34 = arith.constant 1 : index
    %c1_35 = arith.constant 1 : index
    %c0_36 = arith.constant 0 : index
    %54 = vector.load %arg11[%c1_34, %c1_35, %c0_36] : memref<18x24x128xf32, #tpu.memory_space<vmem>>, vector<16x16x128xf32>
    %55 = vector.extract_strided_slice %27 {offsets = [1, 1, 0], sizes = [1, 1, 128], strides = [1, 1, 1]} : vector<3x3x128xf32> to vector<1x1x128xf32>
    %56 = vector.shape_cast %55 : vector<1x1x128xf32> to vector<128xf32>
    %57 = vector.shape_cast %56 : vector<128xf32> to vector<1x1x128xf32>
    %58 = vector.broadcast %57 : vector<1x1x128xf32> to vector<16x16x128xf32>
    %59 = arith.mulf %54, %58 : vector<16x16x128xf32>
    %60 = arith.addf %46, %59 : vector<16x16x128xf32>
    %c1_37 = arith.constant 1 : index
    %c2_38 = arith.constant 2 : index
    %c0_39 = arith.constant 0 : index
    %61 = vector.load %arg11[%c1_37, %c2_38, %c0_39] : memref<18x24x128xf32, #tpu.memory_space<vmem>>, vector<16x16x128xf32>
    %62 = vector.extract_strided_slice %27 {offsets = [1, 2, 0], sizes = [1, 1, 128], strides = [1, 1, 1]} : vector<3x3x128xf32> to vector<1x1x128xf32>
    %63 = vector.shape_cast %62 : vector<1x1x128xf32> to vector<128xf32>
    %64 = vector.shape_cast %63 : vector<128xf32> to vector<1x1x128xf32>
    %65 = vector.broadcast %64 : vector<1x1x128xf32> to vector<16x16x128xf32>
    %66 = arith.mulf %61, %65 : vector<16x16x128xf32>
    %67 = arith.addf %53, %66 : vector<16x16x128xf32>
    %c2_40 = arith.constant 2 : index
    %c0_41 = arith.constant 0 : index
    %c0_42 = arith.constant 0 : index
    %68 = vector.load %arg11[%c2_40, %c0_41, %c0_42] : memref<18x24x128xf32, #tpu.memory_space<vmem>>, vector<16x16x128xf32>
    %69 = vector.extract_strided_slice %27 {offsets = [2, 0, 0], sizes = [1, 1, 128], strides = [1, 1, 1]} : vector<3x3x128xf32> to vector<1x1x128xf32>
    %70 = vector.shape_cast %69 : vector<1x1x128xf32> to vector<128xf32>
    %71 = vector.shape_cast %70 : vector<128xf32> to vector<1x1x128xf32>
    %72 = vector.broadcast %71 : vector<1x1x128xf32> to vector<16x16x128xf32>
    %73 = arith.mulf %68, %72 : vector<16x16x128xf32>
    %74 = arith.addf %60, %73 : vector<16x16x128xf32>
    %c2_43 = arith.constant 2 : index
    %c1_44 = arith.constant 1 : index
    %c0_45 = arith.constant 0 : index
    %75 = vector.load %arg11[%c2_43, %c1_44, %c0_45] : memref<18x24x128xf32, #tpu.memory_space<vmem>>, vector<16x16x128xf32>
    %76 = vector.extract_strided_slice %27 {offsets = [2, 1, 0], sizes = [1, 1, 128], strides = [1, 1, 1]} : vector<3x3x128xf32> to vector<1x1x128xf32>
    %77 = vector.shape_cast %76 : vector<1x1x128xf32> to vector<128xf32>
    %78 = vector.shape_cast %77 : vector<128xf32> to vector<1x1x128xf32>
    %79 = vector.broadcast %78 : vector<1x1x128xf32> to vector<16x16x128xf32>
    %80 = arith.mulf %75, %79 : vector<16x16x128xf32>
    %81 = arith.addf %67, %80 : vector<16x16x128xf32>
    %c2_46 = arith.constant 2 : index
    %c2_47 = arith.constant 2 : index
    %c0_48 = arith.constant 0 : index
    %82 = vector.load %arg11[%c2_46, %c2_47, %c0_48] : memref<18x24x128xf32, #tpu.memory_space<vmem>>, vector<16x16x128xf32>
    %83 = vector.extract_strided_slice %27 {offsets = [2, 2, 0], sizes = [1, 1, 128], strides = [1, 1, 1]} : vector<3x3x128xf32> to vector<1x1x128xf32>
    %84 = vector.shape_cast %83 : vector<1x1x128xf32> to vector<128xf32>
    %85 = vector.shape_cast %84 : vector<128xf32> to vector<1x1x128xf32>
    %86 = vector.broadcast %85 : vector<1x1x128xf32> to vector<16x16x128xf32>
    %87 = arith.mulf %82, %86 : vector<16x16x128xf32>
    %88 = arith.addf %74, %87 : vector<16x16x128xf32>
    %89 = arith.addf %88, %81 : vector<16x16x128xf32>
    %c0_49 = arith.constant 0 : index
    %c0_50 = arith.constant 0 : index
    %c0_51 = arith.constant 0 : index
    %90 = vector.load %arg6[%c0_49, %c0_50, %c0_51] : memref<1x1x128xf32, #tpu.memory_space<vmem>>, vector<1x1x128xf32>
    %91 = vector.broadcast %90 : vector<1x1x128xf32> to vector<16x16x128xf32>
    %92 = arith.addf %89, %91 : vector<16x16x128xf32>
    %cst_52 = arith.constant 0.000000e+00 : f32
    %cst_53 = arith.constant 6.000000e+00 : f32
    %93 = vector.broadcast %cst_52 : f32 to vector<16x16x128xf32>
    %94 = arith.maximumf %93, %92 : vector<16x16x128xf32>
    %95 = vector.broadcast %cst_53 : f32 to vector<16x16x128xf32>
    %96 = arith.minimumf %95, %94 : vector<16x16x128xf32>
    %97 = vector.shape_cast %96 : vector<16x16x128xf32> to vector<256x128xf32>
    %98 = arith.truncf %97 : vector<256x128xf32> to vector<256x128xbf16>
    %c0_54 = arith.constant 0 : index
    %c0_55 = arith.constant 0 : index
    %99 = vector.load %arg7[%c0_54, %c0_55] : memref<128x128xbf16, #tpu.memory_space<vmem>>, vector<128x128xbf16>
    %cst_56 = arith.constant dense<0.000000e+00> : vector<256x128xf32>
    %100 = tpu.matmul %98, %99, %cst_56 {dimension_numbers = #tpu.dot_dimension_numbers<[1], [0], [0], [1], [0, 0, 1, 1], [], []>} : vector<256x128xbf16>, vector<128x128xbf16>, vector<256x128xf32> -> vector<256x128xf32>
    %c0_57 = arith.constant 0 : index
    %c0_58 = arith.constant 0 : index
    %101 = vector.load %arg8[%c0_57, %c0_58] : memref<1x128xf32, #tpu.memory_space<vmem>>, vector<1x128xf32>
    %102 = vector.broadcast %101 : vector<1x128xf32> to vector<256x128xf32>
    %103 = arith.addf %100, %102 : vector<256x128xf32>
    %104 = vector.shape_cast %103 : vector<256x128xf32> to vector<16x16x128xf32>
    %c0_59 = arith.constant 0 : index
    %c0_60 = arith.constant 0 : index
    %c0_61 = arith.constant 0 : index
    %c0_62 = arith.constant 0 : index
    %105 = vector.load %arg9[%c0_59, %c0_60, %c0_61, %c0_62] : memref<1x16x16x128xf32, #tpu.memory_space<vmem>>, vector<1x16x16x128xf32>
    %106 = vector.shape_cast %105 : vector<1x16x16x128xf32> to vector<16x16x128xf32>
    %107 = arith.addf %104, %106 : vector<16x16x128xf32>
    %c0_63 = arith.constant 0 : index
    %c0_64 = arith.constant 0 : index
    %c0_65 = arith.constant 0 : index
    %c0_66 = arith.constant 0 : index
    %108 = vector.load %arg10[%c0_63, %c0_64, %c0_65, %c0_66] : memref<1x16x16x128xf32, #tpu.memory_space<vmem>>, vector<1x16x16x128xf32>
    %109 = vector.shape_cast %108 : vector<1x16x16x128xf32> to vector<16x16x128xf32>
    %110 = vector.shape_cast %107 : vector<16x16x128xf32> to vector<1x16x16x128xf32>
    tpu.vector_store %arg10[%c0_63, %c0_64, %c0_65, %c0_66], %110 {strides = array<i32>} : memref<1x16x16x128xf32, #tpu.memory_space<vmem>>, vector<1x16x16x128xf32>,
    return
  }
  func.func @transform_0(%arg0: i32, %arg1: i32) -> (i32, i32, i32, i32) {
    %c0_i32 = arith.constant 0 : i32
    %c0_i32_0 = arith.constant 0 : i32
    %c0_i32_1 = arith.constant 0 : i32
    %c0_i32_2 = arith.constant 0 : i32
    return %arg0, %c0_i32, %c0_i32_0, %c0_i32_1 : i32, i32, i32, i32
  }
  func.func @transform_1(%arg0: i32, %arg1: i32) -> (i32, i32) {
    %c0_i32 = arith.constant 0 : i32
    %c0_i32_0 = arith.constant 0 : i32
    %c0_i32_1 = arith.constant 0 : i32
    return %c0_i32, %c0_i32_0 : i32, i32
  }
  func.func @transform_2(%arg0: i32, %arg1: i32) -> (i32, i32) {
    %c0_i32 = arith.constant 0 : i32
    %c0_i32_0 = arith.constant 0 : i32
    %c0_i32_1 = arith.constant 0 : i32
    return %c0_i32, %c0_i32_0 : i32, i32
  }
  func.func @transform_3(%arg0: i32, %arg1: i32) -> (i32, i32, i32) {
    %c0_i32 = arith.constant 0 : i32
    %c0_i32_0 = arith.constant 0 : i32
    %c0_i32_1 = arith.constant 0 : i32
    %c0_i32_2 = arith.constant 0 : i32
    return %c0_i32, %c0_i32_0, %c0_i32_1 : i32, i32, i32
  }
  func.func @transform_4(%arg0: i32, %arg1: i32) -> (i32, i32, i32) {
    %c0_i32 = arith.constant 0 : i32
    %c0_i32_0 = arith.constant 0 : i32
    %c0_i32_1 = arith.constant 0 : i32
    %c0_i32_2 = arith.constant 0 : i32
    return %c0_i32, %c0_i32_0, %c0_i32_1 : i32, i32, i32
  }
  func.func @transform_5(%arg0: i32, %arg1: i32) -> (i32, i32) {
    %c0_i32 = arith.constant 0 : i32
    %c0_i32_0 = arith.constant 0 : i32
    %c0_i32_1 = arith.constant 0 : i32
    return %c0_i32, %c0_i32_0 : i32, i32
  }
  func.func @transform_6(%arg0: i32, %arg1: i32) -> (i32, i32) {
    %c0_i32 = arith.constant 0 : i32
    %c0_i32_0 = arith.constant 0 : i32
    %c0_i32_1 = arith.constant 0 : i32
    return %c0_i32, %c0_i32_0 : i32, i32
  }
  func.func @transform_7(%arg0: i32, %arg1: i32) -> (i32, i32, i32, i32) {
    %c0_i32 = arith.constant 0 : i32
    %c0_i32_0 = arith.constant 0 : i32
    %c0_i32_1 = arith.constant 0 : i32
    return %arg0, %arg1, %c0_i32, %c0_i32_0 : i32, i32, i32, i32
  }
  func.func @transform_8(%arg0: i32, %arg1: i32) -> (i32, i32, i32, i32) {
    %c0_i32 = arith.constant 0 : i32
    %c0_i32_0 = arith.constant 0 : i32
    %c0_i32_1 = arith.constant 0 : i32
    return %arg0, %arg1, %c0_i32, %c0_i32_0 : i32, i32, i32, i32
  }
}

</mosaic_0001>

<bundles_post_ra>
// kernel: inverted_block.1
= control target key start
LH: loop header
LB: loop body
LE: loop exit
PB: predicated region body
PF: predicated region fallthrough
CT: control target
= control target key end

     0   :  { %s5072_s0 = inlined_call_operand.hbm [shape: bf16[2,18,24,4], index: 0, kind: input, shape index: {}]   ;;  %s5073_s1 = inlined_call_operand.hbm [shape: bf16[4,128], index: 1, kind: input, shape index: {}]   ;;  %s5074_s2 = inlined_call_operand.hbm [shape: f32[1,128], index: 2, kind: input, shape index: {}]   ;;  %s5075_s3 = inlined_call_operand.hbm [shape: f32[3,3,128], index: 3, kind: input, shape index: {}]   ;;  %s5076_s4 = inlined_call_operand.hbm [shape: f32[1,1,128], index: 4, kind: input, shape index: {}]   ;;  %s5077_s5 = inlined_call_operand.hbm [shape: bf16[128,128], index: 5, kind: input, shape index: {}]   ;;  %s5078_s6 = inlined_call_operand.hbm [shape: f32[1,128], index: 6, kind: input, shape index: {}]   ;;  %s5079_s7 = inlined_call_operand.hbm [shape: f32[2,16,16,128], index: 7, kind: input, shape index: {}]   ;;  %s5080_s8 = inlined_call_operand.hbm [shape: f32[2,16,16,128], index: 8, kind: output, shape index: {}]  }
   0x1   :  { %5091 = sst [smem:[#allocation36_spill]] %s5072_s0 }
   0x2   :  { %5092 = sst [smem:[#allocation37_spill]] %s5073_s1 }
   0x3   :  { %5093 = sst [smem:[#allocation38_spill]] %s5074_s2 }
   0x4   :  { %5094 = sst [smem:[#allocation39_spill]] %s5075_s3 }
   0x5   :  { %5095 = sst [smem:[#allocation40_spill]] %s5076_s4 }
   0x6   :  { %5096 = sst [smem:[#allocation41_spill]] %s5077_s5 }
   0x7   :  { %5097 = sst [smem:[#allocation42_spill]] %s5080_s8 }
   0x8   :  { %13 = vsyncpa [#allocation4], 0 }
   0x9   :  { %15 = vsyncpa [#allocation4 + $0x1], 0 }
   0xa   :  { %16 = vsyncpa [#allocation7], 0 }
   0xb   :  { %17 = vsyncpa [#allocation10], 0 }
   0xc   :  { %18 = vsyncpa [#allocation13], 0 }
   0xd   :  { %19 = vsyncpa [#allocation16], 0 }
   0xe   :  { %21 = vsyncpa [#allocation16 + $0x1], 0 }
   0xf   :  { %22 = vsyncpa [#allocation5], 0 }
  0x10   :  { %24 = vsyncpa [#allocation5 + $0x1], 0  ;;  %s3599_s27 = smov 0   ;;  %s3601_s28 = smov 0  }
  0x11   :  { %s3603_s29 = smov 0   ;;  %s3605_s30 = smov 0  }
  0x12   :  { %s3607_s9 = smov 0   ;;  %s3609_s10 = smov 0  }
  0x13 LB: > { %s5084_s11 = sadd.s32 4294967295, %s3535_s10   ;;  %p2718_p0 = scmp.ge.s32.totalorder %s3535_s10, 1  ;;  %s3535_s10 = sphi %s3609_s10, %s30_s10   ;;  %s3531_s9 = sphi %s3607_s9, %s5152_s9   ;;  %s3527_s30 = sphi %s3605_s30, %s5151_s30   ;;  %s3523_s29 = sphi %s3603_s29, %s5150_s29   ;;  %s3519_s28 = sphi %s3601_s28, %s5149_s28   ;;  %s3515_s27 = sphi %s3599_s27, %s5148_s27  }
  0x14   : > { %p3633_p1 = scmp.eq.s32.totalorder %s5084_s11, 0  ;;  %p255_p2 = scmp.lt.s32.totalorder %s3535_s10, 3 }
  0x15   : > { %s3537_s14 = smov [#allocation6]   ;;  %s3538_s16 = smov [#allocation9]  }
  0x16   : > { %s5098_s12 = scalar_select %p3633_p1, 1, 0 }
  0x17   : > { %p3638_p3 = pnand %p2718_p0, %p255_p2  ;;  %s268_s15 = sshll.u32 %s3537_s14, 4  ;;  %s269_s15 = int_to_ptr.vmem [resolvable:$true] %s268_s15 }
  0x18   : > { %s289_s17 = sshll.u32 %s3538_s16, 4  ;;  %s3539_s19 = smov [#allocation12]   ;;  %s3651_s17 = int_to_ptr.vmem [resolvable:$true] %s289_s17 }
  0x19   : > { %s5099_s13 = scalar_select %p3638_p3, 1, 0 }
  0x1a   : > { %p3056_p5 = pneg %p3638_p3  ;;  %s3653_s20 = sshll.u32 %s3539_s19, 4  ;;  %s314_s20 = int_to_ptr.vmem [resolvable:$true] %s3653_s20 }
  0x1b   : > { %s5101_s1 = sld [smem:[#allocation37_spill]] }
  0x1c   : > { %p3647_p6 = pnand %p3056_p5, %p3633_p1 }
  0x1e   : > { %p3663_p8 = pneg %p3647_p6 }
  0x21   : > { %s3209_s23 = scalar_lea.hbm %s5101_s1, 32 }
  0x22   : > { %p3210_p7 = scmp.ne.s32.totalorder %s5101_s1, %s3209_s23  ;;  %p3216_p11 = scmp.lt.u32.totalorder %s3209_s23, %s5101_s1 }
  0x24   : > { %p3212_p9 = pnand %p3663_p8, %p3210_p7 }
  0x26   : > { %p3213_p10 = pneg %p3212_p9 }
  0x28   : > { %p3218_p12 = pnand %p3216_p11, %p3213_p10 }
  0x2a   : > { %3221 = shalt.err (!%p3218_p12)
}
  0x2b   : > { %s3222_s19 = scalar_lea.vmem %s269_s15, 32  ;;  %p3230_p5 = scmp.lt.s32.totalorder %s269_s15, %s269_s15 }
  0x2c   : > { %p3223_p13 = scmp.ne.s32.totalorder %s269_s15, %s3222_s19  ;;  %p3231_p4 = scmp.lt.s32.totalorder %s3222_s19, %s3222_s19 }
  0x2e   : > { %p3225_p0 = pnand %p3223_p13, %p3663_p8  ;;  %p3232_p3 = por %p3231_p4, %p3230_p5 }
  0x30   : > { %p3226_p2 = pneg %p3225_p0 }
  0x32   : > { %p3233_p1 = pnand %p3232_p3, %p3226_p2 }
  0x34   : > { %3236 = shalt.err (!%p3233_p1)
}
  0x35   : > { %3059 = dma.hbm_to_vmem [thread:$0]  (!%p3647_p6), %s5101_s1, 32, %s269_s15, [#allocation7]  }
  0x36   : > { %s5103_s3 = sld [smem:[#allocation39_spill]] }
  0x3c   : > { %s3237_s25 = scalar_lea.hbm %s5103_s3, 192 }
  0x3d   : > { %p3238_p7 = scmp.ne.s32.totalorder %s5103_s3, %s3237_s25  ;;  %p3244_p1 = scmp.lt.u32.totalorder %s3237_s25, %s5103_s3 }
  0x3f   : > { %p3240_p9 = pnand %p3238_p7, %p3663_p8 }
  0x41   : > { %p3241_p4 = pneg %p3240_p9 }
  0x43   : > { %p3246_p3 = pnand %p3244_p1, %p3241_p4 }
  0x45   : > { %3249 = shalt.err (!%p3246_p3)
}
  0x46   : > { %s3250_s15 = scalar_lea.vmem %s3651_s17, 192  ;;  %p3258_p13 = scmp.lt.s32.totalorder %s3651_s17, %s3651_s17 }
  0x47   : > { %p3251_p10 = scmp.ne.s32.totalorder %s3651_s17, %s3250_s15  ;;  %p3259_p0 = scmp.lt.s32.totalorder %s3250_s15, %s3250_s15 }
  0x49   : > { %p3253_p11 = pnand %p3251_p10, %p3663_p8  ;;  %p3260_p2 = por %p3259_p0, %p3258_p13 }
  0x4b   : > { %p3254_p12 = pneg %p3253_p11 }
  0x4d   : > { %p3261_p5 = pnand %p3260_p2, %p3254_p12 }
  0x4f   : > { %3264 = shalt.err (!%p3261_p5)
}
  0x50   : > { %s5086_s21 = smov 64   ;;  %s5087_s11 = smov 4  }
  0x51   : > { %3065 = dma.hbm_to_vmem [thread:$0]  (!%p3647_p6), %s5103_s3, 192, %s3651_s17, [#allocation10], %s5086_s21, %s5086_s21, %s5087_s11  }
  0x52   : > { %s5104_s5 = sld [smem:[#allocation41_spill]] }
  0x58   : > { %s3265_s14 = scalar_lea.hbm %s5104_s5, 1024 }
  0x59   : > { %p3266_p7 = scmp.ne.s32.totalorder %s5104_s5, %s3265_s14  ;;  %p3272_p1 = scmp.lt.u32.totalorder %s3265_s14, %s5104_s5 }
  0x5b   : > { %p3268_p9 = pnand %p3266_p7, %p3663_p8 }
  0x5d   : > { %p3269_p4 = pneg %p3268_p9 }
  0x5f   : > { %p3274_p3 = pnand %p3272_p1, %p3269_p4 }
  0x61   : > { %3277 = shalt.err (!%p3274_p3)
}
  0x62   : > { %s3278_s22 = scalar_lea.vmem %s314_s20, 1024  ;;  %p3286_p13 = scmp.lt.s32.totalorder %s314_s20, %s314_s20 }
  0x63   : > { %p3279_p10 = scmp.ne.s32.totalorder %s314_s20, %s3278_s22  ;;  %p3287_p0 = scmp.lt.s32.totalorder %s3278_s22, %s3278_s22 }
  0x65   : > { %p3281_p11 = pnand %p3279_p10, %p3663_p8  ;;  %p3288_p2 = por %p3287_p0, %p3286_p13 }
  0x67   : > { %p3282_p12 = pneg %p3281_p11 }
  0x69   : > { %p3289_p5 = pnand %p3288_p2, %p3282_p12 }
  0x6b   : > { %3292 = shalt.err (!%p3289_p5)
}
  0x6c   : > { %3071 = dma.hbm_to_vmem [thread:$0]  (!%p3647_p6), %s5104_s5, 1024, %s314_s20, [#allocation13], %s5086_s21, %s5086_s21, %s5087_s11  }
  0x6d   : > { %s3542_s23 = smov [#allocation8]   ;;  %s3543_s25 = smov [#allocation11]  }
  0x6e   : > { %s279_s24 = sshll.u32 %s3542_s23, 4  ;;  %s303_s14 = sshll.u32 %s3543_s25, 4  ;;  %s280_s24 = int_to_ptr.vmem [resolvable:$true] %s279_s24  ;;  %s304_s14 = int_to_ptr.vmem [resolvable:$true] %s303_s14 }
  0x6f   : > { %s5105_s2 = sld [smem:[#allocation38_spill]] }
  0x75   : > { %s3293_s15 = scalar_lea.hbm %s5105_s2, 16 }
  0x76   : > { %p3294_p7 = scmp.ne.s32.totalorder %s5105_s2, %s3293_s15  ;;  %p3300_p1 = scmp.lt.u32.totalorder %s3293_s15, %s5105_s2 }
  0x78   : > { %p3296_p9 = pnand %p3294_p7, %p3663_p8 }
  0x7a   : > { %p3297_p4 = pneg %p3296_p9 }
  0x7c   : > { %p3302_p3 = pnand %p3300_p1, %p3297_p4 }
  0x7e   : > { %3305 = shalt.err (!%p3302_p3)
}
  0x7f   : > { %s3306_s20 = scalar_lea.vmem %s280_s24, 16  ;;  %s3313_s17 = scalar_lea.vmem %s280_s24, 32 }
  0x80   : > { %p3307_p10 = scmp.ne.s32.totalorder %s280_s24, %s3306_s20  ;;  %p3314_p13 = scmp.lt.s32.totalorder %s280_s24, %s280_s24 }
  0x81   : > { %p3315_p0 = scmp.lt.s32.totalorder %s3313_s17, %s3306_s20 }
  0x82   : > { %p3309_p11 = pnand %p3307_p10, %p3663_p8 }
  0x83   : > { %p3316_p2 = por %p3315_p0, %p3314_p13 }
  0x84   : > { %p3310_p12 = pneg %p3309_p11 }
  0x86   : > { %p3317_p5 = pnand %p3316_p2, %p3310_p12 }
  0x88   : > { %3320 = shalt.err (!%p3317_p5)
}
  0x89   : > { %3062 = dma.hbm_to_vmem [thread:$0]  (!%p3647_p6), %s5105_s2, 16, %s280_s24, [#allocation7]  }
  0x8a   : > { %s5106_s4 = sld [smem:[#allocation40_spill]] }
  0x90   : > { %s3321_s16 = scalar_lea.hbm %s5106_s4, 16 }
  0x91   : > { %p3322_p7 = scmp.ne.s32.totalorder %s5106_s4, %s3321_s16  ;;  %p3328_p1 = scmp.lt.u32.totalorder %s3321_s16, %s5106_s4 }
  0x93   : > { %p3324_p9 = pnand %p3322_p7, %p3663_p8 }
  0x95   : > { %p3325_p4 = pneg %p3324_p9 }
  0x97   : > { %p3330_p3 = pnand %p3328_p1, %p3325_p4 }
  0x99   : > { %3333 = shalt.err (!%p3330_p3)
}
  0x9a   : > { %s3334_s20 = scalar_lea.vmem %s304_s14, 16  ;;  %s3341_s24 = scalar_lea.vmem %s304_s14, 32 }
  0x9b   : > { %p3335_p10 = scmp.ne.s32.totalorder %s304_s14, %s3334_s20  ;;  %p3342_p13 = scmp.lt.s32.totalorder %s304_s14, %s304_s14 }
  0x9c   : > { %p3343_p0 = scmp.lt.s32.totalorder %s3341_s24, %s3334_s20 }
  0x9d   : > { %p3337_p11 = pnand %p3335_p10, %p3663_p8 }
  0x9e   : > { %p3344_p2 = por %p3343_p0, %p3342_p13 }
  0x9f   : > { %p3338_p12 = pneg %p3337_p11 }
  0xa1   : > { %p3345_p5 = pnand %p3344_p2, %p3338_p12 }
  0xa3   : > { %3348 = shalt.err (!%p3345_p5)
}
  0xa4   : > { %3068 = dma.hbm_to_vmem [thread:$0]  (!%p3647_p6), %s5106_s4, 16, %s304_s14, [#allocation10]  }
  0xa5   : > { %s3544_s23 = smov [#allocation14]   ;;  %s3349_s19 = scalar_lea.hbm %s5078_s6, 16 }
  0xa6   : > { %s327_s8 = sshll.u32 %s3544_s23, 4  ;;  %p3350_p7 = scmp.ne.s32.totalorder %s5078_s6, %s3349_s19  ;;  %s328_s8 = int_to_ptr.vmem [resolvable:$true] %s327_s8 }
  0xa7   : > { %p3356_p1 = scmp.lt.u32.totalorder %s3349_s19, %s5078_s6 }
  0xa8   : > { %p3352_p9 = pnand %p3350_p7, %p3663_p8 }
  0xaa   : > { %p3353_p4 = pneg %p3352_p9 }
  0xac   : > { %p3358_p3 = pnand %p3356_p1, %p3353_p4 }
  0xae   : > { %3361 = shalt.err (!%p3358_p3)
}
  0xaf   : > { %s3362_s14 = scalar_lea.vmem %s328_s8, 16  ;;  %s3369_s24 = scalar_lea.vmem %s328_s8, 32 }
  0xb0   : > { %p3363_p10 = scmp.ne.s32.totalorder %s328_s8, %s3362_s14  ;;  %p3370_p13 = scmp.lt.s32.totalorder %s328_s8, %s328_s8 }
  0xb1   : > { %p3371_p0 = scmp.lt.s32.totalorder %s3369_s24, %s3362_s14 }
  0xb2   : > { %p3365_p11 = pnand %p3363_p10, %p3663_p8 }
  0xb3   : > { %p3372_p2 = por %p3371_p0, %p3370_p13 }
  0xb4   : > { %p3366_p12 = pneg %p3365_p11 }
  0xb6   : > { %p3373_p5 = pnand %p3372_p2, %p3366_p12 }
  0xb8   : > { %3376 = shalt.err (!%p3373_p5)
}
  0xb9   : > { %3074 = dma.hbm_to_vmem [thread:$0]  (!%p3647_p6), %s5078_s6, 16, %s328_s8, [#allocation13]  }
  0xba   : > { %s2717_s26 = sadd.s32 4294967294, %s3535_s10   ;;  %s42_s23 = sadd.s32 1, %s3531_s9 }
  0xbb   : > { %p44_p8 = scmp.ge.s32.totalorder %s42_s23, 2  ;;  %s49_s18 = sadd.s32 1, %s3523_s29 }
  0xbc   : > { %p56_p7 = scmp.ne.s32.totalorder %s3523_s29, %s3519_s28  ;;  %p57_p9 = scmp.eq.s32.totalorder %s3535_s10, 0 }
  0xbd   : > { %s5154_s23 = smov (%p44_p8, %s42_s23), 0  ;;  %p62_p1 = scmp.ne.s32.totalorder %s3519_s28, %s3515_s27 }
  0xbe   : > { %p3789_p4 = por %p57_p9, %p56_p7  ;;  %s46_s8 = ssub.s32 %s3531_s9, %s5154_s23 }
  0xbf   : > { %s5108_s16 = sadd.s32 4294967295, %s3535_s10   ;;  %p47_p3 = scmp.eq.s32.totalorder %s46_s8, 0 }
  0xc0   : > { %p242_p6 = scmp.eq.s32.totalorder %s5108_s16, 1  ;;  %p5109_p10 = scmp.ne.s32.totalorder %s5098_s12, 0 }
  0xc1   : > { %p248_p13 = scmp.eq.s32.totalorder %s2717_s26, 1  ;;  %p3092_p2 = scmp.lt.s32.totalorder %s3535_s10, 2 }
  0xc2   : > { %p3801_p11 = por %p5109_p10, %p62_p1  ;;  %p3805_p12 = por %p242_p6, %p56_p7 }
  0xc3   : > { %s3810_s22 = scalar_select %p47_p3, %s3523_s29, %s49_s18  }
  0xc4   : > { %s5111_s15 = scalar_select %p3805_p12, 1, 0 }
  0xc5   : > { %p3812_p0 = por %p248_p13, %p62_p1  ;;  %s3818_s20 = sand.u32 1, %s3523_s29  }
  0xc6   : > { %s3024_s14 = smul.u32 3456, %s3531_s9  ;;  %s5113_s0 = sld [smem:[#allocation36_spill]] }
  0xc7   : > { %s5112_s1 = scalar_select %p3812_p0, 1, 0 }
  0xc8   : > { %s3023_s24 = smul.u32 216, %s3818_s20  ;;  %p3829_p5 = pnand %p3092_p2, %p3789_p4 }
  0xc9   : > { %s2727_s21 = sshll.u32 %s3818_s20, 8  ;;  %s339_s11 = scalar_lea.sflag [#allocation4], %s3818_s20 }
  0xca   : > { %s342_s18 = scalar_lea.vmem [#allocation3], %s3023_s24  ;;  %p3379_p7 = pneg %p3829_p5 }
  0xcb   : > { %s349_s16 = sshll.u32 %s342_s18, 4  ;;  %s3833_s16 = int_to_ptr.vmem [resolvable:$true] %s349_s16 }
  0xcc   : > { %s3825_s8 = scalar_lea.hbm %s5113_s0, %s3024_s14  ;;  %s3382_s3 = scalar_lea.hbm %s5113_s0, 6912 }
  0xcd   : > { %s3377_s17 = scalar_lea.hbm %s3825_s8, 3456  ;;  %p3383_p4 = scmp.lt.u32.totalorder %s3825_s8, %s5113_s0 }
  0xce   : > { %p3378_p8 = scmp.ne.s32.totalorder %s3825_s8, %s3377_s17  ;;  %p3384_p6 = scmp.lt.u32.totalorder %s3382_s3, %s3377_s17 }
  0xcf   : > { %p3386_p10 = scmp.lt.u32.totalorder %s3377_s17, %s3825_s8 }
  0xd0   : > { %p3380_p9 = pnand %p3379_p7, %p3378_p8  ;;  %p3385_p3 = por %p3384_p6, %p3383_p4 }
  0xd2   : > { %p3381_p1 = pneg %p3380_p9  ;;  %p3387_p13 = por %p3386_p10, %p3385_p3 }
  0xd4   : > { %p3388_p2 = pnand %p3387_p13, %p3381_p1 }
  0xd6   : > { %3391 = shalt.err (!%p3388_p2)
}
  0xd7   : > { %s3392_s24 = scalar_lea.vmem %s3833_s16, 3456  ;;  %s3545_s18 = smov [#allocation3]  }
  0xd8   : > { %p3393_p8 = scmp.ne.s32.totalorder %s3833_s16, %s3392_s24  ;;  %s3397_s25 = sshll.u32 %s3545_s18, 4  ;;  %s3398_s25 = int_to_ptr.vmem [resolvable:$false] %s3397_s25 }
  0xd9   : > { %s3399_s2 = scalar_lea.vmem %s3398_s25, 6912  ;;  %p3400_p12 = scmp.lt.s32.totalorder %s3833_s16, %s3398_s25 }
  0xda   : > { %p3395_p9 = pnand %p3393_p8, %p3379_p7  ;;  %p3401_p4 = scmp.lt.s32.totalorder %s3399_s2, %s3392_s24 }
  0xdc   : > { %p3396_p0 = pneg %p3395_p9  ;;  %p3402_p6 = por %p3401_p4, %p3400_p12 }
  0xde   : > { %p3403_p3 = pnand %p3402_p6, %p3396_p0 }
  0xe0   : > { %3406 = shalt.err (!%p3403_p3)
}
  0xe1   : > { %s5115_s4 = smov 4   ;;  %s5116_s17 = smov 64  }
  0xe2   : > { %3078 = dma.hbm_to_vmem [thread:$0]  (!%p3829_p5), %s3825_s8, 3456, %s3833_s16, %s339_s11, %s5116_s17, %s5116_s17, %s5115_s4  }
  0xe3   : > { %s2809_s14 = sshll.u32 %s3531_s9, 12  ;;  %s363_s25 = scalar_lea.vmem [#allocation15], %s2727_s21 }
  0xe4   : > { %s3871_s18 = scalar_lea.hbm %s5079_s7, %s2809_s14  ;;  %s373_s2 = sshll.u32 %s363_s25, 4  ;;  %s3875_s2 = int_to_ptr.vmem [resolvable:$true] %s373_s2 }
  0xe5   : > { %s360_s0 = scalar_lea.sflag [#allocation16], %s3818_s20  ;;  %s3407_s5 = scalar_lea.hbm %s3871_s18, 4096 }
  0xe6   : > { %p3408_p12 = scmp.ne.s32.totalorder %s3871_s18, %s3407_s5  ;;  %s3412_s16 = scalar_lea.hbm %s5079_s7, 8192 }
  0xe7   : > { %p3413_p10 = scmp.lt.u32.totalorder %s3871_s18, %s5079_s7  ;;  %p3414_p13 = scmp.lt.u32.totalorder %s3412_s16, %s3407_s5 }
  0xe8   : > { %p3410_p0 = pnand %p3408_p12, %p3379_p7  ;;  %p3416_p8 = scmp.lt.u32.totalorder %s3407_s5, %s3871_s18 }
  0xe9   : > { %p3415_p2 = por %p3414_p13, %p3413_p10 }
  0xea   : > { %p3411_p1 = pneg %p3410_p0 }
  0xeb   : > { %p3417_p9 = por %p3416_p8, %p3415_p2 }
  0xed   : > { %p3418_p4 = pnand %p3417_p9, %p3411_p1 }
  0xef   : > { %3421 = shalt.err (!%p3418_p4)
}
  0xf0   : > { %s3422_s21 = scalar_lea.vmem %s3875_s2, 4096  ;;  %s3546_s14 = smov [#allocation15]  }
  0xf1   : > { %p3423_p6 = scmp.ne.s32.totalorder %s3875_s2, %s3422_s21  ;;  %s3427_s3 = sshll.u32 %s3546_s14, 4  ;;  %s3428_s3 = int_to_ptr.vmem [resolvable:$false] %s3427_s3 }
  0xf2   : > { %s3429_s24 = scalar_lea.vmem %s3428_s3, 8192  ;;  %p3430_p0 = scmp.lt.s32.totalorder %s3875_s2, %s3428_s3 }
  0xf3   : > { %p3425_p3 = pnand %p3423_p6, %p3379_p7  ;;  %p3431_p10 = scmp.lt.s32.totalorder %s3429_s24, %s3422_s21 }
  0xf5   : > { %p3426_p12 = pneg %p3425_p3  ;;  %p3432_p13 = por %p3431_p10, %p3430_p0 }
  0xf7   : > { %p3433_p2 = pnand %p3432_p13, %p3426_p12 }
  0xf9   : > { %3436 = shalt.err (!%p3433_p2)
}
  0xfa   : > { %s3547_s5 = smov 128   ;;  %s3548_s25 = smov 8  }
  0xfb   : > { %3081 = dma.hbm_to_vmem [thread:$0]  (!%p3829_p5), %s3871_s18, 4096, %s3875_s2, %s360_s0, %s3547_s5, %s3547_s5, %s3548_s25  }
  0xfc   : > { %p5117_p7 = scmp.ne.s32.totalorder %s5099_s13, 0 }
  0xfe   : > { %385 = sbr.rel (%p5117_p7) target bundleno = 956 (0x3bc), region = 52 }
 0x105   : > { %s3906_s11 = sand.u32 1, %s3519_s28  }
 0x106   : > { %s3025_s8 = smul.u32 216, %s3906_s11  ;;  %s388_s16 = scalar_lea.sflag [#allocation4], %s3906_s11 }
 0x108   : > { %s3910_s4 = scalar_lea.vmem [#allocation3], %s3025_s8 }
 0x109   : > { %3490 = dma.done.wait (%p3801_p11), %s388_s16, 3456  }
 0x10a   : > { %3492 = vsyncadd (%p3801_p11), %s388_s16, 4294963840  ;;  %p5118_p5 = scmp.ne.s32.totalorder %s5098_s12, 0 }
 0x10c   : > { %3494 = dma.done.wait (%p5118_p5), [#allocation7], 48  }
 0x10d   : > { %3496 = vsyncadd (%p5118_p5), [#allocation7], 4294967248 }
 0x10e   : > { %3498 = dma.done.wait (%p5118_p5), [#allocation10], 208  }
 0x10f   : > { %3500 = vsyncadd (%p5118_p5), [#allocation10], 4294967088 }
 0x110   : > { %3502 = dma.done.wait (%p5118_p5), [#allocation13], 1040  }
 0x111   : > { %3504 = vsyncadd (%p5118_p5), [#allocation13], 4294966256  ;;  %s2737_s0 = sshll.u32 %s3906_s11, 8  ;;  %s421_s13 = scalar_lea.sflag [#allocation16], %s3906_s11 }
 0x112   : > { %s3932_s20 = scalar_lea.vmem [#allocation15], %s2737_s0 }
 0x113   : > { %3506 = dma.done.wait (%p3801_p11), %s421_s13, 4096  }
 0x114   : > { %3508 = vsyncadd (%p3801_p11), %s421_s13, 4294963200  ;;  %v5089_v0 = vmov 0.0   ;;  %vm3550_vm0 = vmmov 0   ;;  %vm748_vm1 = vcmask 1041408   ;;  %v523_v1 = vld [vmem:[#allocation6] sm:$0x3]  ;;  %v1245_v45 = vlaneseq }
 0x115   : > { %2863 = vmatprep.subr.bf16.mxu0 %v5089_v0  ;;  %2865 = vmatprep.mubr.msk.bf16.mxu0 %vm3550_vm0, %v5089_v0  ;;  %1204 = vst [vmem:[#allocation2 + $0x8] sm:$0xff] %v5089_v0  ;;  %1208 = vst [vmem:[#allocation2 + $0x1a0] sm:$0xff] %v5089_v0  ;;  %v750_v2 = vsel %vm748_vm1, %v523_v1, 0  ;;  %v3162_v3 = vld [vmem:[%s3910_s4] sm:$0xff]   ;;  %vm666_vm2 = vcmask 31744   ;;  %v3163_v4 = vld [vmem:[%s3910_s4 + $0x8] sm:$0xff]  }
 0x116   : > { %3021 = vmatprep.subr.bf16.mxu1 %v5089_v0  ;;  %2937 = vmatprep.mubr.msk.bf16.mxu1 %vm3550_vm0, %v5089_v0  ;;  %v3170_v5 = vld [vmem:[%s3910_s4 + $0x90] sm:$0xff]   ;;  %v3172_v6 = vld [vmem:[%s3910_s4 + $0x98] sm:$0xff]   ;;  %v3174_v8 = vld [vmem:[%s3910_s4 + $0xa0] sm:$0xff]   ;;  %v1246_v51 = vshrl.u32 %v1245_v45, 7  ;;  %s4926_s12 = scalar_lea.vmem [#allocation17], %s2737_s0  ;;  %s2810_s19 = sshll.u32 %s3527_s30, 12 }
 0x117   : > { %2864 = vmatpush3.bf16.msra.mxu0 %v750_v2  ;;  %3022 = vmatpush3.bf16.msra.mxu1 %v750_v2  ;;  %v3164_v7 = vld [vmem:[%s3910_s4 + $0x10] sm:$0xff]   ;;  %v3165_v9 = vld [vmem:[%s3910_s4 + $0x18] sm:$0xff]   ;;  %v3176_v10 = vld [vmem:[%s3910_s4 + $0xa8] sm:$0xff]   ;;  %s2547_s26 = sshll.u32 %s4926_s12, 4  ;;  %s5144_s17 = sld [smem:[#allocation42_spill]]  ;;  %s5020_s26 = int_to_ptr.vmem [resolvable:$true] %s2547_s26 }
 0x118   : > { %v3166_v11 = vld [vmem:[%s3910_s4 + $0x20] sm:$0xff]   ;;  %v3178_v12 = vld [vmem:[%s3910_s4 + $0xb0] sm:$0xff]   ;;  %v3167_v13 = vld [vmem:[%s3910_s4 + $0x28] sm:$0xff]   ;;  %v1383_v59 = vsub.s32 2, %v1246_v51  ;;  %v1247_v2 = vsub.s32 0, %v1246_v51  ;;  %s2531_s30 = scalar_lea.sflag [#allocation5], %s3906_s11 }
 0x119   : > { %v3180_v14 = vld [vmem:[%s3910_s4 + $0xb8] sm:$0xff]   ;;  %v3168_v15 = vld [vmem:[%s3910_s4 + $0x30] sm:$0xff]   ;;  %v3182_v16 = vld [vmem:[%s3910_s4 + $0xc0] sm:$0xff]   ;;  %s3437_s14 = scalar_lea.vmem %s5020_s26, 4096  ;;  %p5145_p1 = scmp.ne.s32.totalorder %s5111_s15, 0 }
 0x11a   : > { %2866 = vmatmul.mubr.msk.bf16.vlgmr.msra.gmra.mrb[0].mxu0 %vm666_vm2, %v3162_v3  ;;  %2938 = vmatmul.mubr.msk.bf16.vlgmr.msra.gmra.mrb[0].mxu1 %vm666_vm2, %v3170_v5  ;;  %v3169_v17 = vld [vmem:[%s3910_s4 + $0x38] sm:$0xff]   ;;  %v3184_v18 = vld [vmem:[%s3910_s4 + $0xc8] sm:$0xff]   ;;  %v3171_v19 = vld [vmem:[%s3910_s4 + $0x40] sm:$0xff]   ;;  %p3438_p11 = scmp.ne.s32.totalorder %s5020_s26, %s3437_s14  ;;  %s3551_s3 = smov [#allocation17]  }
 0x11b   : > { %2869 = vmatprep.mubr.msk.bf16.mxu0 %vm3550_vm0, %v5089_v0  ;;  %2941 = vmatprep.mubr.msk.bf16.mxu1 %vm3550_vm0, %v5089_v0  ;;  %v3186_v20 = vld [vmem:[%s3910_s4 + $0xd0] sm:$0xff]   ;;  %v3173_v21 = vld [vmem:[%s3910_s4 + $0x48] sm:$0xff]   ;;  %v3177_v23 = vld [vmem:[%s3910_s4 + $0x58] sm:$0xff]   ;;  %s3441_s24 = sshll.u32 %s3551_s3, 4  ;;  %s3442_s24 = int_to_ptr.vmem [resolvable:$false] %s3441_s24 }
 0x11c   : > { %v3175_v22 = vld [vmem:[%s3910_s4 + $0x50] sm:$0xff]   ;;  %v3179_v24 = vld [vmem:[%s3910_s4 + $0x60] sm:$0xff]   ;;  %v3181_v25 = vld [vmem:[%s3910_s4 + $0x68] sm:$0xff]   ;;  %p3439_p8 = pnand %p3438_p11, %p5145_p1  ;;  %s3443_s5 = scalar_lea.vmem %s3442_s24, 8192 }
 0x11d   : > { %v3183_v26 = vld [vmem:[%s3910_s4 + $0x70] sm:$0xff]   ;;  %v3185_v27 = vld [vmem:[%s3910_s4 + $0x78] sm:$0xff]   ;;  %v3187_v29 = vld [vmem:[%s3910_s4 + $0x80] sm:$0xff]   ;;  %s5018_s21 = scalar_lea.hbm %s5144_s17, %s2810_s19  ;;  %p3444_p4 = scmp.lt.s32.totalorder %s5020_s26, %s3442_s24 }
 0x11e   : > { %v3189_v28 = vld [vmem:[#allocation12] sm:$0xff]   ;;  %v3190_v30 = vld [vmem:[#allocation12 + $0x8] sm:$0xff]   ;;  %v3191_v31 = vld [vmem:[#allocation12 + $0x10] sm:$0xff]   ;;  %p3440_p9 = pneg %p3439_p8  ;;  %p3445_p6 = scmp.lt.s32.totalorder %s3443_s5, %s3437_s14 }
 0x11f   : > { %2973 = vmatprep.subr.bf16.mxu1 %v3189_v28  ;;  %v3188_v32 = vld [vmem:[%s3910_s4 + $0x88] sm:$0xff]   ;;  %v3195_v36 = vld [vmem:[#allocation12 + $0x30] sm:$0xff]  }
 0x120   : > { %2974 = vmatpush3.bf16.msra.mxu1 %v3189_v28  ;;  %v3192_v33 = vld [vmem:[#allocation12 + $0x18] sm:$0xff]   ;;  %v3193_v34 = vld [vmem:[#allocation12 + $0x20] sm:$0xff]   ;;  %v3194_v35 = vld [vmem:[#allocation12 + $0x28] sm:$0xff]   ;;  %p3446_p3 = por %p3445_p6, %p3444_p4 }
 0x121   : > { %2975 = vmatprep.subr.bf16.mxu1 %v3190_v30  ;;  %v3196_v37 = vld [vmem:[#allocation12 + $0x38] sm:$0xff]   ;;  %v4050_v38 = vld [vmem:[#allocation8] ss:$0 sm:$0xff]  ;;  %v1210_v5 = vld [vmem:[#allocation9] sm:$0x7] }
 0x122   : > { %2870 = vmatmul.mubr.msk.bf16.gmra.mrb[4].mxu0 %vm666_vm2, %v3163_v4  ;;  %2942 = vmatmul.mubr.msk.bf16.gmra.mrb[4].mxu1 %vm666_vm2, %v3172_v6  ;;  %v1315_v6 = vsub.s32 1, %v1246_v51  ;;  %p3447_p12 = pnand %p3446_p3, %p3440_p9 }
 0x123   : > { %2873 = vmatprep.mubr.msk.bf16.mxu0 %vm3550_vm0, %v5089_v0  ;;  %2945 = vmatprep.mubr.msk.bf16.mxu1 %vm3550_vm0, %v5089_v0 }
 0x124   : > { %2976 = vmatpush3.bf16.msra.mxu1 %v3190_v30 }
 0x125   : > { %2977 = vmatprep.subr.bf16.mxu1 %v3191_v31 }
 0x128   : > { %2978 = vmatpush3.bf16.msra.mxu1 %v3191_v31 }
 0x129   : > { %2979 = vmatprep.subr.bf16.mxu1 %v3192_v33 }
 0x12a   : > { %2874 = vmatmul.mubr.msk.bf16.gmra.mrb[8].mxu0 %vm666_vm2, %v3164_v7  ;;  %2946 = vmatmul.mubr.msk.bf16.gmra.mrb[8].mxu1 %vm666_vm2, %v3174_v8  ;;  %v4058_v8 = vrot.slane %v1210_v5, %v1383_v59 }
 0x12b   : > { %2877 = vmatprep.mubr.msk.bf16.mxu0 %vm3550_vm0, %v5089_v0  ;;  %2949 = vmatprep.mubr.msk.bf16.mxu1 %vm3550_vm0, %v5089_v0 }
 0x12c   : > { %2980 = vmatpush3.bf16.msra.mxu1 %v3192_v33 }
 0x12d   : > { %2981 = vmatprep.subr.bf16.mxu1 %v3193_v34 }
 0x130   : > { %2982 = vmatpush3.bf16.msra.mxu1 %v3193_v34 }
 0x131   : > { %2983 = vmatprep.subr.bf16.mxu1 %v3194_v35 }
 0x132   : > { %2878 = vmatmul.mubr.msk.bf16.gmra.mrb[12].mxu0 %vm666_vm2, %v3165_v9  ;;  %2950 = vmatmul.mubr.msk.bf16.gmra.mrb[12].mxu1 %vm666_vm2, %v3176_v10 }
 0x133   : > { %2881 = vmatprep.mubr.msk.bf16.mxu0 %vm3550_vm0, %v5089_v0  ;;  %2953 = vmatprep.mubr.msk.bf16.mxu1 %vm3550_vm0, %v5089_v0 }
 0x134   : > { %2984 = vmatpush3.bf16.msra.mxu1 %v3194_v35 }
 0x135   : > { %2985 = vmatprep.subr.bf16.mxu1 %v3195_v36 }
 0x138   : > { %2986 = vmatpush3.bf16.msra.mxu1 %v3195_v36 }
 0x139   : > { %2987 = vmatprep.subr.bf16.mxu1 %v3196_v37 }
 0x13a   : > { %2882 = vmatmul.mubr.msk.bf16.gmra.mrb[16].mxu0 %vm666_vm2, %v3166_v11  ;;  %2954 = vmatmul.mubr.msk.bf16.gmra.mrb[16].mxu1 %vm666_vm2, %v3178_v12  ;;  %v1211_v11 = vld [vmem:[#allocation9 + $0x4] sm:$0x7] }
 0x13b   : > { %2885 = vmatprep.mubr.msk.bf16.mxu0 %vm3550_vm0, %v5089_v0  ;;  %2957 = vmatprep.mubr.msk.bf16.mxu1 %vm3550_vm0, %v5089_v0  ;;  %v4072_v28 = vrot.slane %v1211_v11, %v1247_v2  ;;  %v4076_v33 = vrot.slane %v1211_v11, %v1315_v6  ;;  %v4078_v35 = vrot.slane %v1211_v11, %v1383_v59 }
 0x13c   : > { %2988 = vmatpush3.bf16.msra.mxu1 %v3196_v37 }
 0x142   : > { %2886 = vmatmul.mubr.msk.bf16.gmra.mrb[20].mxu0 %vm666_vm2, %v3167_v13  ;;  %2958 = vmatmul.mubr.msk.bf16.gmra.mrb[20].mxu1 %vm666_vm2, %v3180_v14 }
 0x143   : > { %2889 = vmatprep.mubr.msk.bf16.mxu0 %vm3550_vm0, %v5089_v0  ;;  %2961 = vmatprep.mubr.msk.bf16.mxu1 %vm3550_vm0, %v5089_v0 }
 0x14a   : > { %2890 = vmatmul.mubr.msk.bf16.gmra.mrb[24].mxu0 %vm666_vm2, %v3168_v15  ;;  %2962 = vmatmul.mubr.msk.bf16.gmra.mrb[24].mxu1 %vm666_vm2, %v3182_v16  ;;  %v4063_v15 = vrot.slane %v1210_v5, %v1247_v2 }
 0x14b   : > { %2893 = vmatprep.mubr.msk.bf16.mxu0 %vm3550_vm0, %v5089_v0  ;;  %2965 = vmatprep.mubr.msk.bf16.mxu1 %vm3550_vm0, %v5089_v0 }
 0x152   : > { %2894 = vmatmul.mubr.msk.bf16.gmra.mrb[28].mxu0 %vm666_vm2, %v3169_v17  ;;  %2966 = vmatmul.mubr.msk.bf16.gmra.mrb[28].mxu1 %vm666_vm2, %v3184_v18 }
 0x153   : > { %2897 = vmatprep.mubr.msk.bf16.mxu0 %vm3550_vm0, %v5089_v0  ;;  %2969 = vmatprep.mubr.msk.bf16.mxu1 %vm3550_vm0, %v5089_v0 }
 0x15a   : > { %2898 = vmatmul.mubr.msk.bf16.gmra.mrb[32].mxu0 %vm666_vm2, %v3171_v19  ;;  %2970 = vmatmul.mubr.msk.bf16.gmra.mrb[32].mxu1 %vm666_vm2, %v3186_v20  ;;  %v1212_v20 = vld [vmem:[#allocation9 + $0x8] sm:$0x7] }
 0x15b   : > { %2901 = vmatprep.mubr.msk.bf16.mxu0 %vm3550_vm0, %v5089_v0  ;;  %v4080_v36 = vrot.slane %v1212_v20, %v1247_v2  ;;  %v4082_v37 = vrot.slane %v1212_v20, %v1315_v6 }
 0x162   : > { %2902 = vmatmul.mubr.msk.bf16.gmra.mrb[36].mxu0 %vm666_vm2, %v3173_v21  ;;  %v4067_v21 = vrot.slane %v1210_v5, %v1315_v6 }
 0x163   : > { %2905 = vmatprep.mubr.msk.bf16.mxu0 %vm3550_vm0, %v5089_v0 }
 0x16a   : > { %2906 = vmatmul.mubr.msk.bf16.gmra.mrb[40].mxu0 %vm666_vm2, %v3175_v22 }
 0x16b   : > { %2909 = vmatprep.mubr.msk.bf16.mxu0 %vm3550_vm0, %v5089_v0 }
 0x172   : > { %2910 = vmatmul.mubr.msk.bf16.gmra.mrb[44].mxu0 %vm666_vm2, %v3177_v23 }
 0x173   : > { %2913 = vmatprep.mubr.msk.bf16.mxu0 %vm3550_vm0, %v5089_v0 }
 0x17a   : > { %2914 = vmatmul.mubr.msk.bf16.gmra.mrb[48].mxu0 %vm666_vm2, %v3179_v24 }
 0x17b   : > { %2917 = vmatprep.mubr.msk.bf16.mxu0 %vm3550_vm0, %v5089_v0 }
 0x182   : > { %2918 = vmatmul.mubr.msk.bf16.gmra.mrb[52].mxu0 %vm666_vm2, %v3181_v25  ;;  %v1249_v25 = vmul.f32 0.0, %v4063_v15 }
 0x183   : > { %2921 = vmatprep.mubr.msk.bf16.mxu0 %vm3550_vm0, %v5089_v0 }
 0x18a   : > { %2922 = vmatmul.mubr.msk.bf16.gmra.mrb[56].mxu0 %vm666_vm2, %v3183_v26 }
 0x18b   : > { %2925 = vmatprep.mubr.msk.bf16.mxu0 %vm3550_vm0, %v5089_v0 }
 0x192   : > { %2926 = vmatmul.mubr.msk.bf16.gmra.mrb[60].mxu0 %vm666_vm2, %v3185_v27 }
 0x193   : > { %2929 = vmatprep.mubr.msk.bf16.mxu0 %vm3550_vm0, %v5089_v0 }
 0x19a   : > { %2930 = vmatmul.mubr.msk.bf16.gmra.mrb[64].mxu0 %vm666_vm2, %v3187_v29 }
 0x19b   : > { %2933 = vmatprep.mubr.msk.bf16.mxu0 %vm3550_vm0, %v5089_v0 }
 0x1a2   : > { %2934 = vmatmul.mubr.msk.bf16.gmra.mrb[68].mxu0 %vm666_vm2, %v3188_v32 }
 0x1ed   : > { %v786_v39 = vpop.f32.mrb[0].mxu0  ;;  %v930_v47 = vpop.f32.mrb[0].mxu1 }
 0x1ee   : > { %v787_v40 = vadd.f32 %v4050_v38, %v786_v39  ;;  %v2867_v41 = vpop.f32.mrb[1].mxu0  ;;  %v931_v48 = vadd.f32 %v4050_v38, %v930_v47  ;;  %v2939_v49 = vpop.f32.mrb[1].mxu1 }
 0x1ef   : > { %v789_v42 = vpop.f32.mrb[2].mxu0  ;;  %v933_v52 = vpop.f32.mrb[2].mxu1 }
 0x1f0   : > { %v1001_v43 = vmax.f32 %v787_v40, 0.0  ;;  %v2868_v44 = vpop.f32.mrb[3].mxu0  ;;  %v1037_v55 = vmax.f32 %v931_v48, 0.0  ;;  %v934_v56 = vadd.f32 %v4050_v38, %v933_v52  ;;  %v2940_v57 = vpop.f32.mrb[3].mxu1 }
 0x1f2   : > { %v1055_v46 = vmin.f32 %v1001_v43, 6.0  ;;  %v1091_v63 = vmin.f32 %v1037_v55, 6.0  ;;  %v1038_v1 = vmax.f32 %v934_v56, 0.0  ;;  %v4085_v43 = vrot.slane %v1212_v20, %v1383_v59 }
 0x1f4   : > { %1109 = vst [vmem:[#allocation2] sm:$0xff] %v1055_v46  ;;  %1145 = vst [vmem:[#allocation2 + $0x120] sm:$0xff] %v1091_v63  ;;  %v1092_v7 = vmin.f32 %v1038_v1, 6.0 }
 0x1f5   : > { %v794_v50 = vpop.f32.mrb[4].mxu0  ;;  %1203 = vst [vmem:[#allocation2] sm:$0xff] %v5089_v0  ;;  %1175 = vst [vmem:[#allocation2 + $0x120] sm:$0x1] %v5089_v0  ;;  %v938_v9 = vpop.f32.mrb[4].mxu1 }
 0x1f6   : > { %v795_v53 = vadd.f32 %v4050_v38, %v794_v50  ;;  %v2871_v54 = vpop.f32.mrb[5].mxu0  ;;  %1146 = vst [vmem:[#allocation2 + $0x128] sm:$0xff] %v1092_v7  ;;  %v939_v12 = vadd.f32 %v4050_v38, %v938_v9  ;;  %v2943_v13 = vpop.f32.mrb[5].mxu1 }
 0x1f7   : > { %v797_v58 = vpop.f32.mrb[6].mxu0  ;;  %v941_v17 = vpop.f32.mrb[6].mxu1 }
 0x1f8   : > { %v1003_v60 = vmax.f32 %v795_v53, 0.0  ;;  %v798_v61 = vadd.f32 %v4050_v38, %v797_v58  ;;  %v2872_v62 = vpop.f32.mrb[7].mxu0  ;;  %v1039_v22 = vmax.f32 %v939_v12, 0.0  ;;  %v2944_v23 = vpop.f32.mrb[7].mxu1  ;;  %v942_v29 = vadd.f32 %v4050_v38, %v941_v17 }
 0x1fa   : > { %v1057_v3 = vmin.f32 %v1003_v60, 6.0  ;;  %v1004_v4 = vmax.f32 %v798_v61, 0.0  ;;  %v1093_v34 = vmin.f32 %v1039_v22, 6.0  ;;  %v1040_v39 = vmax.f32 %v942_v29, 0.0 }
 0x1fc   : > { %1111 = vst [vmem:[#allocation2 + $0x10] sm:$0xff] %v1057_v3  ;;  %v1058_v10 = vmin.f32 %v1004_v4, 6.0  ;;  %v1349_v16 = vld [vmem:[#allocation2 + $0x2] sm:$0xff]  ;;  %1147 = vst [vmem:[#allocation2 + $0x130] sm:$0xff] %v1093_v34  ;;  %v1094_v46 = vmin.f32 %v1040_v39, 6.0 }
 0x1fd   : > { %1181 = vst [vmem:[#allocation2 + $0x11] sm:$0x1] %v5089_v0  ;;  %v802_v14 = vpop.f32.mrb[8].mxu0  ;;  %v1281_v26 = vld [vmem:[#allocation2 + $0x1] sm:$0xff]  ;;  %v1385_v27 = vmul.f32 %v4058_v8, %v1349_v16  ;;  %1193 = vst [vmem:[#allocation2 + $0x131] sm:$0x1] %v5089_v0 }
 0x1fe   : > { %1205 = vst [vmem:[#allocation2 + $0x10] sm:$0xff] %v5089_v0  ;;  %1112 = vst [vmem:[#allocation2 + $0x18] sm:$0xff] %v1058_v10  ;;  %v803_v18 = vadd.f32 %v4050_v38, %v802_v14  ;;  %v2875_v19 = vpop.f32.mrb[9].mxu0  ;;  %v1317_v42 = vmul.f32 %v4067_v21, %v1281_v26  ;;  %v1771_v44 = vld [vmem:[#allocation2 + $0x120] sm:$0xff]  ;;  %v946_v47 = vpop.f32.mrb[8].mxu1  ;;  %v1772_v56 = vld [vmem:[#allocation2 + $0x128] sm:$0xff] }
 0x1ff   : > { %1164 = vst [vmem:[#allocation2 + $0x18] sm:$0x1] %v5089_v0  ;;  %v805_v24 = vpop.f32.mrb[10].mxu0  ;;  %v4087_v45 = vadd.f32 %v1385_v27, %v1249_v25  ;;  %v4091_v48 = vmul.f32 %v4080_v36, %v1771_v44  ;;  %v4093_v49 = vld [vmem:[#allocation2 + $0x121] sm:$0xff]  ;;  %v4096_v50 = vmul.f32 %v1771_v44, %v4072_v28  ;;  %v947_v54 = vadd.f32 %v4050_v38, %v946_v47  ;;  %v2947_v55 = vpop.f32.mrb[9].mxu1 }
 0x200   : > { %v1005_v30 = vmax.f32 %v803_v18, 0.0  ;;  %v806_v31 = vadd.f32 %v4050_v38, %v805_v24  ;;  %v2876_v32 = vpop.f32.mrb[11].mxu0  ;;  %v1971_v57 = vld [vmem:[#allocation2 + $0x122] sm:$0xff]  ;;  %1148 = vst [vmem:[#allocation2 + $0x138] sm:$0xff] %v1094_v46  ;;  %v949_v61 = vpop.f32.mrb[10].mxu1  ;;  %v4104_v62 = vmul.f32 %v4080_v36, %v1772_v56  ;;  %v4108_v63 = vmul.f32 %v4082_v37, %v4093_v49 }
 0x201   : > { %v4111_v1 = vmul.f32 %v4085_v43, %v1971_v57  ;;  %v4114_v2 = vmul.f32 %v1772_v56, %v4072_v28  ;;  %1176 = vst [vmem:[#allocation2 + $0x138] sm:$0x1] %v5089_v0  ;;  %v1041_v9 = vmax.f32 %v947_v54, 0.0  ;;  %v2948_v10 = vpop.f32.mrb[11].mxu1  ;;  %v950_v14 = vadd.f32 %v4050_v38, %v949_v61 }
 0x202   : > { %v1059_v40 = vmin.f32 %v1005_v30, 6.0  ;;  %v1006_v41 = vmax.f32 %v806_v31, 0.0  ;;  %v4126_v16 = vmul.f32 %v4093_v49, %v4076_v33  ;;  %v4130_v29 = vmul.f32 %v1971_v57, %v4078_v35 }
 0x203   : > { %v1095_v24 = vmin.f32 %v1041_v9, 6.0  ;;  %v1042_v26 = vmax.f32 %v950_v14, 0.0  ;;  %v1872_v27 = vld [vmem:[#allocation2 + $0x129] sm:$0xff] }
 0x204   : > { %1113 = vst [vmem:[#allocation2 + $0x20] sm:$0xff] %v1059_v40  ;;  %v1060_v51 = vmin.f32 %v1006_v41, 6.0  ;;  %v1487_v52 = vmul.f32 %v4072_v28, %v1059_v40  ;;  %v4100_v53 = vmul.f32 %v4063_v15, %v1059_v40  ;;  %5119 = vst [vmem:[#allocation24_spill] sm:$0xff] %v4126_v16  ;;  %v4133_v32 = vmul.f32 %v4082_v37, %v1872_v27  ;;  %v1972_v34 = vld [vmem:[#allocation2 + $0x12a] sm:$0xff] }
 0x205   : > { %v810_v58 = vpop.f32.mrb[12].mxu0  ;;  %v1282_v59 = vld [vmem:[#allocation2 + $0x9] sm:$0xff]  ;;  %5120 = vst [vmem:[#allocation25_spill] sm:$0xff] %v4130_v29  ;;  %v4136_v39 = vmul.f32 %v1872_v27, %v4076_v33  ;;  %1149 = vst [vmem:[#allocation2 + $0x140] sm:$0xff] %v1095_v24  ;;  %v4139_v46 = vmul.f32 %v4085_v43, %v1972_v34  ;;  %v4142_v47 = vmul.f32 %v1972_v34, %v4078_v35 }
 0x206   : > { %v1350_v60 = vld [vmem:[#allocation2 + $0xa] sm:$0xff]  ;;  %1114 = vst [vmem:[#allocation2 + $0x28] sm:$0xff] %v1060_v51  ;;  %v811_v3 = vadd.f32 %v4050_v38, %v810_v58  ;;  %v2879_v4 = vpop.f32.mrb[13].mxu0  ;;  %v1318_v5 = vmul.f32 %v4067_v21, %v1282_v59  ;;  %v1450_v7 = vld [vmem:[#allocation2 + $0x18] sm:$0xff]  ;;  %v4145_v51 = vmul.f32 %v1771_v44, %v4063_v15 }
 0x207   : > { %v1386_v6 = vmul.f32 %v4058_v8, %v1350_v60  ;;  %1182 = vst [vmem:[#allocation2 + $0x29] sm:$0x1] %v5089_v0  ;;  %v813_v11 = vpop.f32.mrb[14].mxu0  ;;  %v1486_v12 = vmul.f32 %v4072_v28, %v1450_v7  ;;  %v1251_v13 = vmul.f32 %v1450_v7, %v4063_v15  ;;  %5121 = vst [vmem:[#allocation26_spill] sm:$0xff] %v4136_v39 }
 0x208   : > { %v1007_v17 = vmax.f32 %v811_v3, 0.0  ;;  %v814_v18 = vadd.f32 %v4050_v38, %v813_v11  ;;  %v2880_v19 = vpop.f32.mrb[15].mxu0  ;;  %v1519_v22 = vadd.f32 %v1487_v52, %v1318_v5  ;;  %5122 = vst [vmem:[#allocation27_spill] sm:$0xff] %v4142_v47  ;;  %5123 = vst [vmem:[#allocation28_spill] sm:$0xff] %v4145_v51  ;;  %v4156_v4 = vmul.f32 %v1772_v56, %v4063_v15 }
 0x209   : > { %v1418_v20 = vadd.f32 %v1386_v6, %v1249_v25  ;;  %v1518_v23 = vadd.f32 %v1486_v12, %v1317_v42  ;;  %v1096_v25 = vmin.f32 %v1042_v26, 6.0  ;;  %v954_v42 = vpop.f32.mrb[12].mxu1  ;;  %v4160_v5 = vmul.f32 %v4093_v49, %v4067_v21 }
 0x20a   : > { %v1061_v30 = vmin.f32 %v1007_v17, 6.0  ;;  %v1008_v31 = vmax.f32 %v814_v18, 0.0  ;;  %v2951_v58 = vpop.f32.mrb[13].mxu1  ;;  %v955_v44 = vadd.f32 %v4050_v38, %v954_v42  ;;  %5124 = vst [vmem:[#allocation29_spill] sm:$0xff] %v4156_v4 }
 0x20b   : > { %v1550_v40 = vld [vmem:[#allocation2 + $0x19] sm:$0xff]  ;;  %1150 = vst [vmem:[#allocation2 + $0x148] sm:$0xff] %v1096_v25  ;;  %v957_v3 = vpop.f32.mrb[14].mxu1  ;;  %5125 = vst [vmem:[#allocation30_spill] sm:$0xff] %v4160_v5  ;;  %v5131_v5 = vmov 0.0  }
 0x20c   : > { %v1650_v41 = vld [vmem:[#allocation2 + $0x1a] sm:$0xff]  ;;  %1115 = vst [vmem:[#allocation2 + $0x30] sm:$0xff] %v1061_v30  ;;  %v1062_v52 = vmin.f32 %v1008_v31, 6.0  ;;  %v1586_v54 = vmul.f32 %v4076_v33, %v1550_v40  ;;  %v4150_v57 = vmul.f32 %v1550_v40, %v4067_v21  ;;  %1194 = vst [vmem:[#allocation2 + $0x149] sm:$0x1] %v5089_v0  ;;  %v2952_v14 = vpop.f32.mrb[15].mxu1 }
 0x20d   : > { %v1686_v55 = vmul.f32 %v4078_v35, %v1650_v41  ;;  %1165 = vst [vmem:[#allocation2 + $0x30] sm:$0x1] %v5089_v0  ;;  %v818_v59 = vpop.f32.mrb[16].mxu0  ;;  %v1551_v60 = vld [vmem:[#allocation2 + $0x21] sm:$0xff]  ;;  %v1387_v61 = vmul.f32 %v1650_v41, %v4058_v8 }
 0x20e   : > { %1116 = vst [vmem:[#allocation2 + $0x38] sm:$0xff] %v1062_v52  ;;  %v819_v6 = vadd.f32 %v4050_v38, %v818_v59  ;;  %v2883_v7 = vpop.f32.mrb[17].mxu0  ;;  %v1587_v9 = vmul.f32 %v4076_v33, %v1551_v60  ;;  %v1618_v10 = vadd.f32 %v1586_v54, %v4087_v45  ;;  %v1651_v11 = vld [vmem:[#allocation2 + $0x22] sm:$0xff]  ;;  %v1788_v49 = vmul.f32 %v4080_v36, %v1062_v52 }
 0x20f   : > { %v4165_v12 = vadd.f32 %v1686_v55, %v1518_v23  ;;  %v821_v56 = vpop.f32.mrb[18].mxu0  ;;  %v1687_v17 = vmul.f32 %v4078_v35, %v1651_v11  ;;  %v1320_v18 = vmul.f32 %v1551_v60, %v4067_v21  ;;  %v1388_v19 = vmul.f32 %v1651_v11, %v4058_v8  ;;  %v1773_v55 = vld [vmem:[#allocation2 + $0x138] sm:$0xff]  ;;  %v1774_v58 = vld [vmem:[#allocation2 + $0x140] sm:$0xff] }
 0x210   : > { %v1009_v24 = vmax.f32 %v819_v6, 0.0  ;;  %v822_v26 = vadd.f32 %v4050_v38, %v821_v56  ;;  %v2884_v27 = vpop.f32.mrb[19].mxu0  ;;  %v1619_v45 = vadd.f32 %v1587_v9, %v1418_v20  ;;  %v1419_v30 = vadd.f32 %v1387_v61, %v1251_v13  ;;  %v962_v20 = vpop.f32.mrb[16].mxu1 }
 0x211   : > { %v4173_v23 = vadd.f32 %v1687_v17, %v1519_v22  ;;  %v4176_v31 = vadd.f32 %v1388_v19, %v4100_v53  ;;  %v1489_v34 = vmul.f32 %v4072_v28, %v1062_v52  ;;  %v4180_v40 = vmul.f32 %v4063_v15, %v1062_v52  ;;  %v1873_v52 = vld [vmem:[#allocation2 + $0x139] sm:$0xff]  ;;  %v2955_v7 = vpop.f32.mrb[17].mxu1 }
 0x212   : > { %v1063_v41 = vmin.f32 %v1009_v24, 6.0  ;;  %v1010_v25 = vmax.f32 %v822_v26, 0.0  ;;  %v4182_v42 = vadd.f32 %v1788_v49, %v1619_v45  ;;  %v1043_v54 = vmax.f32 %v955_v44, 0.0  ;;  %v965_v19 = vpop.f32.mrb[18].mxu1 }
 0x213   : > { %v4184_v59 = vadd.f32 %v1489_v34, %v1320_v18  ;;  %v958_v13 = vadd.f32 %v4050_v38, %v957_v3  ;;  %v4188_v53 = vmul.f32 %v4080_v36, %v1773_v55  ;;  %v4191_v22 = vmul.f32 %v4080_v36, %v1774_v58 }
 0x214   : > { %1117 = vst [vmem:[#allocation2 + $0x40] sm:$0xff] %v1063_v41  ;;  %v1064_v60 = vmin.f32 %v1010_v25, 6.0  ;;  %v1751_v61 = vld [vmem:[#allocation2 + $0x30] sm:$0xff]  ;;  %v1097_v6 = vmin.f32 %v1043_v54, 6.0  ;;  %v4194_v44 = vadd.f32 %v4050_v38, %v962_v20  ;;  %v4197_v9 = vmul.f32 %v4082_v37, %v1873_v52  ;;  %v2956_v41 = vpop.f32.mrb[19].mxu1 }
 0x215   : > { %5126 = vst [vmem:[#allocation31_spill] sm:$0xff] %v4188_v53  ;;  %5127 = vst [vmem:[#allocation32_spill] sm:$0xff] %v4191_v22  ;;  %v826_v3 = vpop.f32.mrb[20].mxu0  ;;  %v1787_v11 = vmul.f32 %v4080_v36, %v1751_v61  ;;  %v1851_v14 = vld [vmem:[#allocation2 + $0x31] sm:$0xff]  ;;  %v1488_v17 = vmul.f32 %v1751_v61, %v4072_v28  ;;  %v1253_v49 = vmul.f32 %v1751_v61, %v4063_v15  ;;  %v1044_v18 = vmax.f32 %v958_v13, 0.0  ;;  %v1874_v41 = vld [vmem:[#allocation2 + $0x141] sm:$0xff] }
 0x216   : > { %5128 = vst [vmem:[#allocation33_spill] sm:$0xff] %v4197_v9  ;;  %1183 = vst [vmem:[#allocation2 + $0x41] sm:$0x1] %v5089_v0  ;;  %v1951_v56 = vld [vmem:[#allocation2 + $0x32] sm:$0xff]  ;;  %v827_v24 = vadd.f32 %v4050_v38, %v826_v3  ;;  %v2887_v26 = vpop.f32.mrb[21].mxu0  ;;  %v1887_v27 = vmul.f32 %v4082_v37, %v1851_v14  ;;  %v1588_v34 = vmul.f32 %v1851_v14, %v4076_v33 }
 0x217   : > { %1118 = vst [vmem:[#allocation2 + $0x48] sm:$0xff] %v1064_v60  ;;  %v1987_v45 = vmul.f32 %v4085_v43, %v1951_v56  ;;  %1151 = vst [vmem:[#allocation2 + $0x150] sm:$0xff] %v1097_v6  ;;  %v829_v25 = vpop.f32.mrb[22].mxu0  ;;  %v1819_v54 = vadd.f32 %v1787_v11, %v1618_v10  ;;  %v1520_v55 = vadd.f32 %v1488_v17, %v4150_v57  ;;  %v4216_v3 = vld [vmem:[#allocation11] ss:$0 sm:$0xff]  ;;  %v1098_v11 = vmin.f32 %v1044_v18, 6.0 }
 0x218   : > { %1166 = vst [vmem:[#allocation2 + $0x48] sm:$0x1] %v5089_v0  ;;  %v1688_v58 = vmul.f32 %v1951_v56, %v4078_v35  ;;  %v4211_v13 = vmul.f32 %v1851_v14, %v4067_v21  ;;  %1177 = vst [vmem:[#allocation2 + $0x150] sm:$0x1] %v5089_v0  ;;  %v1011_v20 = vmax.f32 %v827_v24, 0.0  ;;  %v830_v52 = vadd.f32 %v4050_v38, %v829_v25  ;;  %v2888_v60 = vpop.f32.mrb[23].mxu0 }
 0x219   : > { %v1919_v61 = vadd.f32 %v1887_v27, %v4165_v12  ;;  %v1620_v6 = vadd.f32 %v1588_v34, %v1419_v30  ;;  %v2019_v7 = vadd.f32 %v1987_v45, %v1819_v54  ;;  %v1389_v57 = vmul.f32 %v1951_v56, %v4058_v8  ;;  %v1973_v25 = vld [vmem:[#allocation2 + $0x13a] sm:$0xff]  ;;  %1152 = vst [vmem:[#allocation2 + $0x158] sm:$0xff] %v1098_v11  ;;  %v4227_v27 = vpop.f32.mrb[20].mxu1 }
 0x21a   : > { %v4218_v10 = vadd.f32 %v1688_v58, %v1520_v55  ;;  %v1065_v17 = vmin.f32 %v1011_v20, 6.0  ;;  %v1012_v14 = vmax.f32 %v830_v52, 0.0  ;;  %v1045_v26 = vmax.f32 %v4194_v44, 0.0 }
 0x21b   : > { %v4223_v24 = vadd.f32 %v4050_v38, %v965_v19  ;;  %v1852_v60 = vld [vmem:[#allocation2 + $0x39] sm:$0xff]  ;;  %v2051_v12 = vadd.f32 %v2019_v7, %v1919_v61  ;;  %v4225_v30 = vadd.f32 %v1389_v57, %v1253_v49  ;;  %v4230_v45 = vmul.f32 %v4082_v37, %v1874_v41  ;;  %v2959_v49 = vpop.f32.mrb[21].mxu1 }
 0x21c   : > { %v4233_v56 = vmul.f32 %v4085_v43, %v1973_v25  ;;  %1119 = vst [vmem:[#allocation2 + $0x50] sm:$0xff] %v1065_v17  ;;  %v1066_v44 = vmin.f32 %v1012_v14, 6.0  ;;  %v1888_v18 = vmul.f32 %v4082_v37, %v1852_v60  ;;  %v1589_v34 = vmul.f32 %v1852_v60, %v4076_v33  ;;  %v4242_v7 = vpop.f32.mrb[22].mxu1 }
 0x21d   : > { %5129 = vst [vmem:[#allocation34_spill] sm:$0xff] %v4230_v45  ;;  %v1952_v19 = vld [vmem:[#allocation2 + $0x3a] sm:$0xff]  ;;  %v1790_v54 = vmul.f32 %v4080_v36, %v1065_v17  ;;  %v834_v55 = vpop.f32.mrb[24].mxu0  ;;  %v2090_v20 = vadd.f32 %v4216_v3, %v2051_v12  ;;  %v1322_v61 = vmul.f32 %v1852_v60, %v4067_v21  ;;  %v2960_v0 = vpop.f32.mrb[23].mxu1 }
 0x21e   : > { %5130 = vst [vmem:[#allocation35_spill] sm:$0xff] %v4233_v56  ;;  %v1988_v58 = vmul.f32 %v4085_v43, %v1952_v19  ;;  %v1689_v52 = vmul.f32 %v1952_v19, %v4078_v35  ;;  %1120 = vst [vmem:[#allocation2 + $0x58] sm:$0xff] %v1066_v44  ;;  %v835_v57 = vadd.f32 %v4050_v38, %v834_v55  ;;  %v2891_v11 = vpop.f32.mrb[25].mxu0 }
 0x21f   : > { %v1920_v14 = vadd.f32 %v1888_v18, %v4173_v23  ;;  %v1621_v41 = vadd.f32 %v1589_v34, %v4176_v31  ;;  %v1753_v25 = vld [vmem:[#allocation2 + $0x48] sm:$0xff]  ;;  %v1390_v49 = vmul.f32 %v1952_v19, %v4058_v8  ;;  %1184 = vst [vmem:[#allocation2 + $0x59] sm:$0x1] %v5131_v5  ;;  %v837_v12 = vpop.f32.mrb[26].mxu0  ;;  %v2122_v60 = vmax.f32 %v2090_v20, 0.0 }
 0x220   : > { %v2020_v56 = vadd.f32 %v1988_v58, %v4182_v42  ;;  %v1721_v4 = vadd.f32 %v1689_v52, %v4184_v59  ;;  %v1789_v44 = vmul.f32 %v4080_v36, %v1753_v25  ;;  %v1013_v55 = vmax.f32 %v835_v57, 0.0  ;;  %v2892_v23 = vpop.f32.mrb[27].mxu0 }
 0x221   : > { %v838_v11 = vadd.f32 %v4050_v38, %v837_v12  ;;  %v1822_v18 = vadd.f32 %v1790_v54, %v1621_v41  ;;  %v1422_v31 = vadd.f32 %v1390_v49, %v4180_v40  ;;  %v2154_v19 = vmin.f32 %v2122_v60, 6.0 }
 0x222   : > { %v2052_v34 = vadd.f32 %v2020_v56, %v1920_v14  ;;  %v1821_v0 = vadd.f32 %v1789_v44, %v1620_v6  ;;  %v1490_v22 = vmul.f32 %v1753_v25, %v4072_v28  ;;  %v1067_v53 = vmin.f32 %v1013_v55, 6.0  ;;  %v4264_v6 = vpop.f32.mrb[24].mxu1 }
 0x223   : > { %v1014_v51 = vmax.f32 %v838_v11, 0.0  ;;  %v1491_v42 = vmul.f32 %v4072_v28, %v1065_v17  ;;  %v4257_v59 = vmul.f32 %v1753_v25, %v4063_v15  ;;  %v1853_v20 = vld [vmem:[#allocation2 + $0x49] sm:$0xff]  ;;  %v4262_v40 = vmul.f32 %v4063_v15, %v1065_v17  ;;  %v2963_v49 = vpop.f32.mrb[25].mxu1 }
 0x224   : > { %v2091_v58 = vadd.f32 %v4216_v3, %v2052_v34  ;;  %v1953_v52 = vld [vmem:[#allocation2 + $0x4a] sm:$0xff]  ;;  %v1522_v54 = vadd.f32 %v1490_v22, %v4211_v13  ;;  %v1099_v56 = vmin.f32 %v1045_v26, 6.0  ;;  %1121 = vst [vmem:[#allocation2 + $0x60] sm:$0xff] %v1067_v53  ;;  %v1889_v14 = vmul.f32 %v4082_v37, %v1853_v20 }
 0x225   : > { %v4266_v57 = vmin.f32 %v1014_v51, 6.0  ;;  %v1989_v41 = vmul.f32 %v4085_v43, %v1953_v52  ;;  %v1523_v25 = vadd.f32 %v1491_v42, %v1322_v61  ;;  %1167 = vst [vmem:[#allocation2 + $0x60] sm:$0x1] %v5131_v5  ;;  %v842_v12 = vpop.f32.mrb[28].mxu0  ;;  %v1854_v22 = vld [vmem:[#allocation2 + $0x51] sm:$0xff]  ;;  %v1590_v13 = vmul.f32 %v1853_v20, %v4076_v33  ;;  %v4276_v51 = vpop.f32.mrb[26].mxu1 }
 0x226   : > { %v2123_v60 = vmax.f32 %v2091_v58, 0.0  ;;  %v1690_v17 = vmul.f32 %v1953_v52, %v4078_v35  ;;  %v4274_v26 = vmul.f32 %v1853_v20, %v4067_v21  ;;  %1153 = vst [vmem:[#allocation2 + $0x160] sm:$0xff] %v1099_v56  ;;  %v843_v53 = vadd.f32 %v4050_v38, %v842_v12  ;;  %v2895_v61 = vpop.f32.mrb[29].mxu0  ;;  %v1954_v11 = vld [vmem:[#allocation2 + $0x52] sm:$0xff]  ;;  %v2964_v34 = vpop.f32.mrb[27].mxu1 }
 0x227   : > { %1122 = vst [vmem:[#allocation2 + $0x68] sm:$0xff] %v4266_v57  ;;  %v1890_v44 = vmul.f32 %v4082_v37, %v1854_v22  ;;  %v1921_v55 = vadd.f32 %v1889_v14, %v4218_v10  ;;  %v2021_v23 = vadd.f32 %v1989_v41, %v1821_v0  ;;  %1195 = vst [vmem:[#allocation2 + $0x161] sm:$0x1] %v5131_v5  ;;  %v845_v42 = vpop.f32.mrb[30].mxu0 }
 0x228   : > { %v2155_v58 = vmin.f32 %v2123_v60, 6.0  ;;  %v1990_v20 = vmul.f32 %v4085_v43, %v1954_v11  ;;  %v1591_v56 = vmul.f32 %v1854_v22, %v4076_v33  ;;  %v1622_v49 = vadd.f32 %v1590_v13, %v4225_v30  ;;  %v2896_v61 = vpop.f32.mrb[31].mxu0  ;;  %v4294_v13 = vpop.f32.mrb[28].mxu1 }
 0x229   : > { %v1015_v45 = vmax.f32 %v843_v53, 0.0  ;;  %v846_v12 = vadd.f32 %v4050_v38, %v845_v42  ;;  %v1922_v9 = vadd.f32 %v1890_v44, %v1721_v4  ;;  %v2053_v39 = vadd.f32 %v2021_v23, %v1921_v55 }
 0x22a   : > { %v2186_v10 = vpack.c.bf16 %v2155_v58, %v2154_v19  ;;  %v2022_v14 = vadd.f32 %v1990_v20, %v1822_v18  ;;  %v1623_v0 = vadd.f32 %v1591_v56, %v1422_v31  ;;  %v1691_v5 = vmul.f32 %v1954_v11, %v4078_v35 }
 0x22b   : > { %v1069_v41 = vmin.f32 %v1015_v45, 6.0  ;;  %v1016_v34 = vmax.f32 %v846_v12, 0.0  ;;  %v2092_v60 = vadd.f32 %v4216_v3, %v2053_v39  ;;  %v1722_v16 = vadd.f32 %v1690_v17, %v1522_v54  ;;  %v2967_v54 = vpop.f32.mrb[29].mxu1 }
 0x22c   : > { %2989 = vmatprep.mubr.bf16.mxu1 %v2186_v10  ;;  %v2054_v47 = vadd.f32 %v2022_v14, %v1922_v9  ;;  %v4289_v29 = vadd.f32 %v1691_v5, %v1523_v25  ;;  %v1792_v30 = vmul.f32 %v4080_v36, %v4266_v57  ;;  %v1324_v4 = vmul.f32 %v1854_v22, %v4067_v21  ;;  %v4296_v19 = vld [vmem:[#allocation2 + $0x60] sm:$0xff]  ;;  %v4300_v9 = vld [vmem:[#allocation2 + $0x8] sm:$0xff] }
 0x22d   : > { %1123 = vst [vmem:[#allocation2 + $0x70] sm:$0xff] %v1069_v41  ;;  %v1070_v18 = vmin.f32 %v1016_v34, 6.0  ;;  %v2124_v31 = vmax.f32 %v2092_v60, 0.0  ;;  %v1391_v45 = vmul.f32 %v1953_v52, %v4058_v8  ;;  %v1392_v39 = vmul.f32 %v1954_v11, %v4058_v8  ;;  %v850_v25 = vpop.f32.mrb[32].mxu0  ;;  %v4312_v11 = vpop.f32.mrb[30].mxu1 }
 0x22e   : > { %1185 = vst [vmem:[#allocation2 + $0x71] sm:$0x1] %v4300_v9  ;;  %v2093_v17 = vadd.f32 %v4216_v3, %v2054_v47  ;;  %v1791_v22 = vmul.f32 %v4080_v36, %v4296_v19  ;;  %v1824_v53 = vadd.f32 %v1792_v30, %v1623_v0  ;;  %v4306_v44 = vld [vmem:[#allocation2 + $0x61] sm:$0xff]  ;;  %v1492_v52 = vmul.f32 %v4296_v19, %v4072_v28  ;;  %v2899_v42 = vpop.f32.mrb[33].mxu0  ;;  %v2968_v56 = vpop.f32.mrb[31].mxu1 }
 0x22f   : > { %v4308_v55 = vld [vmem:[#allocation2 + $0x62] sm:$0xff]  ;;  %1124 = vst [vmem:[#allocation2 + $0x78] sm:$0xff] %v1070_v18  ;;  %v851_v23 = vadd.f32 %v4050_v38, %v850_v25  ;;  %v2156_v58 = vmin.f32 %v2124_v31, 6.0  ;;  %v1891_v47 = vmul.f32 %v4082_v37, %v4306_v44  ;;  %v853_v12 = vpop.f32.mrb[34].mxu0  ;;  %v1423_v14 = vadd.f32 %v1391_v45, %v4257_v59  ;;  %v994_v42 = vpop.f32.mrb[32].mxu1 }
 0x230   : > { %v1991_v20 = vmul.f32 %v4085_v43, %v4308_v55  ;;  %1168 = vst [vmem:[#allocation2 + $0x78] sm:$0x1] %v4300_v9  ;;  %v2125_v61 = vmax.f32 %v2093_v17, 0.0  ;;  %v1823_v10 = vadd.f32 %v1791_v22, %v1622_v49  ;;  %v1424_v0 = vadd.f32 %v1392_v39, %v4262_v40  ;;  %v2900_v34 = vpop.f32.mrb[35].mxu0 }
 0x231   : > { %v1017_v5 = vmax.f32 %v851_v23, 0.0  ;;  %v854_v41 = vadd.f32 %v4050_v38, %v853_v12  ;;  %v1923_v60 = vadd.f32 %v1891_v47, %v1722_v16  ;;  %v1493_v30 = vmul.f32 %v4072_v28, %v4266_v57 }
 0x232   : > { %v2157_v18 = vmin.f32 %v2125_v61, 6.0  ;;  %v2023_v31 = vadd.f32 %v1991_v20, %v1823_v10  ;;  %v1524_v54 = vadd.f32 %v1492_v52, %v4274_v26  ;;  %v1592_v25 = vmul.f32 %v4306_v44, %v4076_v33 }
 0x233   : > { %v4328_v49 = vmin.f32 %v1017_v5, 6.0  ;;  %v1018_v59 = vmax.f32 %v854_v41, 0.0  ;;  %v1525_v45 = vadd.f32 %v1493_v30, %v1324_v4  ;;  %v1692_v40 = vmul.f32 %v4308_v55, %v4078_v35 }
 0x234   : > { %v2187_v39 = vpack.c.bf16 %v2157_v18, %v2156_v58  ;;  %v4332_v17 = vld [vmem:[#allocation2 + $0x69] sm:$0xff]  ;;  %v2055_v16 = vadd.f32 %v2023_v31, %v1923_v60  ;;  %v1624_v22 = vadd.f32 %v1592_v25, %v1423_v14  ;;  %v1046_v23 = vmax.f32 %v4223_v24, 0.0  ;;  %v2971_v58 = vpop.f32.mrb[33].mxu1 }
 0x235   : > { %1125 = vst [vmem:[#allocation2 + $0x80] sm:$0xff] %v4328_v49  ;;  %v1072_v26 = vmin.f32 %v1018_v59, 6.0  ;;  %v1892_v52 = vmul.f32 %v4082_v37, %v4332_v17  ;;  %v4338_v47 = vld [vmem:[#allocation2 + $0x6a] sm:$0xff]  ;;  %v1593_v4 = vmul.f32 %v4332_v17, %v4076_v33  ;;  %v1724_v20 = vadd.f32 %v1692_v40, %v1524_v54  ;;  %v858_v56 = vpop.f32.mrb[36].mxu0  ;;  %v4349_v14 = vpop.f32.mrb[34].mxu1 }
 0x236   : > { %2990 = vmatmul.mubr.bf16.vlgmr.msra.gmra.mrb[36].mxu1 %v2187_v39  ;;  %v1992_v12 = vmul.f32 %v4085_v43, %v4338_v47  ;;  %v2094_v24 = vadd.f32 %v4216_v3, %v2055_v16  ;;  %v1693_v61 = vmul.f32 %v4338_v47, %v4078_v35  ;;  %v1794_v10 = vmul.f32 %v4080_v36, %v4328_v49  ;;  %v2903_v41 = vpop.f32.mrb[37].mxu0  ;;  %v2972_v31 = vpop.f32.mrb[35].mxu1 }
 0x237   : > { %1126 = vst [vmem:[#allocation2 + $0x88] sm:$0xff] %v1072_v26  ;;  %v859_v5 = vadd.f32 %v4050_v38, %v858_v56  ;;  %v1924_v34 = vadd.f32 %v1892_v52, %v4289_v29  ;;  %v1625_v60 = vadd.f32 %v1593_v4, %v1424_v0  ;;  %v4353_v30 = vld [vmem:[#allocation2 + $0x78] sm:$0xff]  ;;  %v1100_v18 = vmin.f32 %v1046_v23, 6.0  ;;  %v861_v54 = vpop.f32.mrb[38].mxu0 }
 0x238   : > { %1186 = vst [vmem:[#allocation2 + $0x89] sm:$0x1] %v4300_v9  ;;  %v2024_v25 = vadd.f32 %v1992_v12, %v1824_v53  ;;  %v2126_v59 = vmax.f32 %v2094_v24, 0.0  ;;  %v1725_v40 = vadd.f32 %v1693_v61, %v1525_v45  ;;  %v1793_v39 = vmul.f32 %v4080_v36, %v4353_v30  ;;  %v2904_v26 = vpop.f32.mrb[39].mxu0 }
 0x239   : > { %v1019_v16 = vmax.f32 %v859_v5, 0.0  ;;  %v862_v42 = vadd.f32 %v4050_v38, %v861_v54  ;;  %v1826_v58 = vadd.f32 %v1794_v10, %v1625_v60  ;;  %1154 = vst [vmem:[#allocation2 + $0x168] sm:$0xff] %v1100_v18  ;;  %v971_v29 = vadd.f32 %v4050_v38, %v4227_v27 }
 0x23a   : > { %v2056_v0 = vadd.f32 %v2024_v25, %v1924_v34  ;;  %v2158_v23 = vmin.f32 %v2126_v59, 6.0  ;;  %v1825_v52 = vadd.f32 %v1793_v39, %v1624_v22  ;;  %1178 = vst [vmem:[#allocation2 + $0x168] sm:$0x1] %v4300_v9  ;;  %v974_v53 = vadd.f32 %v4050_v38, %v4242_v7 }
 0x23b   : > { %v1073_v45 = vmin.f32 %v1019_v16, 6.0  ;;  %v1020_v4 = vmax.f32 %v862_v42, 0.0  ;;  %v1047_v56 = vmax.f32 %v971_v29, 0.0  ;;  %v1257_v12 = vmul.f32 %v4296_v19, %v4063_v15 }
 0x23c   : > { %v2095_v24 = vadd.f32 %v4216_v3, %v2056_v0  ;;  %v4367_v61 = vld [vmem:[#allocation2 + $0x79] sm:$0xff]  ;;  %v1048_v27 = vmax.f32 %v974_v53, 0.0  ;;  %v1258_v22 = vmul.f32 %v4063_v15, %v4266_v57  ;;  %v1325_v5 = vmul.f32 %v4306_v44, %v4067_v21 }
 0x23d   : > { %v4369_v10 = vld [vmem:[#allocation2 + $0x7a] sm:$0xff]  ;;  %1127 = vst [vmem:[#allocation2 + $0x90] sm:$0xff] %v1073_v45  ;;  %v4375_v7 = vmin.f32 %v1020_v4, 6.0  ;;  %v1893_v41 = vmul.f32 %v4082_v37, %v4367_v61  ;;  %v1101_v34 = vmin.f32 %v1047_v56, 6.0  ;;  %v866_v60 = vpop.f32.mrb[40].mxu0  ;;  %v1326_v44 = vmul.f32 %v4332_v17, %v4067_v21 }
 0x23e   : > { %v1993_v19 = vmul.f32 %v4085_v43, %v4369_v10  ;;  %1169 = vst [vmem:[#allocation2 + $0x90] sm:$0x1] %v4300_v9  ;;  %v2127_v18 = vmax.f32 %v2095_v24, 0.0  ;;  %v4382_v31 = vld [vmem:[#allocation2 + $0x81] sm:$0xff]  ;;  %v1102_v57 = vmin.f32 %v1048_v27, 6.0  ;;  %v1393_v54 = vmul.f32 %v4308_v55, %v4058_v8  ;;  %v2907_v59 = vpop.f32.mrb[41].mxu0 }
 0x23f   : > { %1128 = vst [vmem:[#allocation2 + $0x98] sm:$0xff] %v4375_v7  ;;  %v867_v25 = vadd.f32 %v4050_v38, %v866_v60  ;;  %v1894_v39 = vmul.f32 %v4082_v37, %v4382_v31  ;;  %v1925_v16 = vadd.f32 %v1893_v41, %v1724_v20  ;;  %v4392_v42 = vld [vmem:[#allocation2 + $0x82] sm:$0xff]  ;;  %1155 = vst [vmem:[#allocation2 + $0x170] sm:$0xff] %v1101_v34  ;;  %v869_v29 = vpop.f32.mrb[42].mxu0 }
 0x240   : > { %v2025_v26 = vadd.f32 %v1993_v19, %v1825_v52  ;;  %v2159_v0 = vmin.f32 %v2127_v18, 6.0  ;;  %v1994_v17 = vmul.f32 %v4085_v43, %v4392_v42  ;;  %1156 = vst [vmem:[#allocation2 + $0x178] sm:$0xff] %v1102_v57  ;;  %v1394_v55 = vmul.f32 %v4338_v47, %v4058_v8  ;;  %v2908_v56 = vpop.f32.mrb[43].mxu0 }
 0x241   : > { %v1425_v53 = vadd.f32 %v1393_v54, %v1257_v12  ;;  %v1021_v45 = vmax.f32 %v867_v25, 0.0  ;;  %v870_v4 = vadd.f32 %v4050_v38, %v869_v29  ;;  %v1926_v24 = vadd.f32 %v1894_v39, %v1725_v40  ;;  %1196 = vst [vmem:[#allocation2 + $0x179] sm:$0x1] %v4300_v9 }
 0x242   : > { %v2057_v20 = vadd.f32 %v2025_v26, %v1925_v16  ;;  %v2188_v52 = vpack.c.bf16 %v2159_v0, %v2158_v23  ;;  %v2026_v27 = vadd.f32 %v1994_v17, %v1826_v58  ;;  %v1426_v41 = vadd.f32 %v1394_v55, %v1258_v22 }
 0x243   : > { %v1494_v19 = vmul.f32 %v4353_v30, %v4072_v28  ;;  %v1075_v34 = vmin.f32 %v1021_v45, 6.0  ;;  %v1022_v60 = vmax.f32 %v870_v4, 0.0  ;;  %v1495_v47 = vmul.f32 %v4072_v28, %v4328_v49 }
 0x244   : > { %v2096_v18 = vadd.f32 %v4216_v3, %v2057_v20  ;;  %2993 = vmatprep.mubr.bf16.mxu1 %v2188_v52  ;;  %v2058_v12 = vadd.f32 %v2026_v27, %v1926_v24  ;;  %v1594_v40 = vmul.f32 %v4367_v61, %v4076_v33  ;;  %v1595_v58 = vmul.f32 %v4382_v31, %v4076_v33 }
 0x245   : > { %v1526_v57 = vadd.f32 %v1494_v19, %v1325_v5  ;;  %1129 = vst [vmem:[#allocation2 + $0xa0] sm:$0xff] %v1075_v34  ;;  %v1076_v23 = vmin.f32 %v1022_v60, 6.0  ;;  %v1527_v54 = vadd.f32 %v1495_v47, %v1326_v44  ;;  %v1694_v25 = vmul.f32 %v4369_v10, %v4078_v35  ;;  %v4411_v59 = vld [vmem:[#allocation2 + $0x90] sm:$0xff]  ;;  %v874_v39 = vpop.f32.mrb[44].mxu0 }
 0x246   : > { %v2128_v22 = vmax.f32 %v2096_v18, 0.0  ;;  %1187 = vst [vmem:[#allocation2 + $0xa1] sm:$0x1] %v4300_v9  ;;  %v2097_v5 = vadd.f32 %v4216_v3, %v2058_v12  ;;  %v1626_v16 = vadd.f32 %v1594_v40, %v1425_v53  ;;  %v1627_v26 = vadd.f32 %v1595_v58, %v1426_v41  ;;  %v4417_v0 = vld [vmem:[#allocation2 + $0x91] sm:$0xff]  ;;  %v2911_v55 = vpop.f32.mrb[45].mxu0 }
 0x247   : > { %v1695_v29 = vmul.f32 %v4392_v42, %v4078_v35  ;;  %v4419_v17 = vld [vmem:[#allocation2 + $0x92] sm:$0xff]  ;;  %1130 = vst [vmem:[#allocation2 + $0xa8] sm:$0xff] %v1076_v23  ;;  %v875_v44 = vadd.f32 %v4050_v38, %v874_v39  ;;  %v1726_v4 = vadd.f32 %v1694_v25, %v1526_v57  ;;  %v1795_v56 = vmul.f32 %v4080_v36, %v4411_v59  ;;  %v877_v53 = vpop.f32.mrb[46].mxu0  ;;  %v4432_v40 = vld [vmem:[#allocation8] ss:$0 sm:$0xff] }
 0x248   : > { %v2160_v45 = vmin.f32 %v2128_v22, 6.0  ;;  %1170 = vst [vmem:[#allocation2 + $0xa8] sm:$0x1] %v4300_v9  ;;  %v2129_v24 = vmax.f32 %v2097_v5, 0.0  ;;  %v1796_v52 = vmul.f32 %v4080_v36, %v4375_v7  ;;  %v1895_v27 = vmul.f32 %v4082_v37, %v4417_v0  ;;  %v2912_v34 = vpop.f32.mrb[47].mxu0 }
 0x249   : > { %v1727_v20 = vadd.f32 %v1695_v29, %v1527_v54  ;;  %v1023_v41 = vmax.f32 %v875_v44, 0.0  ;;  %v878_v19 = vadd.f32 %v4050_v38, %v877_v53  ;;  %v1827_v60 = vadd.f32 %v1795_v56, %v1626_v16 }
 0x24a   : > { %v1995_v18 = vmul.f32 %v4085_v43, %v4419_v17  ;;  %v2161_v47 = vmin.f32 %v2129_v24, 6.0  ;;  %v1828_v12 = vadd.f32 %v1796_v52, %v1627_v26  ;;  %v1927_v57 = vadd.f32 %v1895_v27, %v1726_v4 }
 0x24b   : > { %v979_v58 = vadd.f32 %v4432_v40, %v4264_v6  ;;  %v4436_v23 = vmin.f32 %v1023_v41, 6.0  ;;  %v1024_v22 = vmax.f32 %v878_v19, 0.0  ;;  %v982_v38 = vadd.f32 %v4432_v40, %v4276_v51 }
 0x24c   : > { %v2027_v54 = vadd.f32 %v1995_v18, %v1827_v60  ;;  %v2189_v25 = vpack.c.bf16 %v2161_v47, %v2160_v45  ;;  %v4440_v39 = vld [vmem:[#allocation2 + $0x99] sm:$0xff]  ;;  %v1259_v16 = vmul.f32 %v4353_v30, %v4063_v15  ;;  %v1260_v26 = vmul.f32 %v4063_v15, %v4328_v49 }
 0x24d   : > { %v1049_v5 = vmax.f32 %v979_v58, 0.0  ;;  %1131 = vst [vmem:[#allocation2 + $0xb0] sm:$0xff] %v4436_v23  ;;  %v1078_v6 = vmin.f32 %v1024_v22, 6.0  ;;  %v1896_v29 = vmul.f32 %v4082_v37, %v4440_v39  ;;  %v4449_v44 = vld [vmem:[#allocation2 + $0x9a] sm:$0xff]  ;;  %v1050_v51 = vmax.f32 %v982_v38, 0.0  ;;  %v882_v45 = vpop.f32.mrb[48].mxu0 }
 0x24e   : > { %v2059_v55 = vadd.f32 %v2027_v54, %v1927_v57  ;;  %2994 = vmatmul.mubr.bf16.gmra.mrb[40].mxu1 %v2189_v25  ;;  %v1996_v4 = vmul.f32 %v4085_v43, %v4449_v44  ;;  %v1327_v30 = vmul.f32 %v4367_v61, %v4067_v21  ;;  %v1328_v49 = vmul.f32 %v4382_v31, %v4067_v21  ;;  %v2915_v24 = vpop.f32.mrb[49].mxu0 }
 0x24f   : > { %v1103_v56 = vmin.f32 %v1049_v5, 6.0  ;;  %1132 = vst [vmem:[#allocation2 + $0xb8] sm:$0xff] %v1078_v6  ;;  %v883_v53 = vadd.f32 %v4432_v40, %v882_v45  ;;  %v1928_v52 = vadd.f32 %v1896_v29, %v1727_v20  ;;  %v1104_v41 = vmin.f32 %v1050_v51, 6.0  ;;  %v885_v19 = vpop.f32.mrb[50].mxu0  ;;  %v4470_v38 = vld [vmem:[#allocation2 + $0xa8] sm:$0xff] }
 0x250   : > { %v2098_v27 = vadd.f32 %v4216_v3, %v2059_v55  ;;  %1188 = vst [vmem:[#allocation2 + $0xb9] sm:$0x1] %v4300_v9  ;;  %v2028_v34 = vadd.f32 %v1996_v4, %v1828_v12  ;;  %v1395_v60 = vmul.f32 %v4369_v10, %v4058_v8  ;;  %v1396_v61 = vmul.f32 %v4392_v42, %v4058_v8  ;;  %v2916_v47 = vpop.f32.mrb[51].mxu0 }
 0x251   : > { %1157 = vst [vmem:[#allocation2 + $0x180] sm:$0xff] %v1103_v56  ;;  %v1496_v31 = vmul.f32 %v4411_v59, %v4072_v28  ;;  %v1025_v18 = vmax.f32 %v883_v53, 0.0  ;;  %v886_v20 = vadd.f32 %v4432_v40, %v885_v19  ;;  %1158 = vst [vmem:[#allocation2 + $0x188] sm:$0xff] %v1104_v41  ;;  %v1497_v12 = vmul.f32 %v4072_v28, %v4375_v7 }
 0x252   : > { %v2130_v57 = vmax.f32 %v2098_v27, 0.0  ;;  %1179 = vst [vmem:[#allocation2 + $0x180] sm:$0x1] %v4300_v9  ;;  %v2060_v58 = vadd.f32 %v2028_v34, %v1928_v52  ;;  %v1427_v22 = vadd.f32 %v1395_v60, %v1259_v16  ;;  %v1428_v10 = vadd.f32 %v1396_v61, %v1260_v26 }
 0x253   : > { %v1528_v54 = vadd.f32 %v1496_v31, %v1327_v30  ;;  %v1079_v42 = vmin.f32 %v1025_v18, 6.0  ;;  %v1026_v25 = vmax.f32 %v886_v20, 0.0  ;;  %v1529_v6 = vadd.f32 %v1497_v12, %v1328_v49 }
 0x254   : > { %v2162_v5 = vmin.f32 %v2130_v57, 6.0  ;;  %v2099_v29 = vadd.f32 %v4216_v3, %v2060_v58  ;;  %v1596_v55 = vmul.f32 %v4417_v0, %v4076_v33  ;;  %v1597_v51 = vmul.f32 %v4440_v39, %v4076_v33  ;;  %v4479_v16 = vld [vmem:[#allocation2 + $0xa9] sm:$0xff] }
 0x255   : > { %v1696_v45 = vmul.f32 %v4419_v17, %v4078_v35  ;;  %1133 = vst [vmem:[#allocation2 + $0xc0] sm:$0xff] %v1079_v42  ;;  %v4481_v26 = vmin.f32 %v1026_v25, 6.0  ;;  %v1697_v4 = vmul.f32 %v4449_v44, %v4078_v35  ;;  %v1797_v56 = vmul.f32 %v4080_v36, %v4470_v38  ;;  %v4489_v49 = vld [vmem:[#allocation2 + $0xaa] sm:$0xff]  ;;  %v890_v53 = vpop.f32.mrb[52].mxu0 }
 0x256   : > { %v1798_v30 = vmul.f32 %v4080_v36, %v4436_v23  ;;  %1171 = vst [vmem:[#allocation2 + $0xc0] sm:$0x1] %v4300_v9  ;;  %v2131_v24 = vmax.f32 %v2099_v29, 0.0  ;;  %v1628_v52 = vadd.f32 %v1596_v55, %v1427_v22  ;;  %v1629_v27 = vadd.f32 %v1597_v51, %v1428_v10  ;;  %v4492_v19 = vld [vmem:[#allocation2 + $0xb1] sm:$0xff]  ;;  %v2919_v60 = vpop.f32.mrb[53].mxu0 }
 0x257   : > { %v1728_v41 = vadd.f32 %v1696_v45, %v1528_v54  ;;  %1134 = vst [vmem:[#allocation2 + $0xc8] sm:$0xff] %v4481_v26  ;;  %v891_v34 = vadd.f32 %v4432_v40, %v890_v53  ;;  %v1729_v61 = vadd.f32 %v1697_v4, %v1529_v6  ;;  %v1897_v31 = vmul.f32 %v4082_v37, %v4479_v16  ;;  %v4500_v20 = vld [vmem:[#allocation2 + $0xb2] sm:$0xff]  ;;  %v893_v47 = vpop.f32.mrb[54].mxu0 }
 0x258   : > { %v1898_v18 = vmul.f32 %v4082_v37, %v4492_v19  ;;  %v2163_v57 = vmin.f32 %v2131_v24, 6.0  ;;  %v1829_v12 = vadd.f32 %v1797_v56, %v1628_v52  ;;  %v1830_v58 = vadd.f32 %v1798_v30, %v1629_v27  ;;  %v2920_v42 = vpop.f32.mrb[55].mxu0 }
 0x259   : > { %v1997_v22 = vmul.f32 %v4085_v43, %v4489_v49  ;;  %v1027_v10 = vmax.f32 %v891_v34, 0.0  ;;  %v894_v54 = vadd.f32 %v4432_v40, %v893_v47  ;;  %v1929_v25 = vadd.f32 %v1897_v31, %v1728_v41 }
 0x25a   : > { %v1930_v6 = vadd.f32 %v1898_v18, %v1729_v61  ;;  %v2190_v29 = vpack.c.bf16 %v2163_v57, %v2162_v5  ;;  %v1998_v55 = vmul.f32 %v4085_v43, %v4500_v20  ;;  %v987_v45 = vadd.f32 %v4432_v40, %v4294_v13 }
 0x25b   : > { %v2029_v51 = vadd.f32 %v1997_v22, %v1829_v12  ;;  %v1081_v4 = vmin.f32 %v1027_v10, 6.0  ;;  %v1028_v56 = vmax.f32 %v894_v54, 0.0  ;;  %v990_v30 = vadd.f32 %v4432_v40, %v4312_v11 }
 0x25c   : > { %v998_v53 = vadd.f32 %v4432_v40, %v4349_v14  ;;  %2997 = vmatprep.mubr.bf16.mxu1 %v2190_v29  ;;  %v2030_v24 = vadd.f32 %v1998_v55, %v1830_v58  ;;  %v1051_v27 = vmax.f32 %v987_v45, 0.0  ;;  %v1261_v5 = vmul.f32 %v4411_v59, %v4063_v15 }
 0x25d   : > { %v2061_v52 = vadd.f32 %v2029_v51, %v1929_v25  ;;  %1135 = vst [vmem:[#allocation2 + $0xd0] sm:$0xff] %v1081_v4  ;;  %v1082_v41 = vmin.f32 %v1028_v56, 6.0  ;;  %v1052_v34 = vmax.f32 %v990_v30, 0.0  ;;  %v1262_v13 = vmul.f32 %v4063_v15, %v4375_v7  ;;  %v898_v11 = vpop.f32.mrb[56].mxu0  ;;  %v4537_v45 = vld [vmem:[#allocation2 + $0xc0] sm:$0xff] }
 0x25e   : > { %v1054_v60 = vmax.f32 %v998_v53, 0.0  ;;  %1189 = vst [vmem:[#allocation2 + $0xd1] sm:$0x1] %v4300_v9  ;;  %v2062_v61 = vadd.f32 %v2030_v24, %v1930_v6  ;;  %v1105_v31 = vmin.f32 %v1051_v27, 6.0  ;;  %v1329_v18 = vmul.f32 %v4417_v0, %v4067_v21  ;;  %v2923_v47 = vpop.f32.mrb[57].mxu0 }
 0x25f   : > { %v2100_v14 = vadd.f32 %v4216_v3, %v2061_v52  ;;  %1136 = vst [vmem:[#allocation2 + $0xd8] sm:$0xff] %v1082_v41  ;;  %v899_v59 = vadd.f32 %v4432_v40, %v898_v11  ;;  %v1106_v57 = vmin.f32 %v1052_v34, 6.0  ;;  %v1330_v58 = vmul.f32 %v4440_v39, %v4067_v21  ;;  %v901_v7 = vpop.f32.mrb[58].mxu0  ;;  %v4549_v41 = vld [vmem:[#allocation2 + $0xc1] sm:$0xff] }
 0x260   : > { %v1108_v12 = vmin.f32 %v1054_v60, 6.0  ;;  %1172 = vst [vmem:[#allocation2 + $0xd8] sm:$0x1] %v4300_v9  ;;  %v2101_v22 = vadd.f32 %v4216_v3, %v2062_v61  ;;  %1159 = vst [vmem:[#allocation2 + $0x190] sm:$0xff] %v1105_v31  ;;  %v1397_v54 = vmul.f32 %v4419_v17, %v4058_v8  ;;  %v1398_v0 = vmul.f32 %v4449_v44, %v4058_v8  ;;  %v2924_v6 = vpop.f32.mrb[59].mxu0 }
 0x261   : > { %v2132_v10 = vmax.f32 %v2100_v14, 0.0  ;;  %v1029_v42 = vmax.f32 %v899_v59, 0.0  ;;  %v902_v25 = vadd.f32 %v4432_v40, %v901_v7  ;;  %1197 = vst [vmem:[#allocation2 + $0x191] sm:$0x1] %v4300_v9  ;;  %1160 = vst [vmem:[#allocation2 + $0x198] sm:$0xff] %v1106_v57  ;;  %v1498_v39 = vmul.f32 %v4470_v38, %v4072_v28  ;;  %v4560_v14 = vld [vmem:[#allocation2 + $0xc2] sm:$0xff] }
 0x262   : > { %1162 = vst [vmem:[#allocation2 + $0x1a8] sm:$0xff] %v1108_v12  ;;  %v1499_v29 = vmul.f32 %v4072_v28, %v4436_v23  ;;  %v2133_v55 = vmax.f32 %v2101_v22, 0.0  ;;  %v1429_v17 = vadd.f32 %v1397_v54, %v1261_v5  ;;  %v1430_v44 = vadd.f32 %v1398_v0, %v1262_v13  ;;  %1207 = vst [vmem:[#allocation2 + $0x198] sm:$0xff] %v4300_v9 }
 0x263   : > { %v2164_v51 = vmin.f32 %v2132_v10, 6.0  ;;  %1198 = vst [vmem:[#allocation2 + $0x1a9] sm:$0x1] %v4300_v9  ;;  %v4539_v4 = vmin.f32 %v1029_v42, 6.0  ;;  %v1030_v56 = vmax.f32 %v902_v25, 0.0  ;;  %v1530_v30 = vadd.f32 %v1498_v39, %v1329_v18 }
 0x264   : > { %1209 = vst [vmem:[#allocation2 + $0x1a8] sm:$0xff] %v4300_v9  ;;  %v1531_v53 = vadd.f32 %v1499_v29, %v1330_v58  ;;  %v2165_v24 = vmin.f32 %v2133_v55, 6.0  ;;  %v1598_v52 = vmul.f32 %v4479_v16, %v4076_v33  ;;  %v1599_v27 = vmul.f32 %v4492_v19, %v4076_v33  ;;  %v4551_v34 = vld [vmem:[#allocation2 + $0xc9] sm:$0xff] }
 0x265   : > { %v1698_v5 = vmul.f32 %v4489_v49, %v4078_v35  ;;  %1137 = vst [vmem:[#allocation2 + $0xe0] sm:$0xff] %v4539_v4  ;;  %v1084_v60 = vmin.f32 %v1030_v56, 6.0  ;;  %v1699_v13 = vmul.f32 %v4500_v20, %v4078_v35  ;;  %v1799_v11 = vmul.f32 %v4080_v36, %v4537_v45  ;;  %v4562_v31 = vld [vmem:[#allocation2 + $0xca] sm:$0xff]  ;;  %v906_v18 = vpop.f32.mrb[60].mxu0 }
 0x266   : > { %v1800_v61 = vmul.f32 %v4080_v36, %v4481_v26  ;;  %v2191_v59 = vpack.c.bf16 %v2165_v24, %v2164_v51  ;;  %v1630_v47 = vadd.f32 %v1598_v52, %v1429_v17  ;;  %v1631_v57 = vadd.f32 %v1599_v27, %v1430_v44  ;;  %v2927_v7 = vpop.f32.mrb[61].mxu0 }
 0x267   : > { %v1730_v12 = vadd.f32 %v1698_v5, %v1530_v30  ;;  %1138 = vst [vmem:[#allocation2 + $0xe8] sm:$0xff] %v1084_v60  ;;  %v907_v58 = vadd.f32 %v4432_v40, %v906_v18  ;;  %v1731_v22 = vadd.f32 %v1699_v13, %v1531_v53  ;;  %v1899_v10 = vmul.f32 %v4082_v37, %v4549_v41  ;;  %v909_v0 = vpop.f32.mrb[62].mxu0 }
 0x268   : > { %v1900_v54 = vmul.f32 %v4082_v37, %v4551_v34  ;;  %1190 = vst [vmem:[#allocation2 + $0xe9] sm:$0x1] %v4300_v9  ;;  %2998 = vmatmul.mubr.bf16.gmra.mrb[44].mxu1 %v2191_v59  ;;  %v1831_v42 = vadd.f32 %v1799_v11, %v1630_v47  ;;  %v1832_v25 = vadd.f32 %v1800_v61, %v1631_v57  ;;  %v2928_v51 = vpop.f32.mrb[63].mxu0 }
 0x269   : > { %v1999_v6 = vmul.f32 %v4085_v43, %v4560_v14  ;;  %v2000_v39 = vmul.f32 %v4085_v43, %v4562_v31  ;;  %v1031_v29 = vmax.f32 %v907_v58, 0.0  ;;  %v910_v55 = vadd.f32 %v4432_v40, %v909_v0 }
 0x26a   : > { %v1931_v17 = vadd.f32 %v1899_v10, %v1730_v12  ;;  %v1932_v44 = vadd.f32 %v1900_v54, %v1731_v22  ;;  %v1263_v53 = vmul.f32 %v4470_v38, %v4063_v15  ;;  %v1264_v24 = vmul.f32 %v4063_v15, %v4436_v23  ;;  %v4602_v54 = vld [vmem:[#allocation2 + $0xd8] sm:$0xff] }
 0x26b   : > { %v2031_v56 = vadd.f32 %v1999_v6, %v1831_v42  ;;  %v2032_v30 = vadd.f32 %v2000_v39, %v1832_v25  ;;  %v1085_v52 = vmin.f32 %v1031_v29, 6.0  ;;  %v1032_v27 = vmax.f32 %v910_v55, 0.0 }
 0x26c   : > { %v1331_v5 = vmul.f32 %v4479_v16, %v4067_v21  ;;  %v1332_v60 = vmul.f32 %v4492_v19, %v4067_v21  ;;  %v1399_v61 = vmul.f32 %v4489_v49, %v4058_v8  ;;  %v1400_v18 = vmul.f32 %v4500_v20, %v4058_v8 }
 0x26d   : > { %v2063_v13 = vadd.f32 %v2031_v56, %v1931_v17  ;;  %v2064_v11 = vadd.f32 %v2032_v30, %v1932_v44  ;;  %1139 = vst [vmem:[#allocation2 + $0xf0] sm:$0xff] %v1085_v52  ;;  %v4587_v38 = vmin.f32 %v1032_v27, 6.0  ;;  %v1500_v23 = vmul.f32 %v4537_v45, %v4072_v28  ;;  %v914_v59 = vpop.f32.mrb[64].mxu0  ;;  %v4609_v44 = vld [vmem:[#allocation2 + $0xd9] sm:$0xff] }
 0x26e   : > { %v1501_v16 = vmul.f32 %v4072_v28, %v4481_v26  ;;  %v1600_v19 = vmul.f32 %v4549_v41, %v4076_v33  ;;  %1173 = vst [vmem:[#allocation2 + $0xf0] sm:$0x1] %v4300_v9  ;;  %v1431_v20 = vadd.f32 %v1399_v61, %v1263_v53  ;;  %v1432_v57 = vadd.f32 %v1400_v18, %v1264_v24  ;;  %v2931_v58 = vpop.f32.mrb[65].mxu0  ;;  %v4611_v56 = vld [vmem:[#allocation2 + $0xe1] sm:$0xff] }
 0x26f   : > { %v2102_v49 = vadd.f32 %v4216_v3, %v2063_v13  ;;  %v2103_v47 = vadd.f32 %v4216_v3, %v2064_v11  ;;  %1140 = vst [vmem:[#allocation2 + $0xf8] sm:$0xff] %v4587_v38  ;;  %v915_v12 = vadd.f32 %v4432_v40, %v914_v59  ;;  %v1532_v7 = vadd.f32 %v1500_v23, %v1331_v5  ;;  %v917_v0 = vpop.f32.mrb[66].mxu0  ;;  %v4615_v27 = vld [vmem:[#allocation2 + $0xda] sm:$0xff]  ;;  %v4617_v5 = vld [vmem:[#allocation2 + $0xe2] sm:$0xff] }
 0x270   : > { %v1533_v22 = vadd.f32 %v1501_v16, %v1332_v60  ;;  %v1601_v10 = vmul.f32 %v4551_v34, %v4076_v33  ;;  %v1632_v6 = vadd.f32 %v1600_v19, %v1431_v20  ;;  %v1700_v3 = vmul.f32 %v4560_v14, %v4078_v35  ;;  %v2932_v55 = vpop.f32.mrb[67].mxu0 }
 0x271   : > { %v2134_v42 = vmax.f32 %v2102_v49, 0.0  ;;  %v2135_v25 = vmax.f32 %v2103_v47, 0.0  ;;  %v1033_v39 = vmax.f32 %v915_v12, 0.0  ;;  %v918_v29 = vadd.f32 %v4432_v40, %v917_v0 }
 0x272   : > { %v1633_v51 = vadd.f32 %v1601_v10, %v1432_v57  ;;  %v1701_v17 = vmul.f32 %v4562_v31, %v4078_v35  ;;  %v1732_v24 = vadd.f32 %v1700_v3, %v1532_v7  ;;  %v1801_v52 = vmul.f32 %v4080_v36, %v4602_v54 }
 0x273   : > { %v2166_v30 = vmin.f32 %v2134_v42, 6.0  ;;  %v2167_v53 = vmin.f32 %v2135_v25, 6.0  ;;  %v1087_v60 = vmin.f32 %v1033_v39, 6.0  ;;  %v1034_v13 = vmax.f32 %v918_v29, 0.0 }
 0x274   : > { %v1733_v11 = vadd.f32 %v1701_v17, %v1533_v22  ;;  %v1802_v61 = vmul.f32 %v4080_v36, %v4539_v4  ;;  %v1833_v23 = vadd.f32 %v1801_v52, %v1632_v6  ;;  %v1901_v16 = vmul.f32 %v4082_v37, %v4609_v44 }
 0x275   : > { %v2192_v18 = vpack.c.bf16 %v2167_v53, %v2166_v30  ;;  %v1902_v19 = vmul.f32 %v4082_v37, %v4611_v56  ;;  %1141 = vst [vmem:[#allocation2 + $0x100] sm:$0xff] %v1087_v60  ;;  %v1088_v59 = vmin.f32 %v1034_v13, 6.0  ;;  %v2001_v47 = vmul.f32 %v4085_v43, %v4615_v27  ;;  %v922_v57 = vpop.f32.mrb[68].mxu0  ;;  %v4651_v13 = vld [vmem:[#allocation11] ss:$0 sm:$0xff] }
 0x276   : > { %v1834_v49 = vadd.f32 %v1802_v61, %v1633_v51  ;;  %v2002_v20 = vmul.f32 %v4085_v43, %v4617_v5  ;;  %1191 = vst [vmem:[#allocation2 + $0x101] sm:$0x1] %v4300_v9  ;;  %v1933_v12 = vadd.f32 %v1901_v16, %v1732_v24  ;;  %v1265_v7 = vmul.f32 %v4537_v45, %v4063_v15  ;;  %v2935_v0 = vpop.f32.mrb[69].mxu0  ;;  %v4655_v61 = vld [vmem:[#allocation2 + $0xf0] sm:$0xff] }
 0x277   : > { %3001 = vmatprep.mubr.bf16.mxu1 %v2192_v18  ;;  %v1934_v58 = vadd.f32 %v1902_v19, %v1733_v11  ;;  %v1266_v22 = vmul.f32 %v4063_v15, %v4481_v26  ;;  %1142 = vst [vmem:[#allocation2 + $0x108] sm:$0xff] %v1088_v59  ;;  %v923_v10 = vadd.f32 %v4432_v40, %v922_v57  ;;  %v925_v3 = vpop.f32.mrb[70].mxu0 }
 0x278   : > { %v2033_v42 = vadd.f32 %v2001_v47, %v1833_v23  ;;  %v2034_v25 = vadd.f32 %v2002_v20, %v1834_v49  ;;  %v1333_v6 = vmul.f32 %v4549_v41, %v4067_v21  ;;  %1174 = vst [vmem:[#allocation2 + $0x108] sm:$0x1] %v4300_v9  ;;  %v1334_v39 = vmul.f32 %v4551_v34, %v4067_v21  ;;  %v2936_v17 = vpop.f32.mrb[71].mxu0  ;;  %v4666_v20 = vld [vmem:[#allocation2 + $0xf1] sm:$0xff] }
 0x279   : > { %v1401_v45 = vmul.f32 %v4560_v14, %v4058_v8  ;;  %v1402_v26 = vmul.f32 %v4562_v31, %v4058_v8  ;;  %v1502_v29 = vmul.f32 %v4602_v54, %v4072_v28  ;;  %v1035_v55 = vmax.f32 %v923_v10, 0.0 }
 0x27a   : > { %v926_v51 = vadd.f32 %v4432_v40, %v925_v3  ;;  %v2065_v41 = vadd.f32 %v2033_v42, %v1933_v12  ;;  %v2066_v30 = vadd.f32 %v2034_v25, %v1934_v58  ;;  %v1503_v34 = vmul.f32 %v4072_v28, %v4539_v4  ;;  %v4670_v12 = vld [vmem:[#allocation2 + $0xf2] sm:$0xff] }
 0x27b   : > { %v1433_v53 = vadd.f32 %v1401_v45, %v1265_v7  ;;  %v1434_v24 = vadd.f32 %v1402_v26, %v1266_v22  ;;  %v1534_v52 = vadd.f32 %v1502_v29, %v1333_v6  ;;  %v4649_v60 = vmin.f32 %v1035_v55, 6.0 }
 0x27c   : > { %v1036_v14 = vmax.f32 %v926_v51, 0.0  ;;  %v2104_v31 = vadd.f32 %v4651_v13, %v2065_v41  ;;  %v2105_v11 = vadd.f32 %v4651_v13, %v2066_v30  ;;  %v1535_v40 = vadd.f32 %v1503_v34, %v1334_v39  ;;  %v4668_v57 = vld [vmem:[#allocation2 + $0xf9] sm:$0xff] }
 0x27d   : > { %v1602_v18 = vmul.f32 %v4609_v44, %v4076_v33  ;;  %v1603_v23 = vmul.f32 %v4611_v56, %v4076_v33  ;;  %v1702_v16 = vmul.f32 %v4615_v27, %v4078_v35  ;;  %1143 = vst [vmem:[#allocation2 + $0x110] sm:$0xff] %v4649_v60  ;;  %v1703_v47 = vmul.f32 %v4617_v5, %v4078_v35  ;;  %v4674_v0 = vld [vmem:[#allocation2 + $0xfa] sm:$0xff] }
 0x27e   : > { %v1090_v19 = vmin.f32 %v1036_v14, 6.0  ;;  %v2136_v59 = vmax.f32 %v2104_v31, 0.0  ;;  %v2137_v49 = vmax.f32 %v2105_v11, 0.0  ;;  %v1803_v10 = vmul.f32 %v4080_v36, %v4655_v61 }
 0x27f   : > { %v1634_v58 = vadd.f32 %v1602_v18, %v1433_v53  ;;  %v1635_v7 = vadd.f32 %v1603_v23, %v1434_v24  ;;  %v1734_v22 = vadd.f32 %v1702_v16, %v1534_v52  ;;  %v1735_v6 = vadd.f32 %v1703_v47, %v1535_v40  ;;  %v1769_v16 = vld [vmem:[#allocation2 + $0x108] sm:$0xff] }
 0x280   : > { %1144 = vst [vmem:[#allocation2 + $0x118] sm:$0xff] %v1090_v19  ;;  %v2168_v42 = vmin.f32 %v2136_v59, 6.0  ;;  %v2169_v25 = vmin.f32 %v2137_v49, 6.0  ;;  %v1804_v3 = vmul.f32 %v4080_v36, %v4587_v38  ;;  %v1903_v45 = vmul.f32 %v4082_v37, %v4666_v20 }
 0x281   : > { %1192 = vst [vmem:[#allocation2 + $0x119] sm:$0x1] %v4300_v9  ;;  %v1835_v39 = vadd.f32 %v1803_v10, %v1634_v58  ;;  %v1904_v26 = vmul.f32 %v4082_v37, %v4668_v57  ;;  %v2003_v29 = vmul.f32 %v4085_v43, %v4670_v12  ;;  %v2004_v17 = vmul.f32 %v4085_v43, %v4674_v0 }
 0x282   : > { %v2193_v55 = vpack.c.bf16 %v2169_v25, %v2168_v42  ;;  %v1836_v51 = vadd.f32 %v1804_v3, %v1635_v7  ;;  %v1267_v41 = vmul.f32 %v4602_v54, %v4063_v15  ;;  %v1935_v30 = vadd.f32 %v1903_v45, %v1734_v22 }
 0x283   : > { %v1936_v9 = vadd.f32 %v1904_v26, %v1735_v6  ;;  %v2035_v53 = vadd.f32 %v2003_v29, %v1835_v39  ;;  %v1268_v24 = vmul.f32 %v4063_v15, %v4539_v4  ;;  %v1335_v52 = vmul.f32 %v4609_v44, %v4067_v21 }
 0x284   : > { %3002 = vmatmul.mubr.bf16.gmra.mrb[48].mxu1 %v2193_v55  ;;  %v2036_v34 = vadd.f32 %v2004_v17, %v1836_v51  ;;  %v1336_v14 = vmul.f32 %v4611_v56, %v4067_v21  ;;  %v1403_v31 = vmul.f32 %v4615_v27, %v4058_v8  ;;  %v1404_v54 = vmul.f32 %v4617_v5, %v4058_v8  ;;  %v1869_v49 = vld [vmem:[#allocation2 + $0x109] sm:$0xff] }
 0x285   : > { %v2067_v11 = vadd.f32 %v2035_v53, %v1935_v30  ;;  %v1504_v40 = vmul.f32 %v4655_v61, %v4072_v28  ;;  %v1505_v4 = vmul.f32 %v4072_v28, %v4587_v38  ;;  %v1604_v44 = vmul.f32 %v4666_v20, %v4076_v33  ;;  %v1969_v39 = vld [vmem:[#allocation2 + $0x10a] sm:$0xff] }
 0x286   : > { %v2068_v18 = vadd.f32 %v2036_v34, %v1936_v9  ;;  %v1435_v23 = vadd.f32 %v1403_v31, %v1267_v41  ;;  %v1605_v56 = vmul.f32 %v4668_v57, %v4076_v33  ;;  %v1436_v19 = vadd.f32 %v1404_v54, %v1268_v24 }
 0x287   : > { %v2106_v27 = vadd.f32 %v4651_v13, %v2067_v11  ;;  %v1536_v59 = vadd.f32 %v1504_v40, %v1335_v52  ;;  %v1537_v5 = vadd.f32 %v1505_v4, %v1336_v14  ;;  %v1704_v7 = vmul.f32 %v4670_v12, %v4078_v35  ;;  %v1870_v10 = vld [vmem:[#allocation2 + $0x111] sm:$0xff] }
 0x288   : > { %v2107_v47 = vadd.f32 %v4651_v13, %v2068_v18  ;;  %v1636_v58 = vadd.f32 %v1604_v44, %v1435_v23  ;;  %v1705_v22 = vmul.f32 %v4674_v0, %v4078_v35  ;;  %v1637_v25 = vadd.f32 %v1605_v56, %v1436_v19  ;;  %v1970_v45 = vld [vmem:[#allocation2 + $0x112] sm:$0xff] }
 0x289   : > { %v2138_v42 = vmax.f32 %v2106_v27, 0.0  ;;  %v1805_v6 = vmul.f32 %v4080_v36, %v1769_v16  ;;  %v1806_v3 = vmul.f32 %v4080_v36, %v4649_v60  ;;  %v1736_v29 = vadd.f32 %v1704_v7, %v1536_v59 }
 0x28a   : > { %v2139_v26 = vmax.f32 %v2107_v47, 0.0  ;;  %v1737_v55 = vadd.f32 %v1705_v22, %v1537_v5  ;;  %v1905_v51 = vmul.f32 %v4082_v37, %v1869_v49  ;;  %v1906_v9 = vmul.f32 %v4082_v37, %v1870_v10 }
 0x28b   : > { %v2170_v17 = vmin.f32 %v2138_v42, 6.0  ;;  %v1837_v41 = vadd.f32 %v1805_v6, %v1636_v58  ;;  %v1838_v30 = vadd.f32 %v1806_v3, %v1637_v25  ;;  %v2005_v34 = vmul.f32 %v4085_v43, %v1969_v39 }
 0x28c   : > { %v2171_v53 = vmin.f32 %v2139_v26, 6.0  ;;  %v1937_v24 = vadd.f32 %v1905_v51, %v1736_v29  ;;  %v2006_v52 = vmul.f32 %v4085_v43, %v1970_v45  ;;  %v1938_v14 = vadd.f32 %v1906_v9, %v1737_v55 }
 0x28d   : > { %v1269_v31 = vmul.f32 %v4655_v61, %v4063_v15  ;;  %v1270_v11 = vmul.f32 %v4063_v15, %v4587_v38  ;;  %v1337_v54 = vmul.f32 %v4666_v20, %v4067_v21  ;;  %v2037_v4 = vadd.f32 %v2005_v34, %v1837_v41 }
 0x28e   : > { %v2194_v40 = vpack.c.bf16 %v2171_v53, %v2170_v17  ;;  %v2038_v18 = vadd.f32 %v2006_v52, %v1838_v30  ;;  %v1338_v23 = vmul.f32 %v4668_v57, %v4067_v21  ;;  %v1405_v44 = vmul.f32 %v4670_v12, %v4058_v8 }
 0x28f   : > { %v1406_v56 = vmul.f32 %v4674_v0, %v4058_v8  ;;  %v1506_v61 = vmul.f32 %v1769_v16, %v4072_v28  ;;  %v1507_v38 = vmul.f32 %v4072_v28, %v4649_v60  ;;  %v2069_v27 = vadd.f32 %v2037_v4, %v1937_v24 }
 0x290   : > { %3005 = vmatprep.mubr.bf16.mxu1 %v2194_v40  ;;  %v2070_v20 = vadd.f32 %v2038_v18, %v1938_v14  ;;  %v1606_v19 = vmul.f32 %v1869_v49, %v4076_v33  ;;  %v1607_v59 = vmul.f32 %v1870_v10, %v4076_v33  ;;  %v1437_v5 = vadd.f32 %v1405_v44, %v1269_v31  ;;  %v4754_v31 = vld [vmem:[#allocation2 + $0x142] sm:$0xff] }
 0x291   : > { %v1438_v57 = vadd.f32 %v1406_v56, %v1270_v11  ;;  %v1538_v47 = vadd.f32 %v1506_v61, %v1337_v54  ;;  %v1539_v58 = vadd.f32 %v1507_v38, %v1338_v23  ;;  %v2108_v12 = vadd.f32 %v4651_v13, %v2069_v27  ;;  %v3201_v23 = vld [vmem:[#allocation2 + $0x122] sm:$0xff]  ;;  %v5134_v56 = vld [vmem:[#allocation24_spill] sm:$0xff] }
 0x292   : > { %v2109_v0 = vadd.f32 %v4651_v13, %v2070_v20  ;;  %v1706_v7 = vmul.f32 %v1969_v39, %v4078_v35  ;;  %v1707_v22 = vmul.f32 %v1970_v45, %v4078_v35  ;;  %v1638_v42 = vadd.f32 %v1606_v19, %v1437_v5  ;;  %v5135_v38 = vld [vmem:[#allocation26_spill] sm:$0xff]  ;;  %v5136_v20 = vld [vmem:[#allocation33_spill] sm:$0xff] }
 0x293   : > { %v1639_v25 = vadd.f32 %v1607_v59, %v1438_v57  ;;  %v1271_v6 = vmul.f32 %v1769_v16, %v4063_v15  ;;  %v1272_v3 = vmul.f32 %v4063_v15, %v4649_v60  ;;  %v2140_v26 = vmax.f32 %v2108_v12, 0.0  ;;  %v5137_v59 = vld [vmem:[#allocation34_spill] sm:$0xff] }
 0x294   : > { %v2141_v29 = vmax.f32 %v2109_v0, 0.0  ;;  %v1738_v55 = vadd.f32 %v1706_v7, %v1538_v47  ;;  %v1739_v51 = vadd.f32 %v1707_v22, %v1539_v58  ;;  %v1839_v17 = vadd.f32 %v4091_v48, %v1638_v42  ;;  %v3202_v57 = vld [vmem:[#allocation2 + $0x12a] sm:$0xff]  ;;  %v5138_v58 = vld [vmem:[#allocation28_spill] sm:$0xff] }
 0x295   : > { %v1840_v41 = vadd.f32 %v4104_v62, %v1639_v25  ;;  %v1339_v30 = vmul.f32 %v1869_v49, %v4067_v21  ;;  %v1340_v9 = vmul.f32 %v1870_v10, %v4067_v21  ;;  %v2172_v53 = vmin.f32 %v2140_v26, 6.0  ;;  %v5139_v22 = vld [vmem:[#allocation31_spill] sm:$0xff]  ;;  %v5140_v25 = vld [vmem:[#allocation32_spill] sm:$0xff] }
 0x296   : > { %v2173_v24 = vmin.f32 %v2141_v29, 6.0  ;;  %v1939_v34 = vadd.f32 %v4108_v63, %v1738_v55  ;;  %v1940_v16 = vadd.f32 %v4133_v32, %v1739_v51  ;;  %v2039_v60 = vadd.f32 %v4111_v1, %v1839_v17  ;;  %v3203_v29 = vld [vmem:[#allocation2 + $0x138] sm:$0xff]  ;;  %v3204_v51 = vld [vmem:[#allocation2 + $0x140] sm:$0xff] }
 0x297   : > { %v2040_v52 = vadd.f32 %v4139_v46, %v1840_v41  ;;  %v1407_v14 = vmul.f32 %v1969_v39, %v4058_v8  ;;  %v1408_v48 = vmul.f32 %v1970_v45, %v4058_v8  ;;  %v1540_v49 = vadd.f32 %v4096_v50, %v1339_v30  ;;  %v5132_v46 = vld [vmem:[#allocation25_spill] sm:$0xff]  ;;  %v5133_v39 = vld [vmem:[#allocation27_spill] sm:$0xff] }
 0x298   : > { %v2195_v62 = vpack.c.bf16 %v2173_v24, %v2172_v53  ;;  %v1541_v10 = vadd.f32 %v4114_v2, %v1340_v9  ;;  %v2010_v63 = vmul.f32 %v4085_v43, %v4754_v31  ;;  %v2071_v11 = vadd.f32 %v2039_v60, %v1939_v34  ;;  %v3200_v45 = vld [vmem:[#allocation2 + $0x129] sm:$0xff]  ;;  %v3205_v41 = vld [vmem:[#allocation2 + $0x139] sm:$0xff] }
 0x299   : > { %v2072_v32 = vadd.f32 %v2040_v52, %v1940_v16  ;;  %v1439_v54 = vadd.f32 %v1407_v14, %v1271_v6  ;;  %v1440_v1 = vadd.f32 %v1408_v48, %v1272_v3  ;;  %v1740_v40 = vadd.f32 %v5132_v46, %v1540_v49  ;;  %v5141_v3 = vld [vmem:[#allocation29_spill] sm:$0xff]  ;;  %v5142_v24 = vld [vmem:[#allocation35_spill] sm:$0xff]  ;;  %v5143_v14 = vld [vmem:[#allocation30_spill] sm:$0xff] }
 0x29a   : > { %3006 = vmatmul.mubr.bf16.gmra.mrb[52].mxu1 %v2195_v62  ;;  %v1741_v4 = vadd.f32 %v5133_v39, %v1541_v10  ;;  %v1342_v18 = vmul.f32 %v3200_v45, %v4067_v21  ;;  %v1409_v50 = vmul.f32 %v3201_v23, %v4058_v8  ;;  %v2110_v2 = vadd.f32 %v4651_v13, %v2071_v11  ;;  %v4779_v60 = vld [vmem:[#allocation2 + $0x150] sm:$0xff]  ;;  %v4781_v52 = vld [vmem:[#allocation2 + $0x158] sm:$0xff]  ;;  %v3206_v49 = vld [vmem:[#allocation2 + $0x141] sm:$0xff] }
 0x29b   : > { %v2111_v44 = vadd.f32 %v4651_v13, %v2072_v32  ;;  %v1640_v61 = vadd.f32 %v5134_v56, %v1439_v54  ;;  %v1641_v27 = vadd.f32 %v5135_v38, %v1440_v1  ;;  %v1941_v19 = vadd.f32 %v5136_v20, %v1740_v40  ;;  %v4785_v32 = vld [vmem:[#allocation2 + $0x151] sm:$0xff]  ;;  %v3207_v40 = vld [vmem:[#allocation2 + $0x13a] sm:$0xff] }
 0x29c   : > { %v1942_v5 = vadd.f32 %v5137_v59, %v1741_v4  ;;  %v1410_v47 = vmul.f32 %v3202_v57, %v4058_v8  ;;  %v1441_v12 = vadd.f32 %v1409_v50, %v5138_v58  ;;  %v2142_v0 = vmax.f32 %v2110_v2, 0.0  ;;  %v4796_v50 = vld [vmem:[#allocation2 + $0x152] sm:$0xff]  ;;  %v4802_v38 = vld [vmem:[#allocation2 + $0x15a] sm:$0xff] }
 0x29d   : > { %v2143_v7 = vmax.f32 %v2111_v44, 0.0  ;;  %v1841_v42 = vadd.f32 %v5139_v22, %v1640_v61  ;;  %v1842_v6 = vadd.f32 %v5140_v25, %v1641_v27  ;;  %v1510_v55 = vmul.f32 %v3203_v29, %v4072_v28 }
 0x29e   : > { %v1442_v26 = vadd.f32 %v1410_v47, %v5141_v3  ;;  %v1511_v17 = vmul.f32 %v3204_v51, %v4072_v28  ;;  %v1610_v30 = vmul.f32 %v3205_v41, %v4076_v33  ;;  %v2174_v9 = vmin.f32 %v2142_v0, 6.0 }
 0x29f   : > { %v2175_v53 = vmin.f32 %v2143_v7, 6.0  ;;  %v2041_v34 = vadd.f32 %v5142_v24, %v1841_v42  ;;  %v2042_v16 = vadd.f32 %v2010_v63, %v1842_v6  ;;  %v1542_v48 = vadd.f32 %v1510_v55, %v5143_v14  ;;  %v4788_v63 = vld [vmem:[#allocation2 + $0x159] sm:$0xff]  ;;  %v4823_v14 = vld [vmem:[#allocation2 + $0x168] sm:$0xff] }
 0x2a0   : > { %v1543_v62 = vadd.f32 %v1511_v17, %v1342_v18  ;;  %v1611_v10 = vmul.f32 %v3206_v49, %v4076_v33  ;;  %v1642_v11 = vadd.f32 %v1610_v30, %v1441_v12  ;;  %v1710_v39 = vmul.f32 %v3207_v40, %v4078_v35 }
 0x2a1   : > { %v2196_v54 = vpack.c.bf16 %v2175_v53, %v2174_v9  ;;  %v2073_v1 = vadd.f32 %v2041_v34, %v1941_v19  ;;  %v2074_v46 = vadd.f32 %v2042_v16, %v1942_v5  ;;  %v1711_v45 = vmul.f32 %v4754_v31, %v4078_v35 }
 0x2a2   : > { %v1643_v4 = vadd.f32 %v1611_v10, %v1442_v26  ;;  %v1811_v18 = vmul.f32 %v4080_v36, %v4779_v60  ;;  %v1812_v23 = vmul.f32 %v4080_v36, %v4781_v52  ;;  %v1742_v56 = vadd.f32 %v1710_v39, %v1542_v48  ;;  %v4825_v48 = vld [vmem:[#allocation2 + $0x170] sm:$0xff] }
 0x2a3   : > { %3009 = vmatprep.mubr.bf16.mxu1 %v2196_v54  ;;  %v2112_v2 = vadd.f32 %v4651_v13, %v2073_v1  ;;  %v2113_v44 = vadd.f32 %v4651_v13, %v2074_v46  ;;  %v1911_v61 = vmul.f32 %v4082_v37, %v4785_v32  ;;  %v1743_v27 = vadd.f32 %v1711_v45, %v1543_v62  ;;  %v4837_v39 = vld [vmem:[#allocation2 + $0x171] sm:$0xff] }
 0x2a4   : > { %v1843_v20 = vadd.f32 %v1811_v18, %v1642_v11  ;;  %v1844_v19 = vadd.f32 %v1812_v23, %v1643_v4  ;;  %v1912_v59 = vmul.f32 %v4082_v37, %v4788_v63  ;;  %v2011_v58 = vmul.f32 %v4085_v43, %v4796_v50  ;;  %v4830_v11 = vld [vmem:[#allocation2 + $0x169] sm:$0xff] }
 0x2a5   : > { %v2144_v5 = vmax.f32 %v2112_v2, 0.0  ;;  %v2145_v57 = vmax.f32 %v2113_v44, 0.0  ;;  %v1943_v47 = vadd.f32 %v1911_v61, %v1742_v56  ;;  %v2012_v0 = vmul.f32 %v4085_v43, %v4802_v38  ;;  %v4843_v2 = vld [vmem:[#allocation2 + $0x16a] sm:$0xff]  ;;  %v4845_v44 = vld [vmem:[#allocation2 + $0x172] sm:$0xff] }
 0x2a6   : > { %v1944_v12 = vadd.f32 %v1912_v59, %v1743_v27  ;;  %v1275_v7 = vmul.f32 %v3203_v29, %v4063_v15  ;;  %v1276_v22 = vmul.f32 %v3204_v51, %v4063_v15  ;;  %v2043_v6 = vadd.f32 %v2011_v58, %v1843_v20 }
 0x2a7   : > { %v2176_v42 = vmin.f32 %v2144_v5, 6.0  ;;  %v2177_v25 = vmin.f32 %v2145_v57, 6.0  ;;  %v1343_v3 = vmul.f32 %v3205_v41, %v4067_v21  ;;  %v2044_v26 = vadd.f32 %v2012_v0, %v1844_v19 }
 0x2a8   : > { %v1344_v55 = vmul.f32 %v3206_v49, %v4067_v21  ;;  %v1411_v17 = vmul.f32 %v3207_v40, %v4058_v8  ;;  %v1412_v30 = vmul.f32 %v4754_v31, %v4058_v8  ;;  %v2075_v53 = vadd.f32 %v2043_v6, %v1943_v47 }
 0x2a9   : > { %v2197_v9 = vpack.c.bf16 %v2177_v25, %v2176_v42  ;;  %v1512_v29 = vmul.f32 %v4779_v60, %v4072_v28  ;;  %v1513_v51 = vmul.f32 %v4781_v52, %v4072_v28  ;;  %v2076_v24 = vadd.f32 %v2044_v26, %v1944_v12 }
 0x2aa   : > { %v1443_v34 = vadd.f32 %v1411_v17, %v1275_v7  ;;  %v1444_v16 = vadd.f32 %v1412_v30, %v1276_v22  ;;  %v1612_v41 = vmul.f32 %v4785_v32, %v4076_v33  ;;  %v2114_v31 = vadd.f32 %v4651_v13, %v2075_v53 }
 0x2ab   : > { %3010 = vmatmul.mubr.bf16.gmra.mrb[56].mxu1 %v2197_v9  ;;  %v1544_v62 = vadd.f32 %v1512_v29, %v1343_v3  ;;  %v1545_v49 = vadd.f32 %v1513_v51, %v1344_v55  ;;  %v1613_v10 = vmul.f32 %v4788_v63, %v4076_v33  ;;  %v2115_v54 = vadd.f32 %v4651_v13, %v2076_v24  ;;  %v1779_v29 = vld [vmem:[#allocation2 + $0x180] sm:$0xff] }
 0x2ac   : > { %v1644_v1 = vadd.f32 %v1612_v41, %v1443_v34  ;;  %v1712_v46 = vmul.f32 %v4796_v50, %v4078_v35  ;;  %v1713_v40 = vmul.f32 %v4802_v38, %v4078_v35  ;;  %v2146_v4 = vmax.f32 %v2114_v31, 0.0 }
 0x2ad   : > { %v1645_v45 = vadd.f32 %v1613_v10, %v1444_v16  ;;  %v1813_v18 = vmul.f32 %v4080_v36, %v4823_v14  ;;  %v1814_v23 = vmul.f32 %v4080_v36, %v4825_v48  ;;  %v2147_v56 = vmax.f32 %v2115_v54, 0.0  ;;  %v1880_v10 = vld [vmem:[#allocation2 + $0x189] sm:$0xff] }
 0x2ae   : > { %v1744_v61 = vadd.f32 %v1712_v46, %v1544_v62  ;;  %v1745_v27 = vadd.f32 %v1713_v40, %v1545_v49  ;;  %v1913_v20 = vmul.f32 %v4082_v37, %v4830_v11  ;;  %v2178_v19 = vmin.f32 %v2146_v4, 6.0  ;;  %v1879_v49 = vld [vmem:[#allocation2 + $0x181] sm:$0xff] }
 0x2af   : > { %v1845_v59 = vadd.f32 %v1813_v18, %v1644_v1  ;;  %v1846_v5 = vadd.f32 %v1814_v23, %v1645_v45  ;;  %v1914_v57 = vmul.f32 %v4082_v37, %v4837_v39  ;;  %v2179_v47 = vmin.f32 %v2147_v56, 6.0  ;;  %v1979_v4 = vld [vmem:[#allocation2 + $0x182] sm:$0xff]  ;;  %v1980_v45 = vld [vmem:[#allocation2 + $0x18a] sm:$0xff] }
 0x2b0   : > { %v1945_v58 = vadd.f32 %v1913_v20, %v1744_v61  ;;  %v2013_v12 = vmul.f32 %v4085_v43, %v4843_v2  ;;  %v2014_v0 = vmul.f32 %v4085_v43, %v4845_v44  ;;  %v1277_v22 = vmul.f32 %v4779_v60, %v4063_v15 }
 0x2b1   : > { %v1946_v7 = vadd.f32 %v1914_v57, %v1745_v27  ;;  %v1278_v42 = vmul.f32 %v4781_v52, %v4063_v15  ;;  %v1345_v25 = vmul.f32 %v4785_v32, %v4067_v21  ;;  %v2198_v6 = vpack.c.bf16 %v2179_v47, %v2178_v19 }
 0x2b2   : > { %v2045_v3 = vadd.f32 %v2013_v12, %v1845_v59  ;;  %v2046_v26 = vadd.f32 %v2014_v0, %v1846_v5  ;;  %v1346_v55 = vmul.f32 %v4788_v63, %v4067_v21  ;;  %v1413_v17 = vmul.f32 %v4796_v50, %v4058_v8  ;;  %v1780_v50 = vld [vmem:[#allocation2 + $0x188] sm:$0xff] }
 0x2b3   : > { %v1414_v30 = vmul.f32 %v4802_v38, %v4058_v8  ;;  %v1514_v60 = vmul.f32 %v4823_v14, %v4072_v28  ;;  %v1515_v52 = vmul.f32 %v4825_v48, %v4072_v28  ;;  %3013 = vmatprep.mubr.bf16.mxu1 %v2198_v6  ;;  %v1614_v53 = vmul.f32 %v4830_v11, %v4076_v33 }
 0x2b4   : > { %v2077_v32 = vadd.f32 %v2045_v3, %v1945_v58  ;;  %v2078_v9 = vadd.f32 %v2046_v26, %v1946_v7  ;;  %v1615_v63 = vmul.f32 %v4837_v39, %v4076_v33  ;;  %v1445_v51 = vadd.f32 %v1413_v17, %v1277_v22 }
 0x2b5   : > { %v1446_v24 = vadd.f32 %v1414_v30, %v1278_v42  ;;  %v1546_v38 = vadd.f32 %v1514_v60, %v1345_v25  ;;  %v1547_v34 = vadd.f32 %v1515_v52, %v1346_v55  ;;  %v1714_v31 = vmul.f32 %v4843_v2, %v4078_v35 }
 0x2b6   : > { %v2116_v16 = vadd.f32 %v4651_v13, %v2077_v32  ;;  %v2117_v41 = vadd.f32 %v4651_v13, %v2078_v9  ;;  %v1715_v62 = vmul.f32 %v4845_v44, %v4078_v35  ;;  %v1646_v54 = vadd.f32 %v1614_v53, %v1445_v51  ;;  %v1882_v53 = vld [vmem:[#allocation2 + $0x1a1] sm:$0xff] }
 0x2b7   : > { %v1647_v1 = vadd.f32 %v1615_v63, %v1446_v24  ;;  %v1815_v46 = vmul.f32 %v4080_v36, %v1779_v29  ;;  %v1816_v40 = vmul.f32 %v4080_v36, %v1780_v50  ;;  %v1746_v56 = vadd.f32 %v1714_v31, %v1546_v38  ;;  %v1981_v24 = vld [vmem:[#allocation2 + $0x19a] sm:$0xff] }
 0x2b8   : > { %v2148_v18 = vmax.f32 %v2116_v16, 0.0  ;;  %v2149_v23 = vmax.f32 %v2117_v41, 0.0  ;;  %v1747_v61 = vadd.f32 %v1715_v62, %v1547_v34  ;;  %v1915_v19 = vmul.f32 %v4082_v37, %v1879_v49  ;;  %v1982_v41 = vld [vmem:[#allocation2 + $0x1a2] sm:$0xff] }
 0x2b9   : > { %v1847_v27 = vadd.f32 %v1815_v46, %v1646_v54  ;;  %v1848_v20 = vadd.f32 %v1816_v40, %v1647_v1  ;;  %v1916_v59 = vmul.f32 %v4082_v37, %v1880_v10  ;;  %v2015_v47 = vmul.f32 %v4085_v43, %v1979_v4 }
 0x2ba   : > { %v2180_v5 = vmin.f32 %v2148_v18, 6.0  ;;  %v2181_v57 = vmin.f32 %v2149_v23, 6.0  ;;  %v2016_v58 = vmul.f32 %v4085_v43, %v1980_v45  ;;  %v1947_v12 = vadd.f32 %v1915_v19, %v1746_v56 }
 0x2bb   : > { %v1948_v0 = vadd.f32 %v1916_v59, %v1747_v61  ;;  %v1279_v7 = vmul.f32 %v4823_v14, %v4063_v15  ;;  %v1280_v22 = vmul.f32 %v4825_v48, %v4063_v15  ;;  %v2047_v25 = vadd.f32 %v2015_v47, %v1847_v27  ;;  %v2436_v47 = vld [vmem:[%s3932_s20 + $0x10] sm:$0xff] }
 0x2bc   : > { %v2199_v42 = vpack.c.bf16 %v2181_v57, %v2180_v5  ;;  %v2048_v6 = vadd.f32 %v2016_v58, %v1848_v20  ;;  %v1347_v3 = vmul.f32 %v4830_v11, %v4067_v21  ;;  %v1348_v26 = vmul.f32 %v4837_v39, %v4067_v21  ;;  %v1881_v39 = vld [vmem:[#allocation2 + $0x199] sm:$0xff] }
 0x2bd   : > { %v1415_v55 = vmul.f32 %v4843_v2, %v4058_v8  ;;  %v1416_v17 = vmul.f32 %v4845_v44, %v4058_v8  ;;  %v1516_v14 = vmul.f32 %v1779_v29, %v4072_v28  ;;  %v2079_v30 = vadd.f32 %v2047_v25, %v1947_v12 }
 0x2be   : > { %3014 = vmatmul.mubr.bf16.gmra.mrb[60].mxu1 %v2199_v42  ;;  %v2080_v15 = vadd.f32 %v2048_v6, %v1948_v0  ;;  %v1517_v48 = vmul.f32 %v1780_v50, %v4072_v28  ;;  %v1616_v60 = vmul.f32 %v1879_v49, %v4076_v33  ;;  %v1617_v21 = vmul.f32 %v1880_v10, %v4076_v33  ;;  %v3208_v50 = vld [vmem:[#allocation2 + $0x8] sm:$0xff]  ;;  %v2434_v0 = vld [vmem:[%s3932_s20] sm:$0xff] }
 0x2bf   : > { %v1447_v52 = vadd.f32 %v1415_v55, %v1279_v7  ;;  %v1448_v11 = vadd.f32 %v1416_v17, %v1280_v22  ;;  %v1548_v32 = vadd.f32 %v1516_v14, %v1347_v3  ;;  %v2118_v2 = vadd.f32 %v4651_v13, %v2079_v30  ;;  %v2435_v3 = vld [vmem:[%s3932_s20 + $0x8] sm:$0xff] }
 0x2c0   : > { %v2119_v9 = vadd.f32 %v4651_v13, %v2080_v15  ;;  %v1549_v8 = vadd.f32 %v1517_v48, %v1348_v26  ;;  %v1716_v44 = vmul.f32 %v1979_v4, %v4078_v35  ;;  %v1717_v28 = vmul.f32 %v1980_v45, %v4078_v35  ;;  %v2440_v15 = vld [vmem:[%s3932_s20 + $0x30] sm:$0xff] }
 0x2c1   : > { %v1648_v63 = vadd.f32 %v1616_v60, %v1447_v52  ;;  %v1649_v29 = vadd.f32 %v1617_v21, %v1448_v11  ;;  %v1817_v51 = vmul.f32 %v3208_v50, %v4080_v36  ;;  %v2150_v38 = vmax.f32 %v2118_v2, 0.0  ;;  %v2438_v52 = vld [vmem:[%s3932_s20 + $0x20] sm:$0xff]  ;;  %v2441_v21 = vld [vmem:[%s3932_s20 + $0x38] sm:$0xff]  ;;  %v2444_v50 = vld [vmem:[%s3932_s20 + $0x50] sm:$0xff] }
 0x2c2   : > { %v2151_v34 = vmax.f32 %v2119_v9, 0.0  ;;  %v1748_v33 = vadd.f32 %v1716_v44, %v1548_v32  ;;  %v1917_v16 = vmul.f32 %v4082_v37, %v1881_v39  ;;  %v1749_v31 = vadd.f32 %v1717_v28, %v1549_v8  ;;  %v2439_v8 = vld [vmem:[%s3932_s20 + $0x28] sm:$0xff] }
 0x2c3   : > { %v1849_v62 = vadd.f32 %v1817_v51, %v1648_v63  ;;  %v1850_v49 = vadd.f32 %v1817_v51, %v1649_v29  ;;  %v1918_v10 = vmul.f32 %v4082_v37, %v1882_v53  ;;  %v2182_v54 = vmin.f32 %v2150_v38, 6.0  ;;  %v2442_v38 = vld [vmem:[%s3932_s20 + $0x40] sm:$0xff] }
 0x2c4   : > { %v2183_v1 = vmin.f32 %v2151_v34, 6.0  ;;  %v1949_v46 = vadd.f32 %v1917_v16, %v1748_v33  ;;  %v2017_v35 = vmul.f32 %v4085_v43, %v1981_v24  ;;  %v2018_v36 = vmul.f32 %v4085_v43, %v1982_v41  ;;  %v4914_v43 = vld [vmem:[#allocation14] ss:$0 sm:$0xff] }
 0x2c5   : > { %v1950_v40 = vadd.f32 %v1918_v10, %v1749_v31  ;;  %v2445_v16 = vld [vmem:[%s3932_s20 + $0x58] sm:$0xff] }
 0x2c6   : > { %v2200_v4 = vpack.c.bf16 %v2183_v1, %v2182_v54  ;;  %v2049_v45 = vadd.f32 %v2017_v35, %v1849_v62  ;;  %v2050_v18 = vadd.f32 %v2018_v36, %v1850_v49  ;;  %v2443_v49 = vld [vmem:[%s3932_s20 + $0x48] sm:$0xff] }
 0x2c8   : > { %3017 = vmatprep.mubr.bf16.mxu1 %v2200_v4  ;;  %v2081_v23 = vadd.f32 %v2049_v45, %v1949_v46  ;;  %v2082_v56 = vadd.f32 %v2050_v18, %v1950_v40  ;;  %v2448_v40 = vld [vmem:[%s3932_s20 + $0x70] sm:$0xff]  ;;  %v2446_v45 = vld [vmem:[%s3932_s20 + $0x60] sm:$0xff] }
 0x2ca   : > { %v2120_v61 = vadd.f32 %v4651_v13, %v2081_v23  ;;  %v2121_v37 = vadd.f32 %v4651_v13, %v2082_v56  ;;  %v2437_v13 = vld [vmem:[%s3932_s20 + $0x18] sm:$0xff] }
 0x2cb   : > { %v2449_v56 = vld [vmem:[%s3932_s20 + $0x78] sm:$0xff] }
 0x2cc   : > { %v2152_v27 = vmax.f32 %v2120_v61, 0.0  ;;  %v2153_v20 = vmax.f32 %v2121_v37, 0.0 }
 0x2ce   : > { %v2184_v19 = vmin.f32 %v2152_v27, 6.0  ;;  %v2185_v59 = vmin.f32 %v2153_v20, 6.0  ;;  %v2447_v20 = vld [vmem:[%s3932_s20 + $0x68] sm:$0xff] }
 0x2d0   : > { %v2201_v5 = vpack.c.bf16 %v2185_v59, %v2184_v19 }
 0x2d2   : > { %3018 = vmatmul.mubr.bf16.gmra.mrb[64].mxu1 %v2201_v5 }
 0x309   : > { %v2991_v57 = vpop.f32.mrb[36].mxu1 }
 0x30a   : > { %v2316_v58 = vadd.f32 %v2991_v57, %v4914_v43  ;;  %v2307_v12 = vpop.f32.mrb[37].mxu1 }
 0x30b   : > { %v2308_v7 = vadd.f32 %v4914_v43, %v2307_v12  ;;  %v2992_v22 = vpop.f32.mrb[38].mxu1 }
 0x30c   : > { %v2468_v42 = vadd.f32 %v2436_v47, %v2316_v58  ;;  %v2319_v25 = vadd.f32 %v2992_v22, %v4914_v43  ;;  %v2310_v6 = vpop.f32.mrb[39].mxu1  ;;  %v2452_v58 = vld [vmem:[%s3932_s20 + $0x90] sm:$0xff] }
 0x30d   : > { %v2466_v26 = vadd.f32 %v2434_v0, %v2308_v7  ;;  %v2311_v55 = vadd.f32 %v4914_v43, %v2310_v6  ;;  %v2450_v7 = vld [vmem:[%s3932_s20 + $0x80] sm:$0xff] }
 0x30e   : > { %2500 = vst [vmem:[%s4926_s12 + $0x10] sm:$0xff] %v2468_v42  ;;  %v2469_v17 = vadd.f32 %v2437_v13, %v2319_v25  ;;  %v2453_v42 = vld [vmem:[%s3932_s20 + $0x98] sm:$0xff] }
 0x30f   : > { %2498 = vst [vmem:[%s4926_s12] sm:$0xff] %v2466_v26  ;;  %v2467_v14 = vadd.f32 %v2435_v3, %v2311_v55  ;;  %v2451_v26 = vld [vmem:[%s3932_s20 + $0x88] sm:$0xff] }
 0x310   : > { %2501 = vst [vmem:[%s4926_s12 + $0x18] sm:$0xff] %v2469_v17 }
 0x311   : > { %2499 = vst [vmem:[%s4926_s12 + $0x8] sm:$0xff] %v2467_v14 }
 0x321   : > { %v2995_v30 = vpop.f32.mrb[40].mxu1 }
 0x322   : > { %v2332_v48 = vadd.f32 %v2995_v30, %v4914_v43  ;;  %v2323_v60 = vpop.f32.mrb[41].mxu1 }
 0x323   : > { %v2324_v11 = vadd.f32 %v4914_v43, %v2323_v60  ;;  %v2996_v32 = vpop.f32.mrb[42].mxu1 }
 0x324   : > { %v2472_v39 = vadd.f32 %v2440_v15, %v2332_v48  ;;  %v2335_v2 = vadd.f32 %v2996_v32, %v4914_v43  ;;  %v2326_v9 = vpop.f32.mrb[43].mxu1  ;;  %v2456_v48 = vld [vmem:[%s3932_s20 + $0xb0] sm:$0xff] }
 0x325   : > { %v2470_v44 = vadd.f32 %v2438_v52, %v2324_v11  ;;  %v2327_v53 = vadd.f32 %v4914_v43, %v2326_v9  ;;  %v2454_v11 = vld [vmem:[%s3932_s20 + $0xa0] sm:$0xff] }
 0x326   : > { %2504 = vst [vmem:[%s4926_s12 + $0x30] sm:$0xff] %v2472_v39  ;;  %v2473_v63 = vadd.f32 %v2441_v21, %v2335_v2  ;;  %v2457_v39 = vld [vmem:[%s3932_s20 + $0xb8] sm:$0xff] }
 0x327   : > { %2502 = vst [vmem:[%s4926_s12 + $0x20] sm:$0xff] %v2470_v44  ;;  %v2471_v29 = vadd.f32 %v2439_v8, %v2327_v53  ;;  %v2455_v44 = vld [vmem:[%s3932_s20 + $0xa8] sm:$0xff] }
 0x328   : > { %2505 = vst [vmem:[%s4926_s12 + $0x38] sm:$0xff] %v2473_v63 }
 0x329   : > { %2503 = vst [vmem:[%s4926_s12 + $0x28] sm:$0xff] %v2471_v29 }
 0x33b   : > { %v2999_v28 = vpop.f32.mrb[44].mxu1 }
 0x33c   : > { %v2348_v51 = vadd.f32 %v2999_v28, %v4914_v43  ;;  %v2339_v24 = vpop.f32.mrb[45].mxu1 }
 0x33d   : > { %v2340_v34 = vadd.f32 %v4914_v43, %v2339_v24  ;;  %v3000_v33 = vpop.f32.mrb[46].mxu1 }
 0x33e   : > { %v2476_v41 = vadd.f32 %v2444_v50, %v2348_v51  ;;  %v2351_v31 = vadd.f32 %v3000_v33, %v4914_v43  ;;  %v2342_v62 = vpop.f32.mrb[47].mxu1  ;;  %v2460_v51 = vld [vmem:[%s3932_s20 + $0xd0] sm:$0xff] }
 0x33f   : > { %v2474_v10 = vadd.f32 %v2442_v38, %v2340_v34  ;;  %v2343_v54 = vadd.f32 %v4914_v43, %v2342_v62  ;;  %v2458_v34 = vld [vmem:[%s3932_s20 + $0xc0] sm:$0xff] }
 0x340   : > { %2508 = vst [vmem:[%s4926_s12 + $0x50] sm:$0xff] %v2476_v41  ;;  %v2477_v1 = vadd.f32 %v2445_v16, %v2351_v31  ;;  %v2461_v41 = vld [vmem:[%s3932_s20 + $0xd8] sm:$0xff] }
 0x341   : > { %2506 = vst [vmem:[%s4926_s12 + $0x40] sm:$0xff] %v2474_v10  ;;  %v2475_v46 = vadd.f32 %v2443_v49, %v2343_v54  ;;  %v2459_v10 = vld [vmem:[%s3932_s20 + $0xc8] sm:$0xff] }
 0x342   : > { %2509 = vst [vmem:[%s4926_s12 + $0x58] sm:$0xff] %v2477_v1 }
 0x343   : > { %2507 = vst [vmem:[%s4926_s12 + $0x48] sm:$0xff] %v2475_v46 }
 0x357   : > { %v3003_v35 = vpop.f32.mrb[48].mxu1 }
 0x358   : > { %v2364_v36 = vadd.f32 %v3003_v35, %v4914_v43  ;;  %v2355_v4 = vpop.f32.mrb[49].mxu1 }
 0x359   : > { %v2356_v18 = vadd.f32 %v4914_v43, %v2355_v4  ;;  %v3004_v23 = vpop.f32.mrb[50].mxu1 }
 0x35a   : > { %v2480_v61 = vadd.f32 %v2448_v40, %v2364_v36  ;;  %v2367_v37 = vadd.f32 %v3004_v23, %v4914_v43  ;;  %v2358_v27 = vpop.f32.mrb[51].mxu1  ;;  %v2464_v36 = vld [vmem:[%s3932_s20 + $0xf0] sm:$0xff] }
 0x35b   : > { %v2478_v19 = vadd.f32 %v2446_v45, %v2356_v18  ;;  %v2359_v59 = vadd.f32 %v4914_v43, %v2358_v27  ;;  %v2462_v18 = vld [vmem:[%s3932_s20 + $0xe0] sm:$0xff] }
 0x35c   : > { %2512 = vst [vmem:[%s4926_s12 + $0x70] sm:$0xff] %v2480_v61  ;;  %v2481_v5 = vadd.f32 %v2449_v56, %v2367_v37  ;;  %v2465_v61 = vld [vmem:[%s3932_s20 + $0xf8] sm:$0xff] }
 0x35d   : > { %2510 = vst [vmem:[%s4926_s12 + $0x60] sm:$0xff] %v2478_v19  ;;  %v2479_v57 = vadd.f32 %v2447_v20, %v2359_v59  ;;  %v2463_v19 = vld [vmem:[%s3932_s20 + $0xe8] sm:$0xff] }
 0x35e   : > { %2513 = vst [vmem:[%s4926_s12 + $0x78] sm:$0xff] %v2481_v5 }
 0x35f   : > { %2511 = vst [vmem:[%s4926_s12 + $0x68] sm:$0xff] %v2479_v57 }
 0x36d   : > { %v3007_v47 = vpop.f32.mrb[52].mxu1 }
 0x36e   : > { %v2380_v12 = vadd.f32 %v3007_v47, %v4914_v43  ;;  %v2371_v0 = vpop.f32.mrb[53].mxu1 }
 0x36f   : > { %v2372_v22 = vadd.f32 %v4914_v43, %v2371_v0  ;;  %v3008_v13 = vpop.f32.mrb[54].mxu1 }
 0x370   : > { %v2484_v25 = vadd.f32 %v2452_v58, %v2380_v12  ;;  %v2383_v6 = vadd.f32 %v3008_v13, %v4914_v43  ;;  %v2374_v3 = vpop.f32.mrb[55].mxu1 }
 0x371   : > { %v2482_v55 = vadd.f32 %v2450_v7, %v2372_v22  ;;  %v2375_v17 = vadd.f32 %v4914_v43, %v2374_v3 }
 0x372   : > { %2516 = vst [vmem:[%s4926_s12 + $0x90] sm:$0xff] %v2484_v25  ;;  %v2485_v14 = vadd.f32 %v2453_v42, %v2383_v6 }
 0x373   : > { %2514 = vst [vmem:[%s4926_s12 + $0x80] sm:$0xff] %v2482_v55  ;;  %v2483_v30 = vadd.f32 %v2451_v26, %v2375_v17 }
 0x374   : > { %2517 = vst [vmem:[%s4926_s12 + $0x98] sm:$0xff] %v2485_v14 }
 0x375   : > { %2515 = vst [vmem:[%s4926_s12 + $0x88] sm:$0xff] %v2483_v30 }
 0x37e   : > { %v3011_v15 = vpop.f32.mrb[56].mxu1 }
 0x37f   : > { %v2396_v60 = vadd.f32 %v3011_v15, %v4914_v43  ;;  %v2387_v52 = vpop.f32.mrb[57].mxu1 }
 0x380   : > { %v2388_v32 = vadd.f32 %v4914_v43, %v2387_v52  ;;  %v3012_v21 = vpop.f32.mrb[58].mxu1 }
 0x381   : > { %v2488_v2 = vadd.f32 %v2456_v48, %v2396_v60  ;;  %v2399_v9 = vadd.f32 %v3012_v21, %v4914_v43  ;;  %v2390_v8 = vpop.f32.mrb[59].mxu1 }
 0x382   : > { %v2486_v53 = vadd.f32 %v2454_v11, %v2388_v32  ;;  %v2391_v63 = vadd.f32 %v4914_v43, %v2390_v8 }
 0x383   : > { %2520 = vst [vmem:[%s4926_s12 + $0xb0] sm:$0xff] %v2488_v2  ;;  %v2489_v29 = vadd.f32 %v2457_v39, %v2399_v9 }
 0x384   : > { %2518 = vst [vmem:[%s4926_s12 + $0xa0] sm:$0xff] %v2486_v53  ;;  %v2487_v28 = vadd.f32 %v2455_v44, %v2391_v63 }
 0x385   : > { %2521 = vst [vmem:[%s4926_s12 + $0xb8] sm:$0xff] %v2489_v29 }
 0x386   : > { %2519 = vst [vmem:[%s4926_s12 + $0xa8] sm:$0xff] %v2487_v28 }
 0x391   : > { %v3015_v50 = vpop.f32.mrb[60].mxu1 }
 0x392   : > { %v2412_v24 = vadd.f32 %v3015_v50, %v4914_v43  ;;  %v2403_v38 = vpop.f32.mrb[61].mxu1 }
 0x393   : > { %v2404_v33 = vadd.f32 %v4914_v43, %v2403_v38  ;;  %v3016_v16 = vpop.f32.mrb[62].mxu1 }
 0x394   : > { %v2492_v31 = vadd.f32 %v2460_v51, %v2412_v24  ;;  %v2415_v62 = vadd.f32 %v3016_v16, %v4914_v43  ;;  %v2406_v49 = vpop.f32.mrb[63].mxu1 }
 0x395   : > { %v2490_v54 = vadd.f32 %v2458_v34, %v2404_v33  ;;  %v2407_v1 = vadd.f32 %v4914_v43, %v2406_v49 }
 0x396   : > { %2524 = vst [vmem:[%s4926_s12 + $0xd0] sm:$0xff] %v2492_v31  ;;  %v2493_v46 = vadd.f32 %v2461_v41, %v2415_v62 }
 0x397   : > { %2522 = vst [vmem:[%s4926_s12 + $0xc0] sm:$0xff] %v2490_v54  ;;  %v2491_v35 = vadd.f32 %v2459_v10, %v2407_v1 }
 0x398   : > { %2525 = vst [vmem:[%s4926_s12 + $0xd8] sm:$0xff] %v2493_v46 }
 0x399   : > { %2523 = vst [vmem:[%s4926_s12 + $0xc8] sm:$0xff] %v2491_v35 }
 0x3a5   : > { %v3019_v40 = vpop.f32.mrb[64].mxu1 }
 0x3a6   : > { %v2428_v4 = vadd.f32 %v3019_v40, %v4914_v43  ;;  %v2419_v45 = vpop.f32.mrb[65].mxu1 }
 0x3a7   : > { %v2420_v23 = vadd.f32 %v4914_v43, %v2419_v45  ;;  %v3020_v56 = vpop.f32.mrb[66].mxu1 }
 0x3a8   : > { %v2496_v37 = vadd.f32 %v2464_v36, %v2428_v4  ;;  %v2431_v27 = vadd.f32 %v3020_v56, %v4914_v43  ;;  %v2422_v20 = vpop.f32.mrb[67].mxu1 }
 0x3a9   : > { %v2494_v59 = vadd.f32 %v2462_v18, %v2420_v23  ;;  %v2423_v5 = vadd.f32 %v4914_v43, %v2422_v20 }
 0x3aa   : > { %2528 = vst [vmem:[%s4926_s12 + $0xf0] sm:$0xff] %v2496_v37  ;;  %v2497_v57 = vadd.f32 %v2465_v61, %v2431_v27 }
 0x3ab   : > { %2526 = vst [vmem:[%s4926_s12 + $0xe0] sm:$0xff] %v2494_v59  ;;  %v2495_v47 = vadd.f32 %v2463_v19, %v2423_v5 }
 0x3ac   : > { %2529 = vst [vmem:[%s4926_s12 + $0xf8] sm:$0xff] %v2497_v57 }
 0x3ad   : > { %2527 = vst [vmem:[%s4926_s12 + $0xe8] sm:$0xff] %v2495_v47 }
 0x3ae   : > { %3450 = shalt.err (!%p3447_p12)
}
 0x3af   : > { %s3451_s25 = scalar_lea.hbm %s5018_s21, 4096  ;;  %s3455_s4 = scalar_lea.hbm %s5144_s17, 8192 }
 0x3b0   : > { %p3452_p0 = scmp.ne.s32.totalorder %s5018_s21, %s3451_s25  ;;  %p3456_p2 = scmp.lt.u32.totalorder %s5018_s21, %s5144_s17 }
 0x3b1   : > { %p3457_p7 = scmp.lt.u32.totalorder %s3455_s4, %s3451_s25  ;;  %p3459_p11 = scmp.lt.u32.totalorder %s3451_s25, %s5018_s21 }
 0x3b2   : > { %p3453_p10 = pnand %p3452_p0, %p5145_p1 }
 0x3b3   : > { %p3458_p5 = por %p3457_p7, %p3456_p2 }
 0x3b4   : > { %p3454_p13 = pneg %p3453_p10 }
 0x3b5   : > { %p3460_p8 = por %p3459_p11, %p3458_p5 }
 0x3b7   : > { %p3461_p9 = pnand %p3460_p8, %p3454_p13 }
 0x3b9   : > { %3464 = shalt.err (!%p3461_p9)
}
 0x3ba   : > { %s3552_s20 = smov 128   ;;  %s3553_s12 = smov 8  }
 0x3bb   : > { %3054 = dma.vmem_to_hbm [thread:$0]  (%p5145_p1), %s5020_s26, 4096, %s5018_s21, %s2531_s30, %s3552_s20, %s3552_s20, %s3553_s12  }
 0x3bc PF: > { %s2562_s19 = sand.u32 1, %s3515_s27   ;;  %p5146_p4 = scmp.ne.s32.totalorder %s5112_s1, 0 }
 0x3bd   : > { %p5147_p6 = scmp.ge.s32.totalorder %s3535_s10, 2  ;;  %s2563_s18 = scalar_lea.sflag [#allocation5], %s2562_s19 }
 0x3bf   : > { %p3083_p3 = pnand %p5147_p6, %p5146_p4 }
 0x3c1   : > { %3510 = dma.done.wait (!%p3083_p3), %s2563_s18, 4096  }
 0x3c2   : > { %3512 = vsyncadd (!%p3083_p3), %s2563_s18, 4294963200  ;;  %s30_s10 = sadd.s32 1, %s3535_s10   ;;  %s5148_s27 = smov %s3519_s28 }
 0x3c3   : > { %p27_p12 = scmp.ge.s32.totalorder %s30_s10, 4   ;;  %s5149_s28 = smov %s3523_s29 }
 0x3c4   : > { %s5150_s29 = smov %s3810_s22  ;;  %s5151_s30 = smov %s3531_s9 }
 0x3c5   : > { %s5152_s9 = smov %s5154_s23  ;;  %29 = sbr.rel (!%p27_p12) target bundleno = 19 (0x13), region = 142 }
 0x3cc   :  { %2568 = vsyncpa [#allocation4], 1 }
 0x3cd   :  { %2570 = vsyncpa [#allocation4 + $0x1], 1 }
 0x3ce   :  { %2571 = vsyncpa [#allocation7], 1 }
 0x3cf   :  { %2572 = vsyncpa [#allocation10], 1 }
 0x3d0   :  { %2573 = vsyncpa [#allocation13], 1 }
 0x3d1   :  { %2574 = vsyncpa [#allocation16], 1 }
 0x3d2   :  { %2576 = vsyncpa [#allocation16 + $0x1], 1 }
 0x3d3   :  { %2577 = vsyncpa [#allocation5], 1 }
 0x3d4   :  { %2579 = vsyncpa [#allocation5 + $0x1], 1 }

</bundles_post_ra>
